<compile_context>
chip_gen: v7x
topology: tpu7x:2x2x1
jax: 0.10.0
libtpu: 0.0.40
codegen_flags: <defaults>
</compile_context>

<pallas_src>
import functools

import jax
import jax.numpy as jnp
from jax.experimental import pallas as pl
from jax.experimental.pallas import tpu as pltpu

LANES = 128       # TPU lane width
KW = 4            # conv kernel size (fixed by the module)
PADW = 2          # int(np.ceil((4 - 1) / 2))
NEG_SLOPE = 0.2   # LeakyReLU slope


def _round_up(x, m):
    return (x + m - 1) // m * m


def _pick_tm(m):
    """Row tile: 512 for large M; for small M aim for >= 2 blocks (v7x dual TC)."""
    if m >= 1024:
        return 512
    if m < 8:
        return m
    return min(512, _round_up(max(8, (m + 1) // 2), 8))


def _vmem_limit_bytes(tm, kp, cp, out_itemsize, fuse_in):
    bufs = (2 * tm * kp * 2                 # double-buffered bf16 A tiles
            + 2 * kp * cp * 2               # bf16 weights
            + 2 * tm * cp * out_itemsize    # output tiles
            + 8 * cp * 4 + 4 * kp * 4)      # bias / stats / scale+shift vectors
    temps = tm * cp * 8 + (tm * kp * 6 if fuse_in else 0)   # f32 epilogue/affine temps
    return int(min(100 * 2 ** 20, max(16 * 2 ** 20, 2 * (bufs + temps) + (2 << 20))))


# ------------------------------ Pallas kernel -------------------------------

def _conv_kernel(*refs, fuse_in, apply_act, emit_stats, rows_total, block_rows):
    """(TM, Kp) x (Kp, Cp) conv-as-matmul step with fused epilogues.

    fuse_in:    apply the PREVIOUS layer's BatchNorm affine + LeakyReLU to the patch
                tile (per-K-column scale/shift) before the matmul.
    apply_act:  LeakyReLU on this layer's own conv output (non-BN layers).
    emit_stats: also emit per-block channel sum / sum-of-squares of the pre-activation
                output (masked ones row-vector matmuls on the MXU) for fused BN stats.
    """
    it = iter(refs)
    a_ref, w_ref, b_ref = next(it), next(it), next(it)
    if fuse_in:
        s_ref, t_ref = next(it), next(it)
    y_ref = next(it)
    if emit_stats:
        sum_ref, ssq_ref = next(it), next(it)

    a = a_ref[...]
    if fuse_in:                                        # prev-layer BN affine + act
        af = a.astype(jnp.float32) * s_ref[...] + t_ref[...]
        af = jnp.where(af >= 0.0, af, NEG_SLOPE * af)
        a = af.astype(jnp.bfloat16)

    acc = jnp.dot(a, w_ref[...], preferred_element_type=jnp.float32)
    acc = acc + b_ref[...]                             # f32 epilogue (v5e: no bf16 VPU)
    if apply_act:
        acc = jnp.where(acc >= 0.0, acc, NEG_SLOPE * acc)
    y_ref[...] = acc.astype(y_ref.dtype)

    if emit_stats:
        valid = rows_total - pl.program_id(0) * block_rows
        ridx = jax.lax.broadcasted_iota(jnp.int32, (1, block_rows), 1)
        ones_m = (ridx < valid).astype(jnp.float32)    # row mask encoded in ones-vector
        sum_ref[...] = jnp.dot(ones_m, acc, preferred_element_type=jnp.float32)[None]
        ssq_ref[...] = jnp.dot(ones_m, acc * acc,
                               preferred_element_type=jnp.float32)[None]


# ------------------------------ Pallas wrapper ------------------------------

def conv_fused(patches, w_mat, bias, scale_vec=None, shift_vec=None, *,
               apply_act, emit_stats, out_dtype=jnp.bfloat16):
    """patches: (M, Kp) bf16, w_mat: (Kp, Cp) bf16, bias: (1, Cp) f32.
    scale_vec/shift_vec: optional (Kp,) f32 per-column affine (previous fused BN).

    Returns y (M, Cp) [out_dtype]; if emit_stats also per-block (G, 1, Cp) channel
    sums and sums-of-squares (f32) of the pre-activation output.
    """
    m, kp = patches.shape
    cp = w_mat.shape[1]
    tm = _pick_tm(m)
    g = pl.cdiv(m, tm)
    m_pad = g * tm
    if m_pad != m:     # keep every input block fully in-bounds (tail rows = real zeros)
        patches = jnp.pad(patches, ((0, m_pad - m), (0, 0)))
    fuse_in = scale_vec is not None

    kernel = functools.partial(_conv_kernel, fuse_in=fuse_in, apply_act=apply_act,
                               emit_stats=emit_stats, rows_total=m, block_rows=tm)

    in_specs = [
        pl.BlockSpec((tm, kp), lambda i: (i, 0)),      # patch rows (bf16)
        pl.BlockSpec((kp, cp), lambda i: (0, 0)),      # resident weights (bf16)
        pl.BlockSpec((1, cp), lambda i: (0, 0)),       # bias (f32)
    ]
    inputs = [patches, w_mat, bias]
    if fuse_in:
        in_specs += [pl.BlockSpec((1, kp), lambda i: (0, 0)),
                     pl.BlockSpec((1, kp), lambda i: (0, 0))]
        inputs += [scale_vec.reshape(1, kp).astype(jnp.float32),
                   shift_vec.reshape(1, kp).astype(jnp.float32)]

    out_shape = [jax.ShapeDtypeStruct((m, cp), out_dtype)]
    out_specs = [pl.BlockSpec((tm, cp), lambda i: (i, 0))]
    if emit_stats:
        out_shape += [jax.ShapeDtypeStruct((g, 1, cp), jnp.float32)] * 2
        out_specs += [pl.BlockSpec((1, 1, cp), lambda i: (i, 0, 0))] * 2

    outs = pl.pallas_call(
        kernel,
        out_shape=tuple(out_shape),
        grid_spec=pltpu.PrefetchScalarGridSpec(
            num_scalar_prefetch=0,
            grid=(g,),
            in_specs=in_specs,
            out_specs=tuple(out_specs),
        ),
        compiler_params=pltpu.CompilerParams(
            dimension_semantics=("parallel",),
            vmem_limit_bytes=_vmem_limit_bytes(
                tm, kp, cp, jnp.dtype(out_dtype).itemsize, fuse_in)),
    )(*inputs)

    if emit_stats:
        return outs
    return outs[0]


# ------------------------------- glue (JAX) ---------------------------------

def extract_patches(x_nhwc, stride, k_pad_to, border_val=None):
    """im2col: (N,H,W,C) -> ((N*Ho*Wo, k_pad_to), (N,Ho,Wo)); tap order (kh,kw), C inner.

    border_val (C,), if given, is painted onto the spatial-padding region so that a
    downstream fused affine (leaky(x*scale + shift)) evaluates to ~0 at padded taps.
    """
    N, H, W, C = x_nhwc.shape
    xp = jnp.pad(x_nhwc, ((0, 0), (PADW, PADW), (PADW, PADW), (0, 0)))
    if border_val is not None:
        hp, wp = H + 2 * PADW, W + 2 * PADW
        r = jnp.arange(hp)[:, None]
        c = jnp.arange(wp)[None, :]
        interior = (r >= PADW) & (r < PADW + H) & (c >= PADW) & (c < PADW + W)
        xp = jnp.where(interior[None, :, :, None], xp,
                       border_val.astype(xp.dtype)[None, None, None, :])
    Ho = (H + 2 * PADW - KW) // stride + 1
    Wo = (W + 2 * PADW - KW) // stride + 1
    cols = []
    for kh in range(KW):
        for kv in range(KW):
            cols.append(xp[:, kh:kh + stride * Ho:stride,
                           kv:kv + stride * Wo:stride, :])
    patches = jnp.concatenate(cols, axis=-1).reshape(N * Ho * Wo, KW * KW * C)
    if k_pad_to > KW * KW * C:
        patches = jnp.pad(patches, ((0, 0), (0, k_pad_to - KW * KW * C)))
    return patches, (N, Ho, Wo)


def _tile_to_k(v, k_pad_to):
    """Per-channel vector -> per-K-column vector (tap-major, C inner), zero-padded."""
    vk = jnp.tile(v, KW * KW)
    if k_pad_to > vk.shape[0]:
        vk = jnp.pad(vk, (0, k_pad_to - vk.shape[0]))
    return vk


def layer_config(input_nc, ndf, n_layers):
    # (cin, cout, stride, has_bn, has_act) -- follows the given PyTorch module exactly
    cfg = [(input_nc, ndf, 2, False, True)]
    for i in range(n_layers):
        cfg.append((ndf * 2 ** i, ndf * 2 ** (i + 1), 2, True, True))
    cfg.append((ndf * 2 ** n_layers, ndf * 2 ** n_layers, 2, True, True))
    cfg.append((ndf * 2 ** n_layers, 1, 1, False, False))
    return cfg


def init_params(key, input_nc, ndf, n_layers):
    """PyTorch-layout parameters: weight [Cout,Cin,4,4], bias [Cout], BN gamma/beta."""
    params = []
    for (cin, cout, _stride, has_bn, _act) in layer_config(input_nc, ndf, n_layers):
        key, kw_, kb_, kg_, kbt_ = jax.random.split(key, 5)
        p = {
            "weight": 0.05 * jax.random.normal(kw_, (cout, cin, 4, 4), jnp.float32),
            "bias": 0.05 * jax.random.normal(kb_, (cout,), jnp.float32),
        }
        if has_bn:
            p["gamma"] = 1.0 + 0.1 * jax.random.normal(kg_, (cout,), jnp.float32)
            p["beta"] = 0.1 * jax.random.normal(kbt_, (cout,), jnp.float32)
        params.append(p)
    return params


def prepare_params(params, cfg):
    """One-time repack (hoisted out of forward): weight -> (round_up(16*Cin,128),
    round_up(Cout,128)) bf16; bias padded to Cout_pad (f32); gamma/beta kept unpadded."""
    prepped = []
    for p, (cin, cout, _stride, has_bn, _act) in zip(params, cfg):
        k = KW * KW * cin
        kp = _round_up(k, LANES)
        cop = _round_up(cout, LANES)
        w = jnp.transpose(p["weight"], (2, 3, 1, 0)).reshape(k, cout)  # (kh,kw,cin,cout)
        w = jnp.pad(w, ((0, kp - k), (0, cop - cout)))
        entry = {
            "w_mat": w.astype(jnp.bfloat16),
            "bias": jnp.pad(p["bias"], (0, cop - cout)).reshape(1, cop)
                    .astype(jnp.float32),
        }
        if has_bn:
            entry["gamma"] = p["gamma"].astype(jnp.float32)
            entry["beta"] = p["beta"].astype(jnp.float32)
        prepped.append(entry)
    return prepped


def discriminator_forward(x_nchw, prepped, cfg, *, eps=1e-5):
    # NCHW -> NHWC; activations flow between layers as bf16 (epilogue math stays f32)
    x = jnp.transpose(x_nchw, (0, 2, 3, 1)).astype(jnp.bfloat16)
    pending = None          # (scale, shift) of the previous layer's BN, fused here
    n_total = len(cfg)

    for li, (p, (cin, cout, stride, has_bn, has_act)) in enumerate(zip(prepped, cfg)):
        x = x[..., :cin]                        # drop lane padding before im2col
        kp, cop = p["w_mat"].shape
        is_last = li == n_total - 1
        out_dtype = jnp.float32 if is_last else jnp.bfloat16

        if pending is None:
            patches, (N, Ho, Wo) = extract_patches(x, stride, kp)
            s_vec = t_vec = None
        else:
            scale_prev, shift_prev = pending
            safe = jnp.where(scale_prev == 0.0, 1.0, scale_prev)
            border = jnp.where(scale_prev == 0.0, 0.0, -shift_prev / safe)
            patches, (N, Ho, Wo) = extract_patches(x, stride, kp, border_val=border)
            s_vec = _tile_to_k(scale_prev, kp)
            t_vec = _tile_to_k(shift_prev, kp)

        if has_bn:
            y, sums, ssqs = conv_fused(patches, p["w_mat"], p["bias"], s_vec, t_vec,
                                       apply_act=False, emit_stats=True,
                                       out_dtype=out_dtype)
            m = N * Ho * Wo
            mean = (jnp.sum(sums, axis=(0, 1)) / m)[:cout]   # batch stats over (N,H,W)
            ex2 = (jnp.sum(ssqs, axis=(0, 1)) / m)[:cout]
            # TODO(synk): E[x^2]-E[x]^2 in f32 can cancel for huge M; switch to a
            # per-block (mean, M2) merge if tight agreement with PyTorch BN is needed.
            var = jnp.maximum(ex2 - mean * mean, 0.0)        # biased var (PyTorch BN)
            scale = p["gamma"] / jnp.sqrt(var + eps)
            shift = p["beta"] - mean * scale
            pending = (scale, shift)    # BN affine + LeakyReLU applied by the consumer
        else:
            y = conv_fused(patches, p["w_mat"], p["bias"], s_vec, t_vec,
                           apply_act=has_act, emit_stats=False, out_dtype=out_dtype)
            pending = None

        x = y.reshape(N, Ho, Wo, cop)

    out = x[..., :cfg[-1][1]].astype(jnp.float32)            # drop channel padding
    return jnp.transpose(out, (0, 3, 1, 2))                  # back to NCHW


# ---------------------------------- main ------------------------------------

if __name__ == "__main__":
    input_nc, ndf, n_layers = 4, 8, 3
    key = jax.random.PRNGKey(0)
    k_in, k_par = jax.random.split(key)

    x = jax.random.normal(k_in, (2, input_nc, 16, 16), jnp.float32)   # NCHW
    cfg = layer_config(input_nc, ndf, n_layers)
    params = init_params(k_par, input_nc, ndf, n_layers)
    prepped = prepare_params(params, cfg)                  # hoisted weight repack

    fwd = jax.jit(lambda xx, pp: discriminator_forward(xx, pp, cfg))
    out = fwd(x, prepped)
    jax.block_until_ready(out)

    # expected PatchGAN output for 16x16 input with n_layers=3 (padw=2): (2, 1, 3, 3)
    assert out.shape == (2, 1, 3, 3), out.shape
    assert bool(jnp.all(jnp.isfinite(out)))
    print("KERNEL_OK")
</pallas_src>

<mosaic_0001>
module attributes {stable_mosaic.version = 11 : i64} {
  func.func @_conv_kernel(%arg0: i32, %arg1: memref<88x128xbf16, #tpu.memory_space<vmem>>, %arg2: memref<128x128xbf16, #tpu.memory_space<vmem>>, %arg3: memref<1x128xf32, #tpu.memory_space<vmem>>, %arg4: memref<88x128xbf16, #tpu.memory_space<vmem>>) attributes {dimension_semantics = [#tpu.dimension_semantics<parallel>], iteration_bounds = array<i64: 2>, scalar_prefetch = 0 : i64, scratch_operands = 0 : i64, tpu.core_type = #tpu.core_type<tc>, window_params = [{transform_indices = @transform_0, window_bounds = array<i64: 88, 128>}, {pipeline_mode = #tpu.pipeline_mode<synchronous>, transform_indices = @transform_1, window_bounds = array<i64: 128, 128>}, {pipeline_mode = #tpu.pipeline_mode<synchronous>, transform_indices = @transform_2, window_bounds = array<i64: 1, 128>}, {transform_indices = @transform_3, window_bounds = array<i64: 88, 128>}]} {
    %c0 = arith.constant 0 : index
    %c0_0 = arith.constant 0 : index
    %0 = vector.load %arg1[%c0, %c0_0] : memref<88x128xbf16, #tpu.memory_space<vmem>>, vector<88x128xbf16>
    %c0_1 = arith.constant 0 : index
    %c0_2 = arith.constant 0 : index
    %1 = vector.load %arg2[%c0_1, %c0_2] : memref<128x128xbf16, #tpu.memory_space<vmem>>, vector<128x128xbf16>
    %cst = arith.constant dense<0.000000e+00> : vector<88x128xf32>
    %2 = tpu.matmul %0, %1, %cst {dimension_numbers = #tpu.dot_dimension_numbers<[1], [0], [0], [1], [0, 0, 1, 1], [], []>} : vector<88x128xbf16>, vector<128x128xbf16>, vector<88x128xf32> -> vector<88x128xf32>
    %c0_3 = arith.constant 0 : index
    %c0_4 = arith.constant 0 : index
    %3 = vector.load %arg3[%c0_3, %c0_4] : memref<1x128xf32, #tpu.memory_space<vmem>>, vector<1x128xf32>
    %4 = vector.broadcast %3 : vector<1x128xf32> to vector<88x128xf32>
    %5 = arith.addf %2, %4 : vector<88x128xf32>
    %cst_5 = arith.constant 0.000000e+00 : f32
    %6 = vector.broadcast %cst_5 : f32 to vector<88x128xf32>
    %7 = arith.cmpf oge, %5, %6 : vector<88x128xf32>
    %cst_6 = arith.constant 2.000000e-01 : f32
    %8 = vector.broadcast %cst_6 : f32 to vector<88x128xf32>
    %9 = arith.mulf %8, %5 : vector<88x128xf32>
    %10 = arith.select %7, %5, %9 : vector<88x128xi1>, vector<88x128xf32>
    %11 = arith.truncf %10 : vector<88x128xf32> to vector<88x128xbf16>
    %c0_7 = arith.constant 0 : index
    %c0_8 = arith.constant 0 : index
    %12 = vector.load %arg4[%c0_7, %c0_8] : memref<88x128xbf16, #tpu.memory_space<vmem>>, vector<88x128xbf16>
    tpu.vector_store %arg4[%c0_7, %c0_8], %11 {strides = array<i32>} : memref<88x128xbf16, #tpu.memory_space<vmem>>, vector<88x128xbf16>,
    return
  }
  func.func @transform_0(%arg0: i32) -> (i32, i32) {
    %c0_i32 = arith.constant 0 : i32
    %c0_i32_0 = arith.constant 0 : i32
    return %arg0, %c0_i32 : i32, i32
  }
  func.func @transform_1(%arg0: i32) -> (i32, i32) {
    %c0_i32 = arith.constant 0 : i32
    %c0_i32_0 = arith.constant 0 : i32
    %c0_i32_1 = arith.constant 0 : i32
    return %c0_i32, %c0_i32_0 : i32, i32
  }
  func.func @transform_2(%arg0: i32) -> (i32, i32) {
    %c0_i32 = arith.constant 0 : i32
    %c0_i32_0 = arith.constant 0 : i32
    %c0_i32_1 = arith.constant 0 : i32
    return %c0_i32, %c0_i32_0 : i32, i32
  }
  func.func @transform_3(%arg0: i32) -> (i32, i32) {
    %c0_i32 = arith.constant 0 : i32
    %c0_i32_0 = arith.constant 0 : i32
    return %arg0, %c0_i32 : i32, i32
  }
}

module attributes {stable_mosaic.version = 11 : i64} {
  func.func @_conv_kernel(%arg0: i32, %arg1: memref<32x128xbf16, #tpu.memory_space<vmem>>, %arg2: memref<128x128xbf16, #tpu.memory_space<vmem>>, %arg3: memref<1x128xf32, #tpu.memory_space<vmem>>, %arg4: memref<32x128xbf16, #tpu.memory_space<vmem>>, %arg5: memref<1x1x128xf32, #tpu.memory_space<vmem>>, %arg6: memref<1x1x128xf32, #tpu.memory_space<vmem>>) attributes {dimension_semantics = [#tpu.dimension_semantics<parallel>], iteration_bounds = array<i64: 2>, scalar_prefetch = 0 : i64, scratch_operands = 0 : i64, tpu.core_type = #tpu.core_type<tc>, window_params = [{transform_indices = @transform_0, window_bounds = array<i64: 32, 128>}, {pipeline_mode = #tpu.pipeline_mode<synchronous>, transform_indices = @transform_1, window_bounds = array<i64: 128, 128>}, {pipeline_mode = #tpu.pipeline_mode<synchronous>, transform_indices = @transform_2, window_bounds = array<i64: 1, 128>}, {transform_indices = @transform_3, window_bounds = array<i64: 32, 128>}, {transform_indices = @transform_4, window_bounds = array<i64: 1, 1, 128>}, {transform_indices = @transform_5, window_bounds = array<i64: 1, 1, 128>}]} {
    %c0 = arith.constant 0 : index
    %c0_0 = arith.constant 0 : index
    %0 = vector.load %arg1[%c0, %c0_0] : memref<32x128xbf16, #tpu.memory_space<vmem>>, vector<32x128xbf16>
    %c0_1 = arith.constant 0 : index
    %c0_2 = arith.constant 0 : index
    %1 = vector.load %arg2[%c0_1, %c0_2] : memref<128x128xbf16, #tpu.memory_space<vmem>>, vector<128x128xbf16>
    %cst = arith.constant dense<0.000000e+00> : vector<32x128xf32>
    %2 = tpu.matmul %0, %1, %cst {dimension_numbers = #tpu.dot_dimension_numbers<[1], [0], [0], [1], [0, 0, 1, 1], [], []>} : vector<32x128xbf16>, vector<128x128xbf16>, vector<32x128xf32> -> vector<32x128xf32>
    %c0_3 = arith.constant 0 : index
    %c0_4 = arith.constant 0 : index
    %3 = vector.load %arg3[%c0_3, %c0_4] : memref<1x128xf32, #tpu.memory_space<vmem>>, vector<1x128xf32>
    %4 = vector.broadcast %3 : vector<1x128xf32> to vector<32x128xf32>
    %5 = arith.addf %2, %4 : vector<32x128xf32>
    %6 = arith.truncf %5 : vector<32x128xf32> to vector<32x128xbf16>
    %c0_5 = arith.constant 0 : index
    %c0_6 = arith.constant 0 : index
    %7 = vector.load %arg4[%c0_5, %c0_6] : memref<32x128xbf16, #tpu.memory_space<vmem>>, vector<32x128xbf16>
    tpu.vector_store %arg4[%c0_5, %c0_6], %6 {strides = array<i32>} : memref<32x128xbf16, #tpu.memory_space<vmem>>, vector<32x128xbf16>,
    %c32_i32 = arith.constant 32 : i32
    %8 = arith.muli %arg0, %c32_i32 : i32
    %c50_i32 = arith.constant 50 : i32
    %9 = arith.subi %c50_i32, %8 : i32
    %10 = tpu.iota {dimensions = array<i32: 1>} : vector<1x32xi32>
    %11 = vector.broadcast %9 : i32 to vector<1x32xi32>
    %12 = arith.cmpi slt, %10, %11 : vector<1x32xi32>
    %13 = arith.extui %12 : vector<1x32xi1> to vector<1x32xi32>
    %14 = arith.sitofp %13 : vector<1x32xi32> to vector<1x32xf32>
    %cst_7 = arith.constant dense<0.000000e+00> : vector<1x128xf32>
    %15 = tpu.matmul %14, %5, %cst_7 {dimension_numbers = #tpu.dot_dimension_numbers<[1], [0], [0], [1], [0, 0, 1, 1], [], []>} : vector<1x32xf32>, vector<32x128xf32>, vector<1x128xf32> -> vector<1x128xf32>
    %16 = vector.shape_cast %15 : vector<1x128xf32> to vector<1x1x128xf32>
    %c0_8 = arith.constant 0 : index
    %c0_9 = arith.constant 0 : index
    %c0_10 = arith.constant 0 : index
    %17 = vector.load %arg5[%c0_8, %c0_9, %c0_10] : memref<1x1x128xf32, #tpu.memory_space<vmem>>, vector<1x1x128xf32>
    tpu.vector_store %arg5[%c0_8, %c0_9, %c0_10], %16 {strides = array<i32>} : memref<1x1x128xf32, #tpu.memory_space<vmem>>, vector<1x1x128xf32>,
    %18 = arith.mulf %5, %5 : vector<32x128xf32>
    %cst_11 = arith.constant dense<0.000000e+00> : vector<1x128xf32>
    %19 = tpu.matmul %14, %18, %cst_11 {dimension_numbers = #tpu.dot_dimension_numbers<[1], [0], [0], [1], [0, 0, 1, 1], [], []>} : vector<1x32xf32>, vector<32x128xf32>, vector<1x128xf32> -> vector<1x128xf32>
    %20 = vector.shape_cast %19 : vector<1x128xf32> to vector<1x1x128xf32>
    %c0_12 = arith.constant 0 : index
    %c0_13 = arith.constant 0 : index
    %c0_14 = arith.constant 0 : index
    %21 = vector.load %arg6[%c0_12, %c0_13, %c0_14] : memref<1x1x128xf32, #tpu.memory_space<vmem>>, vector<1x1x128xf32>
    tpu.vector_store %arg6[%c0_12, %c0_13, %c0_14], %20 {strides = array<i32>} : memref<1x1x128xf32, #tpu.memory_space<vmem>>, vector<1x1x128xf32>,
    return
  }
  func.func @transform_0(%arg0: i32) -> (i32, i32) {
    %c0_i32 = arith.constant 0 : i32
    %c0_i32_0 = arith.constant 0 : i32
    return %arg0, %c0_i32 : i32, i32
  }
  func.func @transform_1(%arg0: i32) -> (i32, i32) {
    %c0_i32 = arith.constant 0 : i32
    %c0_i32_0 = arith.constant 0 : i32
    %c0_i32_1 = arith.constant 0 : i32
    return %c0_i32, %c0_i32_0 : i32, i32
  }
  func.func @transform_2(%arg0: i32) -> (i32, i32) {
    %c0_i32 = arith.constant 0 : i32
    %c0_i32_0 = arith.constant 0 : i32
    %c0_i32_1 = arith.constant 0 : i32
    return %c0_i32, %c0_i32_0 : i32, i32
  }
  func.func @transform_3(%arg0: i32) -> (i32, i32) {
    %c0_i32 = arith.constant 0 : i32
    %c0_i32_0 = arith.constant 0 : i32
    return %arg0, %c0_i32 : i32, i32
  }
  func.func @transform_4(%arg0: i32) -> (i32, i32, i32) {
    %c0_i32 = arith.constant 0 : i32
    %c0_i32_0 = arith.constant 0 : i32
    %c0_i32_1 = arith.constant 0 : i32
    return %arg0, %c0_i32, %c0_i32_0 : i32, i32, i32
  }
  func.func @transform_5(%arg0: i32) -> (i32, i32, i32) {
    %c0_i32 = arith.constant 0 : i32
    %c0_i32_0 = arith.constant 0 : i32
    %c0_i32_1 = arith.constant 0 : i32
    return %arg0, %c0_i32, %c0_i32_0 : i32, i32, i32
  }
}

module attributes {stable_mosaic.version = 11 : i64} {
  func.func @_conv_kernel(%arg0: i32, %arg1: memref<16x256xbf16, #tpu.memory_space<vmem>>, %arg2: memref<256x128xbf16, #tpu.memory_space<vmem>>, %arg3: memref<1x128xf32, #tpu.memory_space<vmem>>, %arg4: memref<1x256xf32, #tpu.memory_space<vmem>>, %arg5: memref<1x256xf32, #tpu.memory_space<vmem>>, %arg6: memref<16x128xbf16, #tpu.memory_space<vmem>>, %arg7: memref<1x1x128xf32, #tpu.memory_space<vmem>>, %arg8: memref<1x1x128xf32, #tpu.memory_space<vmem>>) attributes {dimension_semantics = [#tpu.dimension_semantics<parallel>], iteration_bounds = array<i64: 2>, scalar_prefetch = 0 : i64, scratch_operands = 0 : i64, tpu.core_type = #tpu.core_type<tc>, window_params = [{transform_indices = @transform_0, window_bounds = array<i64: 16, 256>}, {pipeline_mode = #tpu.pipeline_mode<synchronous>, transform_indices = @transform_1, window_bounds = array<i64: 256, 128>}, {pipeline_mode = #tpu.pipeline_mode<synchronous>, transform_indices = @transform_2, window_bounds = array<i64: 1, 128>}, {pipeline_mode = #tpu.pipeline_mode<synchronous>, transform_indices = @transform_3, window_bounds = array<i64: 1, 256>}, {pipeline_mode = #tpu.pipeline_mode<synchronous>, transform_indices = @transform_4, window_bounds = array<i64: 1, 256>}, {transform_indices = @transform_5, window_bounds = array<i64: 16, 128>}, {transform_indices = @transform_6, window_bounds = array<i64: 1, 1, 128>}, {transform_indices = @transform_7, window_bounds = array<i64: 1, 1, 128>}]} {
    %c0 = arith.constant 0 : index
    %c0_0 = arith.constant 0 : index
    %0 = vector.load %arg1[%c0, %c0_0] : memref<16x256xbf16, #tpu.memory_space<vmem>>, vector<16x256xbf16>
    %1 = arith.extf %0 : vector<16x256xbf16> to vector<16x256xf32>
    %c0_1 = arith.constant 0 : index
    %c0_2 = arith.constant 0 : index
    %2 = vector.load %arg4[%c0_1, %c0_2] : memref<1x256xf32, #tpu.memory_space<vmem>>, vector<1x256xf32>
    %3 = vector.broadcast %2 : vector<1x256xf32> to vector<16x256xf32>
    %4 = arith.mulf %1, %3 : vector<16x256xf32>
    %c0_3 = arith.constant 0 : index
    %c0_4 = arith.constant 0 : index
    %5 = vector.load %arg5[%c0_3, %c0_4] : memref<1x256xf32, #tpu.memory_space<vmem>>, vector<1x256xf32>
    %6 = vector.broadcast %5 : vector<1x256xf32> to vector<16x256xf32>
    %7 = arith.addf %4, %6 : vector<16x256xf32>
    %cst = arith.constant 0.000000e+00 : f32
    %8 = vector.broadcast %cst : f32 to vector<16x256xf32>
    %9 = arith.cmpf oge, %7, %8 : vector<16x256xf32>
    %cst_5 = arith.constant 2.000000e-01 : f32
    %10 = vector.broadcast %cst_5 : f32 to vector<16x256xf32>
    %11 = arith.mulf %10, %7 : vector<16x256xf32>
    %12 = arith.select %9, %7, %11 : vector<16x256xi1>, vector<16x256xf32>
    %13 = arith.truncf %12 : vector<16x256xf32> to vector<16x256xbf16>
    %c0_6 = arith.constant 0 : index
    %c0_7 = arith.constant 0 : index
    %14 = vector.load %arg2[%c0_6, %c0_7] : memref<256x128xbf16, #tpu.memory_space<vmem>>, vector<256x128xbf16>
    %cst_8 = arith.constant dense<0.000000e+00> : vector<16x128xf32>
    %15 = tpu.matmul %13, %14, %cst_8 {dimension_numbers = #tpu.dot_dimension_numbers<[1], [0], [0], [1], [0, 0, 1, 1], [], []>} : vector<16x256xbf16>, vector<256x128xbf16>, vector<16x128xf32> -> vector<16x128xf32>
    %c0_9 = arith.constant 0 : index
    %c0_10 = arith.constant 0 : index
    %16 = vector.load %arg3[%c0_9, %c0_10] : memref<1x128xf32, #tpu.memory_space<vmem>>, vector<1x128xf32>
    %17 = vector.broadcast %16 : vector<1x128xf32> to vector<16x128xf32>
    %18 = arith.addf %15, %17 : vector<16x128xf32>
    %19 = arith.truncf %18 : vector<16x128xf32> to vector<16x128xbf16>
    %c0_11 = arith.constant 0 : index
    %c0_12 = arith.constant 0 : index
    %20 = vector.load %arg6[%c0_11, %c0_12] : memref<16x128xbf16, #tpu.memory_space<vmem>>, vector<16x128xbf16>
    tpu.vector_store %arg6[%c0_11, %c0_12], %19 {strides = array<i32>} : memref<16x128xbf16, #tpu.memory_space<vmem>>, vector<16x128xbf16>,
    %c16_i32 = arith.constant 16 : i32
    %21 = arith.muli %arg0, %c16_i32 : i32
    %c18_i32 = arith.constant 18 : i32
    %22 = arith.subi %c18_i32, %21 : i32
    %23 = tpu.iota {dimensions = array<i32: 1>} : vector<1x16xi32>
    %24 = vector.broadcast %22 : i32 to vector<1x16xi32>
    %25 = arith.cmpi slt, %23, %24 : vector<1x16xi32>
    %26 = arith.extui %25 : vector<1x16xi1> to vector<1x16xi32>
    %27 = arith.sitofp %26 : vector<1x16xi32> to vector<1x16xf32>
    %cst_13 = arith.constant dense<0.000000e+00> : vector<1x128xf32>
    %28 = tpu.matmul %27, %18, %cst_13 {dimension_numbers = #tpu.dot_dimension_numbers<[1], [0], [0], [1], [0, 0, 1, 1], [], []>} : vector<1x16xf32>, vector<16x128xf32>, vector<1x128xf32> -> vector<1x128xf32>
    %29 = vector.shape_cast %28 : vector<1x128xf32> to vector<1x1x128xf32>
    %c0_14 = arith.constant 0 : index
    %c0_15 = arith.constant 0 : index
    %c0_16 = arith.constant 0 : index
    %30 = vector.load %arg7[%c0_14, %c0_15, %c0_16] : memref<1x1x128xf32, #tpu.memory_space<vmem>>, vector<1x1x128xf32>
    tpu.vector_store %arg7[%c0_14, %c0_15, %c0_16], %29 {strides = array<i32>} : memref<1x1x128xf32, #tpu.memory_space<vmem>>, vector<1x1x128xf32>,
    %31 = arith.mulf %18, %18 : vector<16x128xf32>
    %cst_17 = arith.constant dense<0.000000e+00> : vector<1x128xf32>
    %32 = tpu.matmul %27, %31, %cst_17 {dimension_numbers = #tpu.dot_dimension_numbers<[1], [0], [0], [1], [0, 0, 1, 1], [], []>} : vector<1x16xf32>, vector<16x128xf32>, vector<1x128xf32> -> vector<1x128xf32>
    %33 = vector.shape_cast %32 : vector<1x128xf32> to vector<1x1x128xf32>
    %c0_18 = arith.constant 0 : index
    %c0_19 = arith.constant 0 : index
    %c0_20 = arith.constant 0 : index
    %34 = vector.load %arg8[%c0_18, %c0_19, %c0_20] : memref<1x1x128xf32, #tpu.memory_space<vmem>>, vector<1x1x128xf32>
    tpu.vector_store %arg8[%c0_18, %c0_19, %c0_20], %33 {strides = array<i32>} : memref<1x1x128xf32, #tpu.memory_space<vmem>>, vector<1x1x128xf32>,
    return
  }
  func.func @transform_0(%arg0: i32) -> (i32, i32) {
    %c0_i32 = arith.constant 0 : i32
    %c0_i32_0 = arith.constant 0 : i32
    return %arg0, %c0_i32 : i32, i32
  }
  func.func @transform_1(%arg0: i32) -> (i32, i32) {
    %c0_i32 = arith.constant 0 : i32
    %c0_i32_0 = arith.constant 0 : i32
    %c0_i32_1 = arith.constant 0 : i32
    return %c0_i32, %c0_i32_0 : i32, i32
  }
  func.func @transform_2(%arg0: i32) -> (i32, i32) {
    %c0_i32 = arith.constant 0 : i32
    %c0_i32_0 = arith.constant 0 : i32
    %c0_i32_1 = arith.constant 0 : i32
    return %c0_i32, %c0_i32_0 : i32, i32
  }
  func.func @transform_3(%arg0: i32) -> (i32, i32) {
    %c0_i32 = arith.constant 0 : i32
    %c0_i32_0 = arith.constant 0 : i32
    %c0_i32_1 = arith.constant 0 : i32
    return %c0_i32, %c0_i32_0 : i32, i32
  }
  func.func @transform_4(%arg0: i32) -> (i32, i32) {
    %c0_i32 = arith.constant 0 : i32
    %c0_i32_0 = arith.constant 0 : i32
    %c0_i32_1 = arith.constant 0 : i32
    return %c0_i32, %c0_i32_0 : i32, i32
  }
  func.func @transform_5(%arg0: i32) -> (i32, i32) {
    %c0_i32 = arith.constant 0 : i32
    %c0_i32_0 = arith.constant 0 : i32
    return %arg0, %c0_i32 : i32, i32
  }
  func.func @transform_6(%arg0: i32) -> (i32, i32, i32) {
    %c0_i32 = arith.constant 0 : i32
    %c0_i32_0 = arith.constant 0 : i32
    %c0_i32_1 = arith.constant 0 : i32
    return %arg0, %c0_i32, %c0_i32_0 : i32, i32, i32
  }
  func.func @transform_7(%arg0: i32) -> (i32, i32, i32) {
    %c0_i32 = arith.constant 0 : i32
    %c0_i32_0 = arith.constant 0 : i32
    %c0_i32_1 = arith.constant 0 : i32
    return %arg0, %c0_i32, %c0_i32_0 : i32, i32, i32
  }
}

module attributes {stable_mosaic.version = 11 : i64} {
  func.func @_conv_kernel(%arg0: i32, %arg1: memref<8x512xbf16, #tpu.memory_space<vmem>>, %arg2: memref<512x128xbf16, #tpu.memory_space<vmem>>, %arg3: memref<1x128xf32, #tpu.memory_space<vmem>>, %arg4: memref<1x512xf32, #tpu.memory_space<vmem>>, %arg5: memref<1x512xf32, #tpu.memory_space<vmem>>, %arg6: memref<8x128xbf16, #tpu.memory_space<vmem>>, %arg7: memref<1x1x128xf32, #tpu.memory_space<vmem>>, %arg8: memref<1x1x128xf32, #tpu.memory_space<vmem>>) attributes {dimension_semantics = [#tpu.dimension_semantics<parallel>], iteration_bounds = array<i64: 1>, scalar_prefetch = 0 : i64, scratch_operands = 0 : i64, tpu.core_type = #tpu.core_type<tc>, window_params = [{transform_indices = @transform_0, window_bounds = array<i64: 8, 512>}, {pipeline_mode = #tpu.pipeline_mode<synchronous>, transform_indices = @transform_1, window_bounds = array<i64: 512, 128>}, {pipeline_mode = #tpu.pipeline_mode<synchronous>, transform_indices = @transform_2, window_bounds = array<i64: 1, 128>}, {pipeline_mode = #tpu.pipeline_mode<synchronous>, transform_indices = @transform_3, window_bounds = array<i64: 1, 512>}, {pipeline_mode = #tpu.pipeline_mode<synchronous>, transform_indices = @transform_4, window_bounds = array<i64: 1, 512>}, {transform_indices = @transform_5, window_bounds = array<i64: 8, 128>}, {transform_indices = @transform_6, window_bounds = array<i64: 1, 1, 128>}, {transform_indices = @transform_7, window_bounds = array<i64: 1, 1, 128>}]} {
    %c0 = arith.constant 0 : index
    %c0_0 = arith.constant 0 : index
    %0 = vector.load %arg1[%c0, %c0_0] : memref<8x512xbf16, #tpu.memory_space<vmem>>, vector<8x512xbf16>
    %1 = arith.extf %0 : vector<8x512xbf16> to vector<8x512xf32>
    %c0_1 = arith.constant 0 : index
    %c0_2 = arith.constant 0 : index
    %2 = vector.load %arg4[%c0_1, %c0_2] : memref<1x512xf32, #tpu.memory_space<vmem>>, vector<1x512xf32>
    %3 = vector.broadcast %2 : vector<1x512xf32> to vector<8x512xf32>
    %4 = arith.mulf %1, %3 : vector<8x512xf32>
    %c0_3 = arith.constant 0 : index
    %c0_4 = arith.constant 0 : index
    %5 = vector.load %arg5[%c0_3, %c0_4] : memref<1x512xf32, #tpu.memory_space<vmem>>, vector<1x512xf32>
    %6 = vector.broadcast %5 : vector<1x512xf32> to vector<8x512xf32>
    %7 = arith.addf %4, %6 : vector<8x512xf32>
    %cst = arith.constant 0.000000e+00 : f32
    %8 = vector.broadcast %cst : f32 to vector<8x512xf32>
    %9 = arith.cmpf oge, %7, %8 : vector<8x512xf32>
    %cst_5 = arith.constant 2.000000e-01 : f32
    %10 = vector.broadcast %cst_5 : f32 to vector<8x512xf32>
    %11 = arith.mulf %10, %7 : vector<8x512xf32>
    %12 = arith.select %9, %7, %11 : vector<8x512xi1>, vector<8x512xf32>
    %13 = arith.truncf %12 : vector<8x512xf32> to vector<8x512xbf16>
    %c0_6 = arith.constant 0 : index
    %c0_7 = arith.constant 0 : index
    %14 = vector.load %arg2[%c0_6, %c0_7] : memref<512x128xbf16, #tpu.memory_space<vmem>>, vector<512x128xbf16>
    %cst_8 = arith.constant dense<0.000000e+00> : vector<8x128xf32>
    %15 = tpu.matmul %13, %14, %cst_8 {dimension_numbers = #tpu.dot_dimension_numbers<[1], [0], [0], [1], [0, 0, 1, 1], [], []>} : vector<8x512xbf16>, vector<512x128xbf16>, vector<8x128xf32> -> vector<8x128xf32>
    %c0_9 = arith.constant 0 : index
    %c0_10 = arith.constant 0 : index
    %16 = vector.load %arg3[%c0_9, %c0_10] : memref<1x128xf32, #tpu.memory_space<vmem>>, vector<1x128xf32>
    %17 = vector.broadcast %16 : vector<1x128xf32> to vector<8x128xf32>
    %18 = arith.addf %15, %17 : vector<8x128xf32>
    %19 = arith.truncf %18 : vector<8x128xf32> to vector<8x128xbf16>
    %c0_11 = arith.constant 0 : index
    %c0_12 = arith.constant 0 : index
    %20 = vector.load %arg6[%c0_11, %c0_12] : memref<8x128xbf16, #tpu.memory_space<vmem>>, vector<8x128xbf16>
    tpu.vector_store %arg6[%c0_11, %c0_12], %19 {strides = array<i32>} : memref<8x128xbf16, #tpu.memory_space<vmem>>, vector<8x128xbf16>,
    %c8_i32 = arith.constant 8 : i32
    %21 = arith.muli %arg0, %c8_i32 : i32
    %c8_i32_13 = arith.constant 8 : i32
    %22 = arith.subi %c8_i32_13, %21 : i32
    %23 = tpu.iota {dimensions = array<i32: 1>} : vector<1x8xi32>
    %24 = vector.broadcast %22 : i32 to vector<1x8xi32>
    %25 = arith.cmpi slt, %23, %24 : vector<1x8xi32>
    %26 = arith.extui %25 : vector<1x8xi1> to vector<1x8xi32>
    %27 = arith.sitofp %26 : vector<1x8xi32> to vector<1x8xf32>
    %cst_14 = arith.constant dense<0.000000e+00> : vector<1x128xf32>
    %28 = tpu.matmul %27, %18, %cst_14 {dimension_numbers = #tpu.dot_dimension_numbers<[1], [0], [0], [1], [0, 0, 1, 1], [], []>} : vector<1x8xf32>, vector<8x128xf32>, vector<1x128xf32> -> vector<1x128xf32>
    %29 = vector.shape_cast %28 : vector<1x128xf32> to vector<1x1x128xf32>
    %c0_15 = arith.constant 0 : index
    %c0_16 = arith.constant 0 : index
    %c0_17 = arith.constant 0 : index
    %30 = vector.load %arg7[%c0_15, %c0_16, %c0_17] : memref<1x1x128xf32, #tpu.memory_space<vmem>>, vector<1x1x128xf32>
    tpu.vector_store %arg7[%c0_15, %c0_16, %c0_17], %29 {strides = array<i32>} : memref<1x1x128xf32, #tpu.memory_space<vmem>>, vector<1x1x128xf32>,
    %31 = arith.mulf %18, %18 : vector<8x128xf32>
    %cst_18 = arith.constant dense<0.000000e+00> : vector<1x128xf32>
    %32 = tpu.matmul %27, %31, %cst_18 {dimension_numbers = #tpu.dot_dimension_numbers<[1], [0], [0], [1], [0, 0, 1, 1], [], []>} : vector<1x8xf32>, vector<8x128xf32>, vector<1x128xf32> -> vector<1x128xf32>
    %33 = vector.shape_cast %32 : vector<1x128xf32> to vector<1x1x128xf32>
    %c0_19 = arith.constant 0 : index
    %c0_20 = arith.constant 0 : index
    %c0_21 = arith.constant 0 : index
    %34 = vector.load %arg8[%c0_19, %c0_20, %c0_21] : memref<1x1x128xf32, #tpu.memory_space<vmem>>, vector<1x1x128xf32>
    tpu.vector_store %arg8[%c0_19, %c0_20, %c0_21], %33 {strides = array<i32>} : memref<1x1x128xf32, #tpu.memory_space<vmem>>, vector<1x1x128xf32>,
    return
  }
  func.func @transform_0(%arg0: i32) -> (i32, i32) {
    %c0_i32 = arith.constant 0 : i32
    %c0_i32_0 = arith.constant 0 : i32
    return %arg0, %c0_i32 : i32, i32
  }
  func.func @transform_1(%arg0: i32) -> (i32, i32) {
    %c0_i32 = arith.constant 0 : i32
    %c0_i32_0 = arith.constant 0 : i32
    %c0_i32_1 = arith.constant 0 : i32
    return %c0_i32, %c0_i32_0 : i32, i32
  }
  func.func @transform_2(%arg0: i32) -> (i32, i32) {
    %c0_i32 = arith.constant 0 : i32
    %c0_i32_0 = arith.constant 0 : i32
    %c0_i32_1 = arith.constant 0 : i32
    return %c0_i32, %c0_i32_0 : i32, i32
  }
  func.func @transform_3(%arg0: i32) -> (i32, i32) {
    %c0_i32 = arith.constant 0 : i32
    %c0_i32_0 = arith.constant 0 : i32
    %c0_i32_1 = arith.constant 0 : i32
    return %c0_i32, %c0_i32_0 : i32, i32
  }
  func.func @transform_4(%arg0: i32) -> (i32, i32) {
    %c0_i32 = arith.constant 0 : i32
    %c0_i32_0 = arith.constant 0 : i32
    %c0_i32_1 = arith.constant 0 : i32
    return %c0_i32, %c0_i32_0 : i32, i32
  }
  func.func @transform_5(%arg0: i32) -> (i32, i32) {
    %c0_i32 = arith.constant 0 : i32
    %c0_i32_0 = arith.constant 0 : i32
    return %arg0, %c0_i32 : i32, i32
  }
  func.func @transform_6(%arg0: i32) -> (i32, i32, i32) {
    %c0_i32 = arith.constant 0 : i32
    %c0_i32_0 = arith.constant 0 : i32
    %c0_i32_1 = arith.constant 0 : i32
    return %arg0, %c0_i32, %c0_i32_0 : i32, i32, i32
  }
  func.func @transform_7(%arg0: i32) -> (i32, i32, i32) {
    %c0_i32 = arith.constant 0 : i32
    %c0_i32_0 = arith.constant 0 : i32
    %c0_i32_1 = arith.constant 0 : i32
    return %arg0, %c0_i32, %c0_i32_0 : i32, i32, i32
  }
}

module attributes {stable_mosaic.version = 11 : i64} {
  func.func @_conv_kernel(%arg0: i32, %arg1: memref<16x1024xbf16, #tpu.memory_space<vmem>>, %arg2: memref<1024x128xbf16, #tpu.memory_space<vmem>>, %arg3: memref<1x128xf32, #tpu.memory_space<vmem>>, %arg4: memref<1x1024xf32, #tpu.memory_space<vmem>>, %arg5: memref<1x1024xf32, #tpu.memory_space<vmem>>, %arg6: memref<16x128xf32, #tpu.memory_space<vmem>>) attributes {dimension_semantics = [#tpu.dimension_semantics<parallel>], iteration_bounds = array<i64: 2>, scalar_prefetch = 0 : i64, scratch_operands = 0 : i64, tpu.core_type = #tpu.core_type<tc>, window_params = [{transform_indices = @transform_0, window_bounds = array<i64: 16, 1024>}, {pipeline_mode = #tpu.pipeline_mode<synchronous>, transform_indices = @transform_1, window_bounds = array<i64: 1024, 128>}, {pipeline_mode = #tpu.pipeline_mode<synchronous>, transform_indices = @transform_2, window_bounds = array<i64: 1, 128>}, {pipeline_mode = #tpu.pipeline_mode<synchronous>, transform_indices = @transform_3, window_bounds = array<i64: 1, 1024>}, {pipeline_mode = #tpu.pipeline_mode<synchronous>, transform_indices = @transform_4, window_bounds = array<i64: 1, 1024>}, {transform_indices = @transform_5, window_bounds = array<i64: 16, 128>}]} {
    %c0 = arith.constant 0 : index
    %c0_0 = arith.constant 0 : index
    %0 = vector.load %arg1[%c0, %c0_0] : memref<16x1024xbf16, #tpu.memory_space<vmem>>, vector<16x1024xbf16>
    %1 = arith.extf %0 : vector<16x1024xbf16> to vector<16x1024xf32>
    %c0_1 = arith.constant 0 : index
    %c0_2 = arith.constant 0 : index
    %2 = vector.load %arg4[%c0_1, %c0_2] : memref<1x1024xf32, #tpu.memory_space<vmem>>, vector<1x1024xf32>
    %3 = vector.broadcast %2 : vector<1x1024xf32> to vector<16x1024xf32>
    %4 = arith.mulf %1, %3 : vector<16x1024xf32>
    %c0_3 = arith.constant 0 : index
    %c0_4 = arith.constant 0 : index
    %5 = vector.load %arg5[%c0_3, %c0_4] : memref<1x1024xf32, #tpu.memory_space<vmem>>, vector<1x1024xf32>
    %6 = vector.broadcast %5 : vector<1x1024xf32> to vector<16x1024xf32>
    %7 = arith.addf %4, %6 : vector<16x1024xf32>
    %cst = arith.constant 0.000000e+00 : f32
    %8 = vector.broadcast %cst : f32 to vector<16x1024xf32>
    %9 = arith.cmpf oge, %7, %8 : vector<16x1024xf32>
    %cst_5 = arith.constant 2.000000e-01 : f32
    %10 = vector.broadcast %cst_5 : f32 to vector<16x1024xf32>
    %11 = arith.mulf %10, %7 : vector<16x1024xf32>
    %12 = arith.select %9, %7, %11 : vector<16x1024xi1>, vector<16x1024xf32>
    %13 = arith.truncf %12 : vector<16x1024xf32> to vector<16x1024xbf16>
    %c0_6 = arith.constant 0 : index
    %c0_7 = arith.constant 0 : index
    %14 = vector.load %arg2[%c0_6, %c0_7] : memref<1024x128xbf16, #tpu.memory_space<vmem>>, vector<1024x128xbf16>
    %cst_8 = arith.constant dense<0.000000e+00> : vector<16x128xf32>
    %15 = tpu.matmul %13, %14, %cst_8 {dimension_numbers = #tpu.dot_dimension_numbers<[1], [0], [0], [1], [0, 0, 1, 1], [], []>} : vector<16x1024xbf16>, vector<1024x128xbf16>, vector<16x128xf32> -> vector<16x128xf32>
    %c0_9 = arith.constant 0 : index
    %c0_10 = arith.constant 0 : index
    %16 = vector.load %arg3[%c0_9, %c0_10] : memref<1x128xf32, #tpu.memory_space<vmem>>, vector<1x128xf32>
    %17 = vector.broadcast %16 : vector<1x128xf32> to vector<16x128xf32>
    %18 = arith.addf %15, %17 : vector<16x128xf32>
    %c0_11 = arith.constant 0 : index
    %c0_12 = arith.constant 0 : index
    %19 = vector.load %arg6[%c0_11, %c0_12] : memref<16x128xf32, #tpu.memory_space<vmem>>, vector<16x128xf32>
    tpu.vector_store %arg6[%c0_11, %c0_12], %18 {strides = array<i32>} : memref<16x128xf32, #tpu.memory_space<vmem>>, vector<16x128xf32>,
    return
  }
  func.func @transform_0(%arg0: i32) -> (i32, i32) {
    %c0_i32 = arith.constant 0 : i32
    %c0_i32_0 = arith.constant 0 : i32
    return %arg0, %c0_i32 : i32, i32
  }
  func.func @transform_1(%arg0: i32) -> (i32, i32) {
    %c0_i32 = arith.constant 0 : i32
    %c0_i32_0 = arith.constant 0 : i32
    %c0_i32_1 = arith.constant 0 : i32
    return %c0_i32, %c0_i32_0 : i32, i32
  }
  func.func @transform_2(%arg0: i32) -> (i32, i32) {
    %c0_i32 = arith.constant 0 : i32
    %c0_i32_0 = arith.constant 0 : i32
    %c0_i32_1 = arith.constant 0 : i32
    return %c0_i32, %c0_i32_0 : i32, i32
  }
  func.func @transform_3(%arg0: i32) -> (i32, i32) {
    %c0_i32 = arith.constant 0 : i32
    %c0_i32_0 = arith.constant 0 : i32
    %c0_i32_1 = arith.constant 0 : i32
    return %c0_i32, %c0_i32_0 : i32, i32
  }
  func.func @transform_4(%arg0: i32) -> (i32, i32) {
    %c0_i32 = arith.constant 0 : i32
    %c0_i32_0 = arith.constant 0 : i32
    %c0_i32_1 = arith.constant 0 : i32
    return %c0_i32, %c0_i32_0 : i32, i32
  }
  func.func @transform_5(%arg0: i32) -> (i32, i32) {
    %c0_i32 = arith.constant 0 : i32
    %c0_i32_0 = arith.constant 0 : i32
    return %arg0, %c0_i32 : i32, i32
  }
}

module attributes {stable_mosaic.version = 11 : i64} {
  func.func @_conv_kernel(%arg0: i32, %arg1: memref<8x1024xbf16, #tpu.memory_space<vmem>>, %arg2: memref<1024x128xbf16, #tpu.memory_space<vmem>>, %arg3: memref<1x128xf32, #tpu.memory_space<vmem>>, %arg4: memref<1x1024xf32, #tpu.memory_space<vmem>>, %arg5: memref<1x1024xf32, #tpu.memory_space<vmem>>, %arg6: memref<8x128xbf16, #tpu.memory_space<vmem>>, %arg7: memref<1x1x128xf32, #tpu.memory_space<vmem>>, %arg8: memref<1x1x128xf32, #tpu.memory_space<vmem>>) attributes {dimension_semantics = [#tpu.dimension_semantics<parallel>], iteration_bounds = array<i64: 1>, scalar_prefetch = 0 : i64, scratch_operands = 0 : i64, tpu.core_type = #tpu.core_type<tc>, window_params = [{transform_indices = @transform_0, window_bounds = array<i64: 8, 1024>}, {pipeline_mode = #tpu.pipeline_mode<synchronous>, transform_indices = @transform_1, window_bounds = array<i64: 1024, 128>}, {pipeline_mode = #tpu.pipeline_mode<synchronous>, transform_indices = @transform_2, window_bounds = array<i64: 1, 128>}, {pipeline_mode = #tpu.pipeline_mode<synchronous>, transform_indices = @transform_3, window_bounds = array<i64: 1, 1024>}, {pipeline_mode = #tpu.pipeline_mode<synchronous>, transform_indices = @transform_4, window_bounds = array<i64: 1, 1024>}, {transform_indices = @transform_5, window_bounds = array<i64: 8, 128>}, {transform_indices = @transform_6, window_bounds = array<i64: 1, 1, 128>}, {transform_indices = @transform_7, window_bounds = array<i64: 1, 1, 128>}]} {
    %c0 = arith.constant 0 : index
    %c0_0 = arith.constant 0 : index
    %0 = vector.load %arg1[%c0, %c0_0] : memref<8x1024xbf16, #tpu.memory_space<vmem>>, vector<8x1024xbf16>
    %1 = arith.extf %0 : vector<8x1024xbf16> to vector<8x1024xf32>
    %c0_1 = arith.constant 0 : index
    %c0_2 = arith.constant 0 : index
    %2 = vector.load %arg4[%c0_1, %c0_2] : memref<1x1024xf32, #tpu.memory_space<vmem>>, vector<1x1024xf32>
    %3 = vector.broadcast %2 : vector<1x1024xf32> to vector<8x1024xf32>
    %4 = arith.mulf %1, %3 : vector<8x1024xf32>
    %c0_3 = arith.constant 0 : index
    %c0_4 = arith.constant 0 : index
    %5 = vector.load %arg5[%c0_3, %c0_4] : memref<1x1024xf32, #tpu.memory_space<vmem>>, vector<1x1024xf32>
    %6 = vector.broadcast %5 : vector<1x1024xf32> to vector<8x1024xf32>
    %7 = arith.addf %4, %6 : vector<8x1024xf32>
    %cst = arith.constant 0.000000e+00 : f32
    %8 = vector.broadcast %cst : f32 to vector<8x1024xf32>
    %9 = arith.cmpf oge, %7, %8 : vector<8x1024xf32>
    %cst_5 = arith.constant 2.000000e-01 : f32
    %10 = vector.broadcast %cst_5 : f32 to vector<8x1024xf32>
    %11 = arith.mulf %10, %7 : vector<8x1024xf32>
    %12 = arith.select %9, %7, %11 : vector<8x1024xi1>, vector<8x1024xf32>
    %13 = arith.truncf %12 : vector<8x1024xf32> to vector<8x1024xbf16>
    %c0_6 = arith.constant 0 : index
    %c0_7 = arith.constant 0 : index
    %14 = vector.load %arg2[%c0_6, %c0_7] : memref<1024x128xbf16, #tpu.memory_space<vmem>>, vector<1024x128xbf16>
    %cst_8 = arith.constant dense<0.000000e+00> : vector<8x128xf32>
    %15 = tpu.matmul %13, %14, %cst_8 {dimension_numbers = #tpu.dot_dimension_numbers<[1], [0], [0], [1], [0, 0, 1, 1], [], []>} : vector<8x1024xbf16>, vector<1024x128xbf16>, vector<8x128xf32> -> vector<8x128xf32>
    %c0_9 = arith.constant 0 : index
    %c0_10 = arith.constant 0 : index
    %16 = vector.load %arg3[%c0_9, %c0_10] : memref<1x128xf32, #tpu.memory_space<vmem>>, vector<1x128xf32>
    %17 = vector.broadcast %16 : vector<1x128xf32> to vector<8x128xf32>
    %18 = arith.addf %15, %17 : vector<8x128xf32>
    %19 = arith.truncf %18 : vector<8x128xf32> to vector<8x128xbf16>
    %c0_11 = arith.constant 0 : index
    %c0_12 = arith.constant 0 : index
    %20 = vector.load %arg6[%c0_11, %c0_12] : memref<8x128xbf16, #tpu.memory_space<vmem>>, vector<8x128xbf16>
    tpu.vector_store %arg6[%c0_11, %c0_12], %19 {strides = array<i32>} : memref<8x128xbf16, #tpu.memory_space<vmem>>, vector<8x128xbf16>,
    %c8_i32 = arith.constant 8 : i32
    %21 = arith.muli %arg0, %c8_i32 : i32
    %c8_i32_13 = arith.constant 8 : i32
    %22 = arith.subi %c8_i32_13, %21 : i32
    %23 = tpu.iota {dimensions = array<i32: 1>} : vector<1x8xi32>
    %24 = vector.broadcast %22 : i32 to vector<1x8xi32>
    %25 = arith.cmpi slt, %23, %24 : vector<1x8xi32>
    %26 = arith.extui %25 : vector<1x8xi1> to vector<1x8xi32>
    %27 = arith.sitofp %26 : vector<1x8xi32> to vector<1x8xf32>
    %cst_14 = arith.constant dense<0.000000e+00> : vector<1x128xf32>
    %28 = tpu.matmul %27, %18, %cst_14 {dimension_numbers = #tpu.dot_dimension_numbers<[1], [0], [0], [1], [0, 0, 1, 1], [], []>} : vector<1x8xf32>, vector<8x128xf32>, vector<1x128xf32> -> vector<1x128xf32>
    %29 = vector.shape_cast %28 : vector<1x128xf32> to vector<1x1x128xf32>
    %c0_15 = arith.constant 0 : index
    %c0_16 = arith.constant 0 : index
    %c0_17 = arith.constant 0 : index
    %30 = vector.load %arg7[%c0_15, %c0_16, %c0_17] : memref<1x1x128xf32, #tpu.memory_space<vmem>>, vector<1x1x128xf32>
    tpu.vector_store %arg7[%c0_15, %c0_16, %c0_17], %29 {strides = array<i32>} : memref<1x1x128xf32, #tpu.memory_space<vmem>>, vector<1x1x128xf32>,
    %31 = arith.mulf %18, %18 : vector<8x128xf32>
    %cst_18 = arith.constant dense<0.000000e+00> : vector<1x128xf32>
    %32 = tpu.matmul %27, %31, %cst_18 {dimension_numbers = #tpu.dot_dimension_numbers<[1], [0], [0], [1], [0, 0, 1, 1], [], []>} : vector<1x8xf32>, vector<8x128xf32>, vector<1x128xf32> -> vector<1x128xf32>
    %33 = vector.shape_cast %32 : vector<1x128xf32> to vector<1x1x128xf32>
    %c0_19 = arith.constant 0 : index
    %c0_20 = arith.constant 0 : index
    %c0_21 = arith.constant 0 : index
    %34 = vector.load %arg8[%c0_19, %c0_20, %c0_21] : memref<1x1x128xf32, #tpu.memory_space<vmem>>, vector<1x1x128xf32>
    tpu.vector_store %arg8[%c0_19, %c0_20, %c0_21], %33 {strides = array<i32>} : memref<1x1x128xf32, #tpu.memory_space<vmem>>, vector<1x1x128xf32>,
    return
  }
  func.func @transform_0(%arg0: i32) -> (i32, i32) {
    %c0_i32 = arith.constant 0 : i32
    %c0_i32_0 = arith.constant 0 : i32
    return %arg0, %c0_i32 : i32, i32
  }
  func.func @transform_1(%arg0: i32) -> (i32, i32) {
    %c0_i32 = arith.constant 0 : i32
    %c0_i32_0 = arith.constant 0 : i32
    %c0_i32_1 = arith.constant 0 : i32
    return %c0_i32, %c0_i32_0 : i32, i32
  }
  func.func @transform_2(%arg0: i32) -> (i32, i32) {
    %c0_i32 = arith.constant 0 : i32
    %c0_i32_0 = arith.constant 0 : i32
    %c0_i32_1 = arith.constant 0 : i32
    return %c0_i32, %c0_i32_0 : i32, i32
  }
  func.func @transform_3(%arg0: i32) -> (i32, i32) {
    %c0_i32 = arith.constant 0 : i32
    %c0_i32_0 = arith.constant 0 : i32
    %c0_i32_1 = arith.constant 0 : i32
    return %c0_i32, %c0_i32_0 : i32, i32
  }
  func.func @transform_4(%arg0: i32) -> (i32, i32) {
    %c0_i32 = arith.constant 0 : i32
    %c0_i32_0 = arith.constant 0 : i32
    %c0_i32_1 = arith.constant 0 : i32
    return %c0_i32, %c0_i32_0 : i32, i32
  }
  func.func @transform_5(%arg0: i32) -> (i32, i32) {
    %c0_i32 = arith.constant 0 : i32
    %c0_i32_0 = arith.constant 0 : i32
    return %arg0, %c0_i32 : i32, i32
  }
  func.func @transform_6(%arg0: i32) -> (i32, i32, i32) {
    %c0_i32 = arith.constant 0 : i32
    %c0_i32_0 = arith.constant 0 : i32
    %c0_i32_1 = arith.constant 0 : i32
    return %arg0, %c0_i32, %c0_i32_0 : i32, i32, i32
  }
  func.func @transform_7(%arg0: i32) -> (i32, i32, i32) {
    %c0_i32 = arith.constant 0 : i32
    %c0_i32_0 = arith.constant 0 : i32
    %c0_i32_1 = arith.constant 0 : i32
    return %arg0, %c0_i32, %c0_i32_0 : i32, i32, i32
  }
}

</mosaic_0001>

<bundles_post_ra>
// kernel: _lambda_.6
= control target key start
LH: loop header
LB: loop body
LE: loop exit
PB: predicated region body
PF: predicated region fallthrough
CT: control target
= control target key end

     0   :  { %s1072_s12 = smov 0   ;;  %s1074_s13 = smov 0   ;;  %s1212_s0 = inlined_call_operand.vmem [shape: bf16[176,128], index: 0, kind: input, shape index: {}]   ;;  %s1213_s1 = inlined_call_operand.vmem [shape: bf16[128,128], index: 1, kind: input, shape index: {}]   ;;  %s1214_s2 = inlined_call_operand.vmem [shape: f32[1,128], index: 2, kind: input, shape index: {}]   ;;  %s1215_s3 = inlined_call_operand.vmem [shape: bf16[162,128], index: 3, kind: output, shape index: {}]  }
   0x1   :  { %s1076_s14 = smov 0  }
   0x2 LB: > { %s1085_s15 = sadd.s32 4294967295, %s1018_s14   ;;  %s1087_s16 = sadd.s32 1, %s1018_s14   ;;  %s1018_s14 = sphi %s1076_s14, %s1222_s14   ;;  %s1014_s13 = sphi %s1074_s13, %s1221_s13   ;;  %s1010_s12 = sphi %s1072_s12, %s1220_s12  }
   0x3   : > { %s85_s17 = ssub.s32 %s1018_s14, %s1087_s16  ;;  %s88_s18 = sadd.s32 1, %s1014_s13 }
   0x4   : > { %p86_p0 = scmp.eq.s32.totalorder %s85_s17, 0  ;;  %p98_p1 = scmp.ne.s32.totalorder %s1014_s13, %s1010_s12 }
   0x5   : > { %p99_p2 = scmp.eq.s32.totalorder %s1085_s15, 1  ;;  %p717_p3 = scmp.ge.s32.totalorder %s1018_s14, 1 }
   0x6   : > { %s1095_s19 = scalar_select %p86_p0, %s1014_s13, %s88_s18  }
   0x7   : > { %p1097_p4 = por %p99_p2, %p98_p1  ;;  %p138_p5 = scmp.lt.s32.totalorder %s1018_s14, 3 }
   0x9   : > { %p139_p6 = pnand %p717_p3, %p138_p5 }
   0xa   : > { %v946_v0 = vld [vmem:[%s1213_s1] sm:$0xff] (!%p139_p6)   ;;  %s1105_s23 = smul.u32 (!%p139_p6), 11, %s1085_s15  ;;  %v947_v1 = vld [vmem:[%s1213_s1 + $0x8] sm:$0xff] (!%p139_p6)   ;;  %v948_v2 = vld [vmem:[%s1213_s1 + $0x10] sm:$0xff] (!%p139_p6)   ;;  %s158_s25 = sand.u32 (!%p139_p6), 1, %s1010_s12  }
   0xb   : > { %142 = sbr.rel (%p139_p6) target bundleno = 344 (0x158), region = 32  ;;  %840 = vmatprep.subr.bf16.mxu1 (!%p139_p6), %v946_v0  ;;  %812 = vmatprep.subr.bf16.mxu0 (!%p139_p6), %v946_v0  ;;  %v949_v3 = vld [vmem:[%s1213_s1 + $0x18] sm:$0xff] (!%p139_p6)   ;;  %v950_v6 = vld [vmem:[%s1213_s1 + $0x20] sm:$0xff] (!%p139_p6)   ;;  %v951_v7 = vld [vmem:[%s1213_s1 + $0x28] sm:$0xff] (!%p139_p6)  }
   0xc   : > { %p162_p7 = scmp.lt.s32.totalorder (!%p139_p6), %s1105_s23, 21  ;;  %848 = vmatpush3.bf16.msra.mxu1 (!%p139_p6), %v946_v0  ;;  %813 = vmatpush3.bf16.msra.mxu0 (!%p139_p6), %v946_v0  ;;  %v952_v8 = vld [vmem:[%s1213_s1 + $0x30] sm:$0xff] (!%p139_p6)   ;;  %v953_v9 = vld [vmem:[%s1213_s1 + $0x38] sm:$0xff] (!%p139_p6)   ;;  %v719_v14 = vld [vmem:[%s1214_s2] ss:$0 sm:$0xff] (!%p139_p6)  ;;  %s856_s26 = smul.u32 (!%p139_p6), 44, %s158_s25 }
   0xd   : > { %841 = vmatprep.subr.bf16.mxu1 (!%p139_p6), %v947_v1  ;;  %814 = vmatprep.subr.bf16.mxu0 (!%p139_p6), %v947_v1 }
   0xe   : > { %s1145_s12 = scalar_lea.vmem (!%p139_p6), [#allocation2], %s856_s26  }
  0x10   : > { %849 = vmatpush3.bf16.msra.mxu1 (!%p139_p6), %v947_v1  ;;  %815 = vmatpush3.bf16.msra.mxu0 (!%p139_p6), %v947_v1 }
  0x11   : > { %842 = vmatprep.subr.bf16.mxu1 (!%p139_p6), %v948_v2  ;;  %816 = vmatprep.subr.bf16.mxu0 (!%p139_p6), %v948_v2 }
  0x12   : > { %s163_s28 = scalar_select %p162_p7, %s1105_s23, 21 }
  0x13   : > { %s466_s27 = ssub.s32 (%p1097_p4), 21, %s1105_s23 }
  0x14   : > { %s718_s29 = sshll.u32 %s163_s28, 2  ;;  %850 = vmatpush3.bf16.msra.mxu1 %v948_v2  ;;  %817 = vmatpush3.bf16.msra.mxu0 %v948_v2  ;;  %s768_s28 = smul.u32 (%p1097_p4), 44, %s1085_s15 }
  0x15   : > { %s1121_s7 = scalar_lea.vmem %s1212_s0, %s718_s29  ;;  %843 = vmatprep.subr.bf16.mxu1 %v949_v3  ;;  %818 = vmatprep.subr.bf16.mxu0 %v949_v3  ;;  %p467_p8 = scmp.lt.s32.totalorder (%p1097_p4), %s466_s27, 11 }
  0x16   : > { %v954_v4 = vld [vmem:[%s1121_s7 + $0x10] sm:$0xff]   ;;  %v956_v5 = vld [vmem:[%s1121_s7] sm:$0xff]   ;;  %v955_v10 = vld [vmem:[%s1121_s7 + $0x18] sm:$0xff]   ;;  %s1160_s4 = scalar_lea.vmem (%p1097_p4), %s1215_s3, %s768_s28  }
  0x17   : > { %832 = vmatprep.mubr.bf16.mxu1 %v954_v4  ;;  %828 = vmatprep.mubr.bf16.mxu0 %v956_v5  ;;  %v957_v11 = vld [vmem:[%s1121_s7 + $0x8] sm:$0xff]   ;;  %v958_v12 = vld [vmem:[%s1121_s7 + $0x20] sm:$0xff]  }
  0x18   : > { %851 = vmatpush3.bf16.msra.mxu1 %v949_v3  ;;  %819 = vmatpush3.bf16.msra.mxu0 %v949_v3  ;;  %v959_v13 = vld [vmem:[%s1121_s7 + $0x28] ss:$0 sps:$4 sm:$0xff]  }
  0x19   : > { %844 = vmatprep.subr.bf16.mxu1 %v950_v6  ;;  %820 = vmatprep.subr.bf16.mxu0 %v950_v6 }
  0x1c   : > { %852 = vmatpush3.bf16.msra.mxu1 %v950_v6  ;;  %821 = vmatpush3.bf16.msra.mxu0 %v950_v6 }
  0x1d   : > { %845 = vmatprep.subr.bf16.mxu1 %v951_v7  ;;  %822 = vmatprep.subr.bf16.mxu0 %v951_v7 }
  0x20   : > { %853 = vmatpush3.bf16.msra.mxu1 %v951_v7  ;;  %823 = vmatpush3.bf16.msra.mxu0 %v951_v7 }
  0x21   : > { %846 = vmatprep.subr.bf16.mxu1 %v952_v8  ;;  %824 = vmatprep.subr.bf16.mxu0 %v952_v8 }
  0x24   : > { %854 = vmatpush3.bf16.msra.mxu1 %v952_v8  ;;  %825 = vmatpush3.bf16.msra.mxu0 %v952_v8 }
  0x25   : > { %847 = vmatprep.subr.bf16.mxu1 %v953_v9  ;;  %826 = vmatprep.subr.bf16.mxu0 %v953_v9 }
  0x28   : > { %855 = vmatpush3.bf16.msra.mxu1 %v953_v9  ;;  %827 = vmatpush3.bf16.msra.mxu0 %v953_v9 }
  0x2b   : > { %833 = vmatmul.mubr.bf16.vlgmr.msra.gmra.mrb[0].mxu1 %v955_v10  ;;  %829 = vmatmul.mubr.bf16.vlgmr.msra.gmra.mrb[0].mxu0 %v957_v11 }
  0x2c   : > { %836 = vmatprep.mubr.bf16.mxu1 %v958_v12 }
  0x33   : > { %837 = vmatmul.mubr.bf16.gmra.mrb[4].mxu1 %v959_v13 }
  0xfe   : > { %v834_v15 = vpop.f32.mrb[0].mxu1  ;;  %v830_v16 = vpop.f32.mrb[0].mxu0 }
  0xff   : > { %v348_v17 = vadd.f32 %v834_v15, %v719_v14  ;;  %v339_v18 = vpop.f32.mrb[1].mxu1  ;;  %v332_v19 = vadd.f32 %v830_v16, %v719_v14  ;;  %v323_v20 = vpop.f32.mrb[1].mxu0 }
 0x100   : > { %v340_v21 = vadd.f32 %v719_v14, %v339_v18  ;;  %v835_v22 = vpop.f32.mrb[2].mxu1  ;;  %v324_v23 = vadd.f32 %v719_v14, %v323_v20  ;;  %v831_v24 = vpop.f32.mrb[2].mxu0 }
 0x101   : > { %vm375_vm0 = vcmp.ge.f32.partialorder %v348_v17, 0.0  ;;  %v386_v25 = vmul.f32 0.2, %v348_v17  ;;  %v351_v26 = vadd.f32 %v835_v22, %v719_v14  ;;  %v342_v27 = vpop.f32.mrb[3].mxu1  ;;  %v326_v28 = vpop.f32.mrb[3].mxu0  ;;  %vm371_vm3 = vcmp.ge.f32.partialorder %v332_v19, 0.0 }
 0x102   : > { %v384_v29 = vmul.f32 0.2, %v340_v21  ;;  %v382_v30 = vmul.f32 0.2, %v332_v19  ;;  %v343_v31 = vadd.f32 %v719_v14, %v342_v27  ;;  %vm373_vm1 = vcmp.ge.f32.partialorder %v340_v21, 0.0 }
 0x103   : > { %vm376_vm2 = vcmp.ge.f32.partialorder %v351_v26, 0.0  ;;  %v387_v32 = vmul.f32 0.2, %v351_v26  ;;  %v397_v33 = vsel %vm375_vm0, %v348_v17, %v386_v25  ;;  %vm369_vm5 = vcmp.ge.f32.partialorder %v324_v23, 0.0 }
 0x104   : > { %vm374_vm4 = vcmp.ge.f32.partialorder %v343_v31, 0.0  ;;  %v385_v34 = vmul.f32 0.2, %v343_v31  ;;  %v380_v36 = vmul.f32 0.2, %v324_v23  ;;  %v335_v37 = vadd.f32 %v831_v24, %v719_v14 }
 0x105   : > { %v398_v35 = vsel %vm376_vm2, %v351_v26, %v387_v32  ;;  %v327_v38 = vadd.f32 %v719_v14, %v326_v28  ;;  %v395_v39 = vsel %vm373_vm1, %v340_v21, %v384_v29  ;;  %v393_v41 = vsel %vm371_vm3, %v332_v19, %v382_v30 }
 0x106   : > { %v787_v40 = vpack.c.bf16 %v398_v35, %v397_v33  ;;  %v396_v42 = vsel %vm374_vm4, %v343_v31, %v385_v34  ;;  %v838_v43 = vpop.f32.mrb[4].mxu1  ;;  %v391_v45 = vsel %vm369_vm5, %v324_v23, %v380_v36  ;;  %vm372_vm6 = vcmp.ge.f32.partialorder %v335_v37, 0.0 }
 0x107   : > { %v782_v44 = vpack.c.bf16 %v396_v42, %v395_v39  ;;  %v383_v46 = vmul.f32 0.2, %v335_v37  ;;  %v355_v47 = vpop.f32.mrb[5].mxu1  ;;  %vm370_vm7 = vcmp.ge.f32.partialorder %v327_v38, 0.0  ;;  %v381_v48 = vmul.f32 0.2, %v327_v38 }
 0x108   : > { %796 = vst [vmem:[%s1145_s12 + $0x18] sm:$0xff] %v787_v40   ;;  %v364_v49 = vadd.f32 %v838_v43, %v719_v14  ;;  %v356_v50 = vadd.f32 %v719_v14, %v355_v47  ;;  %v839_v51 = vpop.f32.mrb[6].mxu1 }
 0x109   : > { %795 = vst [vmem:[%s1145_s12 + $0x10] sm:$0xff] %v782_v44   ;;  %v394_v52 = vsel %vm372_vm6, %v335_v37, %v383_v46  ;;  %v358_v53 = vpop.f32.mrb[7].mxu1  ;;  %v392_v55 = vsel %vm370_vm7, %v327_v38, %v381_v48 }
 0x10a   : > { %v777_v54 = vpack.c.bf16 %v394_v52, %v393_v41  ;;  %vm379_vm8 = vcmp.ge.f32.partialorder %v364_v49, 0.0  ;;  %v390_v56 = vmul.f32 0.2, %v364_v49  ;;  %v772_v57 = vpack.c.bf16 %v392_v55, %v391_v45 }
 0x10b   : > { %v388_v58 = vmul.f32 0.2, %v356_v50  ;;  %v359_v59 = vadd.f32 %v719_v14, %v358_v53  ;;  %vm377_vm9 = vcmp.ge.f32.partialorder %v356_v50, 0.0 }
 0x10c   : > { %794 = vst [vmem:[%s1145_s12 + $0x8] sm:$0xff] %v777_v54   ;;  %v401_v60 = vsel %vm379_vm8, %v364_v49, %v390_v56  ;;  %773 = vst [vmem:[%s1145_s12] sm:$0xff] %v772_v57   ;;  %464 = sbr.rel (!%p1097_p4) target bundleno = 344 (0x158), region = 36 }
 0x10d   : > { %v767_v61 = vpack.c.bf16 %v401_v60, %v401_v60  ;;  %vm378_vm10 = vcmp.ge.f32.partialorder %v359_v59, 0.0  ;;  %v389_v62 = vmul.f32 0.2, %v359_v59  ;;  %v399_v63 = vsel %vm377_vm9, %v356_v50, %v388_v58 }
 0x10f   : > { %457 = vst [vmem:[%s1145_s12 + $0x28] sm:$0xf] %v767_v61  ;;  %v400_v0 = vsel %vm378_vm10, %v359_v59, %v389_v62 }
 0x110   : > { %v792_v1 = vpack.c.bf16 %v400_v0, %v399_v63 }
 0x112   : > { %797 = vst [vmem:[%s1145_s12 + $0x20] sm:$0xff] %v792_v1  }
 0x113   : > { %s1224_s27 = smov (!%p467_p8, %s466_s27), 11 }
 0x114   : > { %s745_s5 = sshll.u32 %s1224_s27, 6 }
 0x115   : > { %p748_p9 = scmp.eq.s32.totalorder %s745_s5, 0 }
 0x116   : > { %960 = sdivrem.u32 (!%p748_p9), %s1224_s27, 11 }
 0x117   : > { %475 = sbr.rel (%p748_p9) target bundleno = 344 (0x158), region = 40 }
 0x11f   : > { %s1166_s20 = spop.drf %960 }
 0x120   : > { %p749_p10 = scmp.le.s32.totalorder %s1166_s20, 0 }
 0x121   : > { %s1217_s15 = smov (!%p749_p10), %s1160_s4  ;;  %s1218_s23 = smov (!%p749_p10), %s1145_s12 }
 0x122   : > { %670 = sbr.rel (%p749_p10) target bundleno = 315 (0x13b), region = 112  ;;  %s1175_s6 = smov (!%p749_p10), 0  }
 0x123   : > { %s1177_s7 = smov (!%p749_p10), 0  }
 0x129 LB: >> { %v492_v2 = vld [vmem:[%s1026_s23] sm:$0xf]  ;;  %v494_v3 = vld [vmem:[%s1026_s23 + $0x4] sm:$0xf]  ;;  %v496_v4 = vld [vmem:[%s1026_s23 + $0x8] sm:$0xf]  ;;  %s1034_s7 = sphi %s1177_s7, %s486_s7   ;;  %s1030_s6 = sphi %s1175_s6, %s1219_s6   ;;  %s1026_s23 = sphi %s1218_s23, %s519_s23   ;;  %s1022_s15 = sphi %s1217_s15, %s520_s15  }
 0x12a   : >> { %493 = vst [vmem:[%s1022_s15] sm:$0xf] %v492_v2  ;;  %495 = vst [vmem:[%s1022_s15 + $0x4] sm:$0xf] %v494_v3  ;;  %v498_v5 = vld [vmem:[%s1026_s23 + $0xc] sm:$0xf]  ;;  %s514_s8 = sadd.s32 1, %s1030_s6 }
 0x12b   : >> { %497 = vst [vmem:[%s1022_s15 + $0x8] sm:$0xf] %v496_v4  ;;  %v500_v6 = vld [vmem:[%s1026_s23 + $0x10] sm:$0xf]  ;;  %v502_v7 = vld [vmem:[%s1026_s23 + $0x14] sm:$0xf]  ;;  %p515_p11 = scmp.ge.s32.totalorder %s514_s8, %s1166_s20 }
 0x12c   : >> { %499 = vst [vmem:[%s1022_s15 + $0xc] sm:$0xf] %v498_v5  ;;  %501 = vst [vmem:[%s1022_s15 + $0x10] sm:$0xf] %v500_v6  ;;  %v504_v8 = vld [vmem:[%s1026_s23 + $0x18] sm:$0xf] }
 0x12d   : >> { %503 = vst [vmem:[%s1022_s15 + $0x14] sm:$0xf] %v502_v7  ;;  %v506_v9 = vld [vmem:[%s1026_s23 + $0x1c] sm:$0xf]  ;;  %v508_v10 = vld [vmem:[%s1026_s23 + $0x20] sm:$0xf] }
 0x12e   : >> { %505 = vst [vmem:[%s1022_s15 + $0x18] sm:$0xf] %v504_v8  ;;  %507 = vst [vmem:[%s1022_s15 + $0x1c] sm:$0xf] %v506_v9  ;;  %v510_v11 = vld [vmem:[%s1026_s23 + $0x24] sm:$0xf] }
 0x12f   : >> { %509 = vst [vmem:[%s1022_s15 + $0x20] sm:$0xf] %v508_v10  ;;  %v512_v12 = vld [vmem:[%s1026_s23 + $0x28] sm:$0xf]  ;;  %511 = vst [vmem:[%s1022_s15 + $0x24] sm:$0xf] %v510_v11 }
 0x130   : >> { %513 = vst [vmem:[%s1022_s15 + $0x28] sm:$0xf] %v512_v12  ;;  %s1226_s8 = smov (%p515_p11, %s514_s8), 0  ;;  %s486_s7 = sadd.s32 1, %s1034_s7  }
 0x131   : >> { %s517_s9 = smul.u32 44, %s1226_s8  ;;  %p485_p12 = scmp.ge.s32.totalorder %s486_s7, %s1166_s20 }
 0x132   : >> { %s1219_s6 = smov %s1226_s8 }
 0x133   : >> { %s519_s23 = scalar_lea.vmem %s1145_s12, %s517_s9 [#allocation2]   ;;  %s520_s15 = scalar_lea.vmem %s1160_s4, %s517_s9  }
 0x134   : > { %488 = sbr.rel (!%p485_p12) target bundleno = 297 (0x129), region = 118 }
 0x13b PF: > { %962 = sdivrem.u32 %s1224_s27, 11 }
 0x13c   : > { %s750_s10 = smul.u32 44, %s1166_s20 }
 0x13e   : > { %s525_s11 = scalar_lea.vmem %s1145_s12, %s750_s10 [#allocation2]   ;;  %s527_s14 = scalar_lea.vmem %s1160_s4, %s750_s10  }
 0x144   : > { %s963_s17 = spop.drf %962 }
 0x145   : > { %p752_p13 = scmp.le.s32.totalorder %s963_s17, 0 }
 0x146   : > { %s1036_s18 = smov (!%p752_p13), %s527_s14   ;;  %s1040_s21 = smov (!%p752_p13), %s525_s11  }
 0x147   : > { %684 = sbr.rel (%p752_p13) target bundleno = 344 (0x158), region = 123  ;;  %s1044_s22 = smov (!%p752_p13), 0  }
 0x148   : > { %s1048_s24 = smov (!%p752_p13), 0  }
 0x14e LB: >> { %v537_v13 = vld [vmem:[%s1042_s21] sm:$0xf]  ;;  %s539_s25 = sadd.s32 1, %s1046_s22  ;;  %s531_s24 = sadd.s32 1, %s1050_s24   ;;  %s1050_s24 = sphi %s1048_s24, %s531_s24   ;;  %s1046_s22 = sphi %s1044_s22, %s1045_s22   ;;  %s1042_s21 = sphi %s1040_s21, %s544_s21   ;;  %s1038_s18 = sphi %s1036_s18, %s545_s18  }
 0x14f   : >> { %538 = vst [vmem:[%s1038_s18] sm:$0xf] %v537_v13  ;;  %p540_p0 = scmp.ge.s32.totalorder %s539_s25, %s963_s17  ;;  %p530_p1 = scmp.ge.s32.totalorder %s531_s24, %s963_s17 }
 0x151   : >> { %s1228_s25 = smov (%p540_p0, %s539_s25), 0  ;;  %533 = sbr.rel (!%p530_p1) target bundleno = 334 (0x14e), region = 129 }
 0x152   : >> { %s753_s26 = sshll.u32 %s1228_s25, 2  ;;  %s1045_s22 = smov %s1228_s25  }
 0x153   : >> { %s544_s21 = scalar_lea.vmem %s525_s11, %s753_s26 [#allocation2]   ;;  %s545_s18 = scalar_lea.vmem %s527_s14, %s753_s26  }
 0x158 PF: > { %p10_p2 = scmp.ge.s32.totalorder %s1087_s16, 4   ;;  %s1220_s12 = smov %s1014_s13 }
 0x159   : > { %s1221_s13 = smov %s1095_s19  ;;  %s1222_s14 = smov %s1087_s16 }
 0x15a   :  { %12 = sbr.rel (!%p10_p2) target bundleno = 2 (0x2), region = 140 }

// kernel: _lambda_.7
= control target key start
LH: loop header
LB: loop body
LE: loop exit
PB: predicated region body
PF: predicated region fallthrough
CT: control target
= control target key end

     0   :  { %s1191_s18 = smov 0   ;;  %s1193_s19 = smov 0   ;;  %s1327_s0 = inlined_call_operand.vmem [shape: bf16[64,128], index: 0, kind: input, shape index: {}]   ;;  %s1328_s1 = inlined_call_operand.vmem [shape: bf16[128,128], index: 1, kind: input, shape index: {}]   ;;  %s1329_s2 = inlined_call_operand.vmem [shape: f32[1,128], index: 2, kind: input, shape index: {}]   ;;  %s1330_s3 = inlined_call_operand.vmem [shape: bf16[50,128], index: 3, kind: output, shape index: {0}]   ;;  %s1331_s4 = inlined_call_operand.vmem [shape: f32[2,1,128], index: 4, kind: output, shape index: {1}]   ;;  %s1332_s5 = inlined_call_operand.vmem [shape: f32[2,1,128], index: 5, kind: output, shape index: {2}]  }
   0x1   :  { %s1195_s20 = smov 0  }
   0x2 LB: > { %s1204_s21 = sadd.s32 4294967295, %s1124_s20   ;;  %s1206_s22 = sadd.s32 1, %s1124_s20   ;;  %s1124_s20 = sphi %s1195_s20, %s1339_s20   ;;  %s1120_s19 = sphi %s1193_s19, %s1338_s19   ;;  %s1116_s18 = sphi %s1191_s18, %s1337_s18  }
   0x3   : > { %s88_s23 = ssub.s32 %s1124_s20, %s1206_s22  ;;  %s91_s24 = sadd.s32 1, %s1120_s19 }
   0x4   : > { %p89_p0 = scmp.eq.s32.totalorder %s88_s23, 0  ;;  %p101_p1 = scmp.ne.s32.totalorder %s1120_s19, %s1116_s18 }
   0x5   : > { %p102_p2 = scmp.eq.s32.totalorder %s1204_s21, 1  ;;  %p837_p3 = scmp.ge.s32.totalorder %s1124_s20, 1 }
   0x6   : > { %s1214_s25 = scalar_select %p89_p0, %s1120_s19, %s91_s24  }
   0x7   : > { %p1216_p4 = por %p102_p2, %p101_p1  ;;  %p193_p5 = scmp.lt.s32.totalorder %s1124_s20, 3 }
   0x9   : > { %p194_p6 = pnand %p837_p3, %p193_p5 }
   0xa   : > { %v1060_v0 = vld [vmem:[%s1328_s1] sm:$0xff] (!%p194_p6)   ;;  %s1224_s29 = sshll.u32 (!%p194_p6), %s1204_s21, 2  ;;  %v1061_v1 = vld [vmem:[%s1328_s1 + $0x8] sm:$0xff] (!%p194_p6)   ;;  %v1062_v2 = vld [vmem:[%s1328_s1 + $0x10] sm:$0xff] (!%p194_p6)   ;;  %v1158_v10 = vmov (!%p194_p6), 0.0|0.0   ;;  %vm1159_vm0 = vmmov (!%p194_p6), 0   ;;  %v402_v16 = vlaneseq (!%p194_p6) }
   0xb   : > { %197 = sbr.rel (%p194_p6) target bundleno = 543 (0x21f), region = 32  ;;  %p227_p7 = scmp.lt.s32.totalorder (!%p194_p6), %s1224_s29, 7  ;;  %915 = vmatprep.subr.bf16.mxu0 (!%p194_p6), %v1060_v0  ;;  %v1063_v3 = vld [vmem:[%s1328_s1 + $0x18] sm:$0xff] (!%p194_p6)   ;;  %v1064_v5 = vld [vmem:[%s1328_s1 + $0x20] sm:$0xff] (!%p194_p6)   ;;  %v1065_v6 = vld [vmem:[%s1328_s1 + $0x28] sm:$0xff] (!%p194_p6)   ;;  %957 = vmatprep.subr.bf16.mxu1 (!%p194_p6), %v1158_v10  ;;  %v1160_v11 = vmov (!%p194_p6), 0.0  }
   0xc   : > { %916 = vmatpush3.bf16.msra.mxu0 (!%p194_p6), %v1060_v0  ;;  %v1066_v7 = vld [vmem:[%s1328_s1 + $0x30] sm:$0xff] (!%p194_p6)   ;;  %v1067_v8 = vld [vmem:[%s1328_s1 + $0x38] sm:$0xff] (!%p194_p6)   ;;  %943 = vmatprep.mubr.msk.f32.mxu1 (!%p194_p6), %vm1159_vm0, %v1160_v11  ;;  %v841_v12 = vld [vmem:[%s1329_s2] ss:$0 sm:$0xff] (!%p194_p6)  ;;  %s213_s8 = sand.u32 (!%p194_p6), 1, %s1116_s18   ;;  %s856_s9 = sshll.u32 (!%p194_p6), %s1204_s21, 5 }
   0xd   : > { %917 = vmatprep.subr.bf16.mxu0 (!%p194_p6), %v1061_v1  ;;  %s401_s11 = ssub.s32 (!%p194_p6), 50, %s856_s9  ;;  %v403_v25 = vand.u32 (!%p194_p6), 127, %v402_v16  ;;  %vm408_vm2 = vcmask (!%p194_p6), 261120   ;;  %p237_p8 = scmp.lt.s32.totalorder (!%p194_p6), %s1204_s21, 1 }
   0xe   : > { %v404_v29 = vstv (!%p194_p6), %s401_s11 }
   0xf   : > { %vm405_vm1 = vcmp.lt.s32.totalorder (!%p194_p6), %v403_v25, %v404_v29 }
  0x10   : > { %918 = vmatpush3.bf16.msra.mxu0 (!%p194_p6), %v1061_v1  ;;  %v857_v32 = vsel (!%p194_p6), %vm405_vm1, 1.0, %v1160_v11 }
  0x11   : > { %919 = vmatprep.subr.bf16.mxu0 (!%p194_p6), %v1062_v2 }
  0x12   : > { %s228_s7 = scalar_select %p227_p7, %s1224_s29, 7 }
  0x13   : > { %s238_s12 = scalar_select %p237_p8, %s1204_s21, 1 }
  0x14   : > { %s840_s10 = sshll.u32 %s228_s7, 2  ;;  %920 = vmatpush3.bf16.msra.mxu0 %v1062_v2  ;;  %s572_s23 = ssub.s32 (%p1216_p4), 7, %s1224_s29 }
  0x15   : > { %s230_s13 = scalar_lea.vmem %s1327_s0, %s840_s10  ;;  %921 = vmatprep.subr.bf16.mxu0 %v1063_v3  ;;  %s838_s10 = sshll.u32 %s213_s8, 4 }
  0x16   : > { %v1068_v4 = vld [vmem:[%s230_s13] sm:$0xff]   ;;  %v1069_v9 = vld [vmem:[%s230_s13 + $0x8] sm:$0xff]   ;;  %s1258_s18 = scalar_lea.vmem [#allocation2], %s838_s10   ;;  %s239_s15 = scalar_lea.vmem %s1331_s4, %s238_s12 }
  0x17   : > { %931 = vmatprep.mubr.bf16.mxu0 %v1068_v4  ;;  %s242_s20 = scalar_lea.vmem %s1332_s5, %s238_s12  ;;  %s881_s24 = sshll.u32 (%p1216_p4), %s1204_s21, 4 }
  0x18   : > { %922 = vmatpush3.bf16.msra.mxu0 %v1063_v3  ;;  %p573_p9 = scmp.lt.s32.totalorder (%p1216_p4), %s572_s23, 4  ;;  %s1278_s30 = scalar_lea.vmem (%p1216_p4), %s1330_s3, %s881_s24  }
  0x19   : > { %923 = vmatprep.subr.bf16.mxu0 %v1064_v5 }
  0x1c   : > { %924 = vmatpush3.bf16.msra.mxu0 %v1064_v5 }
  0x1d   : > { %925 = vmatprep.subr.bf16.mxu0 %v1065_v6 }
  0x20   : > { %926 = vmatpush3.bf16.msra.mxu0 %v1065_v6 }
  0x21   : > { %927 = vmatprep.subr.bf16.mxu0 %v1066_v7 }
  0x24   : > { %928 = vmatpush3.bf16.msra.mxu0 %v1066_v7 }
  0x25   : > { %929 = vmatprep.subr.bf16.mxu0 %v1067_v8 }
  0x28   : > { %930 = vmatpush3.bf16.msra.mxu0 %v1067_v8 }
  0x2b   : > { %932 = vmatmul.mubr.bf16.vlgmr.msra.gmra.mrb[0].mxu0 %v1069_v9 }
  0xfe   : > { %v933_v13 = vpop.f32.mrb[0].mxu0 }
  0xff   : > { %v374_v14 = vadd.f32 %v933_v13, %v841_v12  ;;  %v365_v15 = vpop.f32.mrb[1].mxu0 }
 0x100   : > { %v366_v17 = vadd.f32 %v841_v12, %v365_v15  ;;  %v934_v18 = vpop.f32.mrb[2].mxu0 }
 0x101   : > { %v377_v19 = vadd.f32 %v934_v18, %v841_v12  ;;  %v368_v20 = vpop.f32.mrb[3].mxu0  ;;  %v485_v22 = vmul.f32 %v374_v14, %v374_v14 }
 0x102   : > { %v369_v21 = vadd.f32 %v841_v12, %v368_v20  ;;  %v483_v26 = vmul.f32 %v366_v17, %v366_v17 }
 0x103   : > { %v892_v23 = vpack.c.bf16 %v377_v19, %v374_v14  ;;  %v486_v24 = vmul.f32 %v377_v19, %v377_v19 }
 0x104   : > { %v484_v27 = vmul.f32 %v369_v21, %v369_v21  ;;  %v887_v28 = vpack.c.bf16 %v369_v21, %v366_v17 }
 0x105   : > { %894 = vst [vmem:[%s1258_s18 + $0x8] sm:$0xff] %v892_v23   ;;  %v967_v30 = vpack.c.bf16 %v486_v24, %v485_v22 }
 0x106   : > { %v964_v31 = vpack.c.bf16 %v484_v27, %v483_v26  ;;  %888 = vst [vmem:[%s1258_s18] sm:$0xff] %v887_v28   ;;  %959 = vmatpush3.bf16.msra.mxu1 %v887_v28 }
 0x107   : > { %960 = vmatprep.subr.bf16.mxu1 %v1158_v10 }
 0x10a   : > { %962 = vmatpush3.bf16.msra.mxu1 %v892_v23 }
 0x10b   : > { %963 = vmatprep.subr.bf16.mxu1 %v1158_v10 }
 0x10d   : > { %944 = vmatmul.mubr.msk.f32.vlgmr.msra.gmra.mrb[0].mxu1 %vm408_vm2, %v857_v32 }
 0x10e   : > { %965 = vmatpush3.bf16.msra.mxu1 %v964_v31  ;;  %954 = vmatprep.mubr.msk.f32.mxu1 %vm1159_vm0, %v1160_v11 }
 0x10f   : > { %966 = vmatprep.subr.bf16.mxu1 %v1158_v10 }
 0x112   : > { %968 = vmatpush3.bf16.msra.mxu1 %v967_v30 }
 0x115   : > { %955 = vmatmul.mubr.msk.f32.vlgmr.msra.gmra.mrb[2].mxu1 %vm408_vm2, %v857_v32 }
 0x1e0   : > { %v478_v33 = vpop.f32.mrb[0].mxu1 }
 0x1e1   : > { %482 = vst [vmem:[%s239_s15] sm:$0x1] %v478_v33  ;;  %v945_v34 = vpop.f32.mrb[1].mxu1 }
 0x1e3   : > { %570 = sbr.rel (!%p1216_p4) target bundleno = 543 (0x21f), region = 36 }
 0x1e8   : > { %v553_v35 = vpop.f32.mrb[2].mxu1 }
 0x1e9   : > { %557 = vst [vmem:[%s242_s20] sm:$0x1] %v553_v35  ;;  %v956_v36 = vpop.f32.mrb[3].mxu1 }
 0x1ea   : > { %s1341_s23 = smov (!%p573_p9, %s572_s23), 4 }
 0x1eb   : > { %s862_s6 = sshll.u32 %s1341_s23, 6 }
 0x1ec   : > { %p865_p10 = scmp.eq.s32.totalorder %s862_s6, 0 }
 0x1ed   : > { %s1284_s7 = sshrl.u32 (!%p865_p10), %s1341_s23, 2 }
 0x1ee   : > { %581 = sbr.rel (%p865_p10) target bundleno = 543 (0x21f), region = 40  ;;  %p866_p11 = scmp.le.s32.totalorder (!%p865_p10), %s1284_s7, 0 }
 0x1f5   : > { %772 = sbr.rel (%p866_p11) target bundleno = 522 (0x20a), region = 136  ;;  %s1334_s21 = smov (!%p866_p11), %s1278_s30 }
 0x1f6   : > { %s1335_s26 = smov (!%p866_p11), %s1258_s18  ;;  %s1293_s29 = smov (!%p866_p11), 0  }
 0x1f7   : > { %s1138_s8 = smov (!%p866_p11), 0  }
 0x1fc LB: >> { %v597_v37 = vld [vmem:[%s1132_s26] sm:$0xf]  ;;  %v599_v38 = vld [vmem:[%s1132_s26 + $0x4] sm:$0xf]  ;;  %v601_v39 = vld [vmem:[%s1132_s26 + $0x8] sm:$0xf]  ;;  %s1140_s8 = sphi %s1138_s8, %s591_s8   ;;  %s1136_s29 = sphi %s1293_s29, %s1336_s29   ;;  %s1132_s26 = sphi %s1335_s26, %s610_s26   ;;  %s1128_s21 = sphi %s1334_s21, %s611_s21  }
 0x1fd   : >> { %598 = vst [vmem:[%s1128_s21] sm:$0xf] %v597_v37  ;;  %600 = vst [vmem:[%s1128_s21 + $0x4] sm:$0xf] %v599_v38  ;;  %v603_v40 = vld [vmem:[%s1132_s26 + $0xc] sm:$0xf]  ;;  %s605_s9 = sadd.s32 1, %s1136_s29 }
 0x1fe   : >> { %602 = vst [vmem:[%s1128_s21 + $0x8] sm:$0xf] %v601_v39  ;;  %604 = vst [vmem:[%s1128_s21 + $0xc] sm:$0xf] %v603_v40  ;;  %p606_p12 = scmp.ge.s32.totalorder %s605_s9, %s1284_s7  ;;  %s591_s8 = sadd.s32 1, %s1140_s8  }
 0x1ff   : >> { %p590_p13 = scmp.ge.s32.totalorder %s591_s8, %s1284_s7 }
 0x200   : >> { %s1343_s9 = smov (%p606_p12, %s605_s9), 0 }
 0x201   : >> { %s867_s10 = sshll.u32 %s1343_s9, 4  ;;  %s1336_s29 = smov %s1343_s9 }
 0x202   : >> { %s610_s26 = scalar_lea.vmem %s1258_s18, %s867_s10 [#allocation2]   ;;  %s611_s21 = scalar_lea.vmem %s1278_s30, %s867_s10  }
 0x203   : > { %593 = sbr.rel (!%p590_p13) target bundleno = 508 (0x1fc), region = 142 }
 0x20a PF: > { %s1309_s11 = sand.u32 3, %s1341_s23   ;;  %s882_s12 = sshll.u32 %s1284_s7, 4 }
 0x20b   : > { %s616_s13 = scalar_lea.vmem %s1258_s18, %s882_s12 [#allocation2]   ;;  %s618_s14 = scalar_lea.vmem %s1278_s30, %s882_s12  }
 0x20c   : > { %p872_p0 = scmp.le.s32.totalorder %s1309_s11, 0 }
 0x20d   : > { %s1142_s15 = smov (!%p872_p0), %s618_s14   ;;  %s1146_s16 = smov (!%p872_p0), %s616_s13  }
 0x20e   : > { %786 = sbr.rel (%p872_p0) target bundleno = 543 (0x21f), region = 147  ;;  %s1150_s17 = smov (!%p872_p0), 0  }
 0x20f   : > { %s1154_s20 = smov (!%p872_p0), 0  }
 0x215 LB: >> { %v628_v41 = vld [vmem:[%s1148_s16] sm:$0xf]  ;;  %s630_s23 = sadd.s32 1, %s1152_s17  ;;  %s622_s20 = sadd.s32 1, %s1156_s20   ;;  %s1156_s20 = sphi %s1154_s20, %s622_s20   ;;  %s1152_s17 = sphi %s1150_s17, %s1151_s17   ;;  %s1148_s16 = sphi %s1146_s16, %s635_s16   ;;  %s1144_s15 = sphi %s1142_s15, %s636_s15  }
 0x216   : >> { %629 = vst [vmem:[%s1144_s15] sm:$0xf] %v628_v41  ;;  %p631_p1 = scmp.ge.s32.totalorder %s630_s23, %s1309_s11  ;;  %p621_p2 = scmp.ge.s32.totalorder %s622_s20, %s1309_s11 }
 0x218   : >> { %s1345_s23 = smov (%p631_p1, %s630_s23), 0  ;;  %624 = sbr.rel (!%p621_p2) target bundleno = 533 (0x215), region = 153 }
 0x219   : >> { %s873_s18 = sshll.u32 %s1345_s23, 2  ;;  %s1151_s17 = smov %s1345_s23  }
 0x21a   : >> { %s635_s16 = scalar_lea.vmem %s616_s13, %s873_s18 [#allocation2]   ;;  %s636_s15 = scalar_lea.vmem %s618_s14, %s873_s18  }
 0x21f PF: > { %p13_p3 = scmp.ge.s32.totalorder %s1206_s22, 4   ;;  %s1337_s18 = smov %s1120_s19 }
 0x220   : > { %s1338_s19 = smov %s1214_s25  ;;  %s1339_s20 = smov %s1206_s22 }
 0x221   :  { %15 = sbr.rel (!%p13_p3) target bundleno = 2 (0x2), region = 164 }

// kernel: tile.43
= control target key start
LH: loop header
LB: loop body
LE: loop exit
PB: predicated region body
PF: predicated region fallthrough
CT: control target
= control target key end

     0   :  { %s28_s0 = inlined_call_operand.vmem [shape: f32[16], index: 0, kind: input, shape index: {}]   ;;  %s29_s1 = inlined_call_operand.vmem [shape: f32[16,16], index: 1, kind: output, shape index: {}]  }
   0x1   :  { %v4_v0 = vld [vmem:[%s28_s0] ss:$0 sm:$0xff] }
   0x2   :  { %5 = vst [vmem:[%s29_s1] sm:$0xff] %v4_v0  ;;  %8 = vst [vmem:[%s29_s1 + $0x8] sm:$0xff] %v4_v0 }

// kernel: tile.48
= control target key start
LH: loop header
LB: loop body
LE: loop exit
PB: predicated region body
PF: predicated region fallthrough
CT: control target
= control target key end

     0   :  { %s7_s6 = smov 3  ;;  %s21_s9 = smov 3  ;;  %vm4_vm0 = vcmask 130048   ;;  %vm11_vm1 = vcmask 1048448   ;;  %vm18_vm2 = vcmask 917248   ;;  %vm25_vm3 = vcmask 786048   ;;  %s128_s0 = inlined_call_operand.vmem [shape: f32[16,16], index: 0, kind: input, shape index: {}]   ;;  %s129_s1 = inlined_call_operand.vmem [shape: f32[1,256], index: 1, kind: output, shape index: {}]  }
   0x1   :  { %v66_v0 = vld [vmem:[%s128_s0 + $0x7] ss:$8 sm:%s7_s6]   ;;  %s81_s10 = smov 112   ;;  %v68_v1 = vld [vmem:[%s128_s0 + $0x5] ss:$8 sm:%s21_s9]   ;;  %s14_s13 = smov 3 }
   0x2   :  { %9 = vrot.lane.b32.xlu0 %v66_v0, %s81_s10  ;;  %s82_s14 = smov 80   ;;  %v67_v2 = vld [vmem:[%s128_s0 + $0x6] ss:$8 sm:%s14_s13]   ;;  %s28_s17 = smov 3  ;;  %vm32_vm4 = vcmask 654848   ;;  %vm39_vm5 = vcmask 523648  }
   0x3   :  { %23 = vrot.lane.b32.xlu1 %v68_v1, %s82_s14  ;;  %v69_v3 = vld [vmem:[%s128_s0 + $0x4] ss:$8 sm:%s28_s17]   ;;  %s35_s20 = smov 3  ;;  %s42_s21 = smov 3  ;;  %vm46_vm6 = vcmask 392448   ;;  %vm53_vm7 = vcmask 261248  }
   0x4   :  { %s83_s22 = smov 96   ;;  %s84_s23 = smov 64   ;;  %v70_v4 = vld [vmem:[%s128_s0 + $0x3] ss:$8 sm:%s35_s20]   ;;  %v71_v5 = vld [vmem:[%s128_s0 + $0x2] ss:$8 sm:%s42_s21]  }
   0x5   :  { %s2_s26 = smov 3  ;;  %s49_s29 = smov 3 }
   0x6   :  { %16 = vrot.lane.b32.xlu0 %v67_v2, %s83_s22  ;;  %v3_v6 = vld [vmem:[%s128_s0] ss:$8 sm:%s2_s26]   ;;  %s85_s3 = smov 48   ;;  %s86_s4 = smov 32  }
   0x7   :  { %30 = vrot.lane.b32.xlu1 %v69_v3, %s84_s23  ;;  %5 = vst.msk [vmem:[#allocation0] ss:$8 sm:$0x3] %vm4_vm0, %v3_v6   ;;  %v72_v7 = vld [vmem:[%s128_s0 + $0x1] ss:$8 sm:%s49_s29]   ;;  %s87_s0 = smov 16  }
   0xa   :  { %37 = vrot.lane.b32.xlu0 %v70_v4, %s85_s3 }
   0xb   :  { %44 = vrot.lane.b32.xlu1 %v71_v5, %s86_s4 }
   0xe   :  { %51 = vrot.lane.b32.xlu0 %v72_v7, %s87_s0 }
  0x74   :  { %v10_v8 = vpop.permute.xlu0 %9  }
  0x75   :  { %12 = vst.msk [vmem:[#allocation0] ss:$8 sm:$0x3] %vm11_vm1, %v10_v8   ;;  %v24_v9 = vpop.permute.xlu1 %23  }
  0x78   :  { %v17_v10 = vpop.permute.xlu0 %16  }
  0x79   :  { %19 = vst.msk [vmem:[#allocation0] ss:$8 sm:$0x3] %vm18_vm2, %v17_v10   ;;  %v31_v11 = vpop.permute.xlu1 %30  }
  0x7a   :  { %26 = vst.msk [vmem:[#allocation0] ss:$8 sm:$0x3] %vm25_vm3, %v24_v9  }
  0x7b   :  { %33 = vst.msk [vmem:[#allocation0] ss:$8 sm:$0x3] %vm32_vm4, %v31_v11  }
  0x7c   :  { %v38_v12 = vpop.permute.xlu0 %37  }
  0x7d   :  { %40 = vst.msk [vmem:[#allocation0] ss:$8 sm:$0x3] %vm39_vm5, %v38_v12   ;;  %v45_v13 = vpop.permute.xlu1 %44  }
  0x7e   :  { %47 = vst.msk [vmem:[#allocation0] ss:$8 sm:$0x3] %vm46_vm6, %v45_v13  }
  0x80   :  { %v52_v14 = vpop.permute.xlu0 %51  }
  0x81   :  { %54 = vst.msk [vmem:[#allocation0] ss:$8 sm:$0x3] %vm53_vm7, %v52_v14  }
  0x88   :  { %v58_v15 = vld [vmem:[#allocation0] sm:$0x1]  ;;  %v62_v16 = vld [vmem:[#allocation0 + $0x8] sm:$0x1] }
  0x89   :  { %60 = vst [vmem:[%s129_s1] sm:$0x1] %v58_v15  ;;  %73 = vst [vmem:[%s129_s1 + $0x1] sm:$0x1] %v62_v16 }

// kernel: _lambda_.8
= control target key start
LH: loop header
LB: loop body
LE: loop exit
PB: predicated region body
PF: predicated region fallthrough
CT: control target
= control target key end

     0   :  { %s1308_s24 = smov 0   ;;  %s1310_s25 = smov 0   ;;  %s1460_s0 = inlined_call_operand.vmem [shape: bf16[32,256], index: 0, kind: input, shape index: {}]   ;;  %s1461_s1 = inlined_call_operand.vmem [shape: bf16[256,128], index: 1, kind: input, shape index: {}]   ;;  %s1462_s2 = inlined_call_operand.vmem [shape: f32[1,128], index: 2, kind: input, shape index: {}]   ;;  %s1463_s3 = inlined_call_operand.vmem [shape: f32[1,256], index: 3, kind: input, shape index: {}]   ;;  %s1464_s4 = inlined_call_operand.vmem [shape: f32[1,256], index: 4, kind: input, shape index: {}]   ;;  %s1465_s5 = inlined_call_operand.vmem [shape: bf16[18,128], index: 5, kind: output, shape index: {0}]   ;;  %s1466_s6 = inlined_call_operand.vmem [shape: f32[2,1,128], index: 6, kind: output, shape index: {1}]   ;;  %s1467_s7 = inlined_call_operand.vmem [shape: f32[2,1,128], index: 7, kind: output, shape index: {2}]  }
   0x1   :  { %s1312_s26 = smov 0  }
   0x2 LB: > { %s1321_s27 = sadd.s32 4294967295, %s1231_s26   ;;  %s1323_s28 = sadd.s32 1, %s1231_s26   ;;  %s1231_s26 = sphi %s1312_s26, %s1471_s26   ;;  %s1227_s25 = sphi %s1310_s25, %s1470_s25   ;;  %s1223_s24 = sphi %s1308_s24, %s1469_s24  }
   0x3   : > { %s132_s29 = ssub.s32 %s1231_s26, %s1323_s28  ;;  %s135_s30 = sadd.s32 1, %s1227_s25 }
   0x4   : > { %p133_p0 = scmp.eq.s32.totalorder %s132_s29, 0  ;;  %p145_p1 = scmp.ne.s32.totalorder %s1227_s25, %s1223_s24 }
   0x5   : > { %p146_p2 = scmp.eq.s32.totalorder %s1321_s27, 1  ;;  %p966_p3 = scmp.ge.s32.totalorder %s1231_s26, 1 }
   0x6   : > { %s1331_s8 = scalar_select %p133_p0, %s1227_s25, %s135_s30  }
   0x7   : > { %p1333_p4 = por %p146_p2, %p145_p1  ;;  %p244_p5 = scmp.lt.s32.totalorder %s1231_s26, 3 }
   0x9   : > { %p245_p6 = pnand %p966_p3, %p244_p5 }
   0xa   : > { %v1161_v0 = vld [vmem:[%s1461_s1 + $0x40] sm:$0xff] (!%p245_p6)   ;;  %s1341_s12 = sshll.u32 (!%p245_p6), %s1321_s27, 1  ;;  %v1163_v2 = vld [vmem:[%s1461_s1 + $0x48] sm:$0xff] (!%p245_p6)   ;;  %v1165_v4 = vld [vmem:[%s1461_s1 + $0x50] sm:$0xff] (!%p245_p6)   ;;  %v309_v5 = vlaneseq (!%p245_p6)  ;;  %v1265_v50 = vmov (!%p245_p6), 0.0|0.0   ;;  %vm1266_vm4 = vmmov (!%p245_p6), 0  }
   0xb   : > { %248 = sbr.rel (%p245_p6) target bundleno = 533 (0x215), region = 40  ;;  %v1162_v1 = vld [vmem:[%s1461_s1] sm:$0xff] (!%p245_p6)   ;;  %1022 = vmatprep.subr.bf16.mxu0 (!%p245_p6), %v1161_v0  ;;  %p283_p7 = scmp.lt.s32.totalorder (!%p245_p6), %s1341_s12, 3  ;;  %v1164_v3 = vld [vmem:[%s1461_s1 + $0x8] sm:$0xff] (!%p245_p6)   ;;  %v1166_v6 = vld [vmem:[%s1461_s1 + $0x10] sm:$0xff] (!%p245_p6)   ;;  %1064 = vmatprep.subr.bf16.mxu1 (!%p245_p6), %v1265_v50  ;;  %v1267_v51 = vmov (!%p245_p6), 0.0  }
   0xc   : > { %1023 = vmatpush3.bf16.msra.mxu0 (!%p245_p6), %v1162_v1  ;;  %v1167_v7 = vld [vmem:[%s1461_s1 + $0x58] sm:$0xff] (!%p245_p6)   ;;  %v310_v8 = vshrl.u32 (!%p245_p6), %v309_v5, 7  ;;  %v1169_v10 = vld [vmem:[%s1461_s1 + $0x60] sm:$0xff] (!%p245_p6)   ;;  %v1171_v14 = vld [vmem:[%s1461_s1 + $0x68] sm:$0xff] (!%p245_p6)   ;;  %1054 = vmatprep.mubr.msk.f32.mxu1 (!%p245_p6), %vm1266_vm4, %v1267_v51  ;;  %s990_s20 = sshll.u32 (!%p245_p6), %s1321_s27, 4  ;;  %s269_s23 = sand.u32 (!%p245_p6), 1, %s1223_s24  }
   0xd   : > { %1024 = vmatprep.subr.bf16.mxu0 (!%p245_p6), %v1163_v2  ;;  %v1168_v9 = vld [vmem:[%s1461_s1 + $0x18] sm:$0xff] (!%p245_p6)   ;;  %v1170_v12 = vld [vmem:[%s1461_s1 + $0x20] sm:$0xff] (!%p245_p6)   ;;  %v1172_v27 = vld [vmem:[%s1461_s1 + $0x28] sm:$0xff] (!%p245_p6)   ;;  %s540_s26 = ssub.s32 (!%p245_p6), 18, %s990_s20  ;;  %v542_v58 = vand.u32 (!%p245_p6), 127, %v309_v5  ;;  %s967_s29 = sshll.u32 (!%p245_p6), %s269_s23, 3 }
   0xe   : > { %v311_v11 = vsub.s32 (!%p245_p6), 0, %v310_v8  ;;  %v315_v13 = vsub.s32 (!%p245_p6), 1, %v310_v8  ;;  %v307_v17 = vld [vmem:[%s1463_s3] sm:$0x3] (!%p245_p6)  ;;  %v1173_v28 = vld [vmem:[%s1461_s1 + $0x70] sm:$0xff] (!%p245_p6)   ;;  %v1175_v38 = vld [vmem:[%s1461_s1 + $0x78] sm:$0xff] (!%p245_p6)   ;;  %v543_v61 = vstv (!%p245_p6), %s540_s26 }
   0xf   : > { %v323_v22 = vld [vmem:[%s1464_s4] sm:$0x3] (!%p245_p6)  ;;  %v1174_v37 = vld [vmem:[%s1461_s1 + $0x30] sm:$0xff] (!%p245_p6)   ;;  %v1176_v45 = vld [vmem:[%s1461_s1 + $0x38] sm:$0xff] (!%p245_p6)   ;;  %vm544_vm5 = vcmp.lt.s32.totalorder (!%p245_p6), %v542_v58, %v543_v61  ;;  %vm547_vm6 = vcmask (!%p245_p6), 130048   ;;  %p294_p8 = scmp.lt.s32.totalorder (!%p245_p6), %s1321_s27, 1 }
  0x10   : > { %1025 = vmatpush3.bf16.msra.mxu0 (!%p245_p6), %v1164_v3  ;;  %v312_v23 = vrot.slane (!%p245_p6), %v307_v17, %v311_v11  ;;  %v316_v24 = vrot.slane (!%p245_p6), %v307_v17, %v315_v13  ;;  %v328_v25 = vrot.slane (!%p245_p6), %v323_v22, %v311_v11  ;;  %v332_v26 = vrot.slane (!%p245_p6), %v323_v22, %v315_v13  ;;  %v971_v53 = vld [vmem:[%s1462_s2] ss:$0 sm:$0xff] (!%p245_p6) }
  0x11   : > { %1026 = vmatprep.subr.bf16.mxu0 (!%p245_p6), %v1165_v4  ;;  %v991_v3 = vsel (!%p245_p6), %vm544_vm5, 1.0, %v1267_v51 }
  0x12   : > { %s284_s21 = scalar_select %p283_p7, %s1341_s12, 3 }
  0x13   : > { %s295_s24 = scalar_select %p294_p8, %s1321_s27, 1 }
  0x14   : > { %s1011_s30 = sshll.u32 %s284_s21, 3  ;;  %1027 = vmatpush3.bf16.msra.mxu0 %v1166_v6  ;;  %s1014_s18 = sshll.u32 (%p1333_p4), %s1321_s27, 3 }
  0x15   : > { %1028 = vmatprep.subr.bf16.mxu0 %v1167_v7  ;;  %s287_s17 = scalar_lea.vmem %s1460_s0, %s1011_s30  ;;  %s1407_s30 = scalar_lea.vmem [#allocation2], %s967_s29  }
  0x16   : > { %v301_v15 = vld [vmem:[%s287_s17] sm:$0xff]  ;;  %v302_v16 = vld [vmem:[%s287_s17 + $0x8] sm:$0xff]  ;;  %s296_s13 = scalar_lea.vmem %s1466_s6, %s295_s24  ;;  %s299_s16 = scalar_lea.vmem %s1467_s7, %s295_s24 }
  0x17   : > { %v303_v18 = vunpack.c.l.bf16 %v301_v15  ;;  %v304_v19 = vunpack.c.h.bf16 %v301_v15  ;;  %v305_v20 = vunpack.c.l.bf16 %v302_v16  ;;  %v306_v21 = vunpack.c.h.bf16 %v302_v16  ;;  %s709_s17 = ssub.s32 (%p1333_p4), 3, %s1341_s12  ;;  %s1426_s21 = scalar_lea.vmem (%p1333_p4), %s1465_s5, %s1014_s18  }
  0x18   : > { %1029 = vmatpush3.bf16.msra.mxu0 %v1168_v9  ;;  %p710_p9 = scmp.lt.s32.totalorder (%p1333_p4), %s709_s17, 2 }
  0x19   : > { %1030 = vmatprep.subr.bf16.mxu0 %v1169_v10  ;;  %v320_v29 = vmul.f32 %v316_v24, %v304_v19  ;;  %v322_v30 = vmul.f32 %v316_v24, %v306_v21  ;;  %v319_v31 = vmul.f32 %v312_v23, %v303_v18  ;;  %v321_v32 = vmul.f32 %v312_v23, %v305_v20 }
  0x1b   : > { %v336_v33 = vadd.f32 %v332_v26, %v320_v29  ;;  %v338_v34 = vadd.f32 %v332_v26, %v322_v30  ;;  %v335_v35 = vadd.f32 %v328_v25, %v319_v31  ;;  %v337_v36 = vadd.f32 %v328_v25, %v321_v32 }
  0x1c   : > { %1031 = vmatpush3.bf16.msra.mxu0 %v1170_v12 }
  0x1d   : > { %1032 = vmatprep.subr.bf16.mxu0 %v1171_v14  ;;  %vm340_vm0 = vcmp.ge.f32.partialorder %v336_v33, 0.0  ;;  %vm342_vm1 = vcmp.ge.f32.partialorder %v338_v34, 0.0  ;;  %v344_v39 = vmul.f32 0.2, %v336_v33  ;;  %v346_v40 = vmul.f32 0.2, %v338_v34 }
  0x1e   : > { %vm339_vm2 = vcmp.ge.f32.partialorder %v335_v35, 0.0  ;;  %vm341_vm3 = vcmp.ge.f32.partialorder %v337_v36, 0.0  ;;  %v343_v41 = vmul.f32 0.2, %v335_v35  ;;  %v345_v42 = vmul.f32 0.2, %v337_v36 }
  0x1f   : > { %v348_v43 = vsel %vm340_vm0, %v336_v33, %v344_v39  ;;  %v350_v44 = vsel %vm342_vm1, %v338_v34, %v346_v40 }
  0x20   : > { %1033 = vmatpush3.bf16.msra.mxu0 %v1172_v27  ;;  %v352_v46 = vpack.c.bf16 %v350_v44, %v348_v43  ;;  %v347_v47 = vsel %vm339_vm2, %v335_v35, %v343_v41  ;;  %v349_v48 = vsel %vm341_vm3, %v337_v36, %v345_v42 }
  0x21   : > { %1034 = vmatprep.subr.bf16.mxu0 %v1173_v28  ;;  %v351_v49 = vpack.c.bf16 %v349_v48, %v347_v47 }
  0x22   : > { %520 = vmatprep.mubr.bf16.mxu0 %v352_v46 }
  0x24   : > { %1035 = vmatpush3.bf16.msra.mxu0 %v1174_v37 }
  0x25   : > { %1036 = vmatprep.subr.bf16.mxu0 %v1175_v38 }
  0x28   : > { %1037 = vmatpush3.bf16.msra.mxu0 %v1176_v45 }
  0x2b   : > { %521 = vmatmul.mubr.bf16.vlgmr.msra.gmra.mrb[0].mxu0 %v351_v49 }
  0xfe   : > { %v1038_v52 = vpop.f32.mrb[0].mxu0 }
  0xff   : > { %v1039_v54 = vpop.f32.mrb[1].mxu0 }
 0x100   : > { %v1040_v55 = vadd.f32 %v1039_v54, %v1038_v52  ;;  %v1041_v56 = vpop.f32.mrb[2].mxu0 }
 0x101   : > { %v1042_v57 = vpop.f32.mrb[3].mxu0 }
 0x102   : > { %v523_v59 = vadd.f32 %v1040_v55, %v971_v53  ;;  %v1043_v60 = vadd.f32 %v1042_v57, %v1041_v56 }
 0x104   : > { %v526_v62 = vadd.f32 %v1043_v60, %v971_v53  ;;  %v622_v63 = vmul.f32 %v523_v59, %v523_v59 }
 0x106   : > { %v623_v0 = vmul.f32 %v526_v62, %v526_v62  ;;  %v1020_v1 = vpack.c.bf16 %v526_v62, %v523_v59 }
 0x108   : > { %v1068_v2 = vpack.c.bf16 %v623_v0, %v622_v63  ;;  %1021 = vst [vmem:[%s1407_s30] sm:$0xff] %v1020_v1   ;;  %1066 = vmatpush3.bf16.msra.mxu1 %v1020_v1 }
 0x109   : > { %1067 = vmatprep.subr.bf16.mxu1 %v1265_v50 }
 0x10b   : > { %1055 = vmatmul.mubr.msk.f32.vlgmr.msra.gmra.mrb[0].mxu1 %vm547_vm6, %v991_v3 }
 0x10c   : > { %1069 = vmatpush3.bf16.msra.mxu1 %v1068_v2  ;;  %1061 = vmatprep.mubr.msk.f32.mxu1 %vm1266_vm4, %v1267_v51 }
 0x10f   : > { %1062 = vmatmul.mubr.msk.f32.vlgmr.msra.gmra.mrb[2].mxu1 %vm547_vm6, %v991_v3 }
 0x1dd   : > { %707 = sbr.rel (!%p1333_p4) target bundleno = 533 (0x215), region = 44 }
 0x1de   : > { %v617_v4 = vpop.f32.mrb[0].mxu1 }
 0x1df   : > { %621 = vst [vmem:[%s296_s13] sm:$0x1] %v617_v4  ;;  %v1056_v5 = vpop.f32.mrb[1].mxu1 }
 0x1e2   : > { %v690_v6 = vpop.f32.mrb[2].mxu1 }
 0x1e3   : > { %694 = vst [vmem:[%s299_s16] sm:$0x1] %v690_v6  ;;  %v1063_v7 = vpop.f32.mrb[3].mxu1 }
 0x1e4   : > { %s1473_s17 = smov (!%p710_p9, %s709_s17), 2 }
 0x1e5   : > { %s996_s22 = sshll.u32 %s1473_s17, 6 }
 0x1e6   : > { %p999_p10 = scmp.eq.s32.totalorder %s996_s22, 0 }
 0x1e7   : > { %s1432_s23 = sshrl.u32 (!%p999_p10), %s1473_s17, 1 }
 0x1e8   : > { %718 = sbr.rel (%p999_p10) target bundleno = 533 (0x215), region = 48  ;;  %p1000_p11 = scmp.le.s32.totalorder (!%p999_p10), %s1432_s23, 0 }
 0x1ef   : > { %901 = sbr.rel (%p1000_p11) target bundleno = 512 (0x200), region = 144  ;;  %s1233_s27 = smov (!%p1000_p11), %s1426_s21  }
 0x1f0   : > { %s1237_s9 = smov (!%p1000_p11), %s1407_s30   ;;  %s1241_s12 = smov (!%p1000_p11), 0  }
 0x1f1   : > { %s1245_s26 = smov (!%p1000_p11), 0  }
 0x1f6 LB: >> { %v734_v8 = vld [vmem:[%s1239_s9] sm:$0xf]  ;;  %v736_v9 = vld [vmem:[%s1239_s9 + $0x4] sm:$0xf]  ;;  %s738_s29 = sadd.s32 1, %s1243_s12  ;;  %s728_s26 = sadd.s32 1, %s1247_s26   ;;  %s1247_s26 = sphi %s1245_s26, %s728_s26   ;;  %s1243_s12 = sphi %s1241_s12, %s1242_s12   ;;  %s1239_s9 = sphi %s1237_s9, %s743_s9   ;;  %s1235_s27 = sphi %s1233_s27, %s744_s27  }
 0x1f7   : >> { %735 = vst [vmem:[%s1235_s27] sm:$0xf] %v734_v8  ;;  %737 = vst [vmem:[%s1235_s27 + $0x4] sm:$0xf] %v736_v9  ;;  %p739_p12 = scmp.ge.s32.totalorder %s738_s29, %s1432_s23  ;;  %p727_p13 = scmp.ge.s32.totalorder %s728_s26, %s1432_s23 }
 0x1f9   : >> { %s1475_s29 = smov (%p739_p12, %s738_s29), 0  ;;  %730 = sbr.rel (!%p727_p13) target bundleno = 502 (0x1f6), region = 150 }
 0x1fa   : >> { %s1001_s24 = sshll.u32 %s1475_s29, 3  ;;  %s1242_s12 = smov %s1475_s29  }
 0x1fb   : >> { %s743_s9 = scalar_lea.vmem %s1407_s30, %s1001_s24 [#allocation2]   ;;  %s744_s27 = scalar_lea.vmem %s1426_s21, %s1001_s24  }
 0x200 PF: > { %s1442_s10 = sand.u32 1, %s1473_s17   ;;  %s1015_s11 = sshll.u32 %s1432_s23, 3 }
 0x201   : > { %s749_s13 = scalar_lea.vmem %s1407_s30, %s1015_s11 [#allocation2]   ;;  %s751_s14 = scalar_lea.vmem %s1426_s21, %s1015_s11  }
 0x202   : > { %p1006_p0 = scmp.le.s32.totalorder %s1442_s10, 0 }
 0x203   : > { %s1249_s15 = smov (!%p1006_p0), %s751_s14   ;;  %s1253_s16 = smov (!%p1006_p0), %s749_s13  }
 0x204   : > { %915 = sbr.rel (%p1006_p0) target bundleno = 533 (0x215), region = 155  ;;  %s1257_s18 = smov (!%p1006_p0), 0  }
 0x205   : > { %s1261_s19 = smov (!%p1006_p0), 0  }
 0x20b LB: >> { %v761_v10 = vld [vmem:[%s1255_s16] sm:$0xf]  ;;  %s763_s17 = sadd.s32 1, %s1259_s18  ;;  %s755_s19 = sadd.s32 1, %s1263_s19   ;;  %s1263_s19 = sphi %s1261_s19, %s755_s19   ;;  %s1259_s18 = sphi %s1257_s18, %s1258_s18   ;;  %s1255_s16 = sphi %s1253_s16, %s768_s16   ;;  %s1251_s15 = sphi %s1249_s15, %s769_s15  }
 0x20c   : >> { %762 = vst [vmem:[%s1251_s15] sm:$0xf] %v761_v10  ;;  %p764_p1 = scmp.ge.s32.totalorder %s763_s17, %s1442_s10  ;;  %p754_p2 = scmp.ge.s32.totalorder %s755_s19, %s1442_s10 }
 0x20e   : >> { %s1477_s17 = smov (%p764_p1, %s763_s17), 0  ;;  %757 = sbr.rel (!%p754_p2) target bundleno = 523 (0x20b), region = 161 }
 0x20f   : >> { %s1007_s30 = sshll.u32 %s1477_s17, 2  ;;  %s1258_s18 = smov %s1477_s17  }
 0x210   : >> { %s768_s16 = scalar_lea.vmem %s749_s13, %s1007_s30 [#allocation2]   ;;  %s769_s15 = scalar_lea.vmem %s751_s14, %s1007_s30  }
 0x215 PF: > { %p15_p3 = scmp.ge.s32.totalorder %s1323_s28, 4   ;;  %s1469_s24 = smov %s1227_s25 }
 0x216   : > { %s1470_s25 = smov %s1331_s8  ;;  %s1471_s26 = smov %s1323_s28 }
 0x217   :  { %17 = sbr.rel (!%p15_p3) target bundleno = 2 (0x2), region = 172 }

// kernel: tile.53
= control target key start
LH: loop header
LB: loop body
LE: loop exit
PB: predicated region body
PF: predicated region fallthrough
CT: control target
= control target key end

     0   :  { %s28_s0 = inlined_call_operand.vmem [shape: f32[32], index: 0, kind: input, shape index: {}]   ;;  %s29_s1 = inlined_call_operand.vmem [shape: f32[16,32], index: 1, kind: output, shape index: {}]  }
   0x1   :  { %v4_v0 = vld [vmem:[%s28_s0] ss:$0 sm:$0xff] }
   0x2   :  { %5 = vst [vmem:[%s29_s1] sm:$0xff] %v4_v0  ;;  %8 = vst [vmem:[%s29_s1 + $0x8] sm:$0xff] %v4_v0 }

// kernel: tile.58
= control target key start
LH: loop header
LB: loop body
LE: loop exit
PB: predicated region body
PF: predicated region fallthrough
CT: control target
= control target key end

     0   :  { %s57_s8 = smov 96   ;;  %vm3_vm0 = vcmask 261120   ;;  %s59_s15 = smov 64   ;;  %vm9_vm1 = vcmask 1048320   ;;  %vm15_vm2 = vcmask 785920   ;;  %vm21_vm3 = vcmask 523520   ;;  %s94_s0 = inlined_call_operand.vmem [shape: f32[16,32], index: 0, kind: input, shape index: {}]   ;;  %s95_s1 = inlined_call_operand.vmem [shape: f32[1,512], index: 1, kind: output, shape index: {}]  }
   0x1   :  { %v48_v0 = vld [vmem:[%s94_s0 + $0x3] ss:$4 sm:$0xf]   ;;  %v49_v1 = vld [vmem:[%s94_s0 + $0x2] ss:$4 sm:$0xf]  }
   0x2   :  { %7 = vrot.lane.b32.xlu0 %v48_v0, %s57_s8  ;;  %v50_v2 = vld [vmem:[%s94_s0 + $0x1] ss:$4 sm:$0xf]   ;;  %v2_v3 = vld [vmem:[%s94_s0] ss:$4 sm:$0xf]  }
   0x3   :  { %s58_s0 = smov 32   ;;  %4 = vst.msk [vmem:[#allocation0] ss:$8 sm:$0xf] %vm3_vm0, %v2_v3  }
   0x4   :  { %19 = vrot.lane.b32.xlu1 %v50_v2, %s58_s0 }
   0x6   :  { %13 = vrot.lane.b32.xlu0 %v49_v1, %s59_s15 }
  0x74   :  { %v8_v4 = vpop.permute.xlu0 %7  }
  0x75   :  { %10 = vst.msk [vmem:[#allocation0] ss:$8 sm:$0xf] %vm9_vm1, %v8_v4  }
  0x76   :  { %v20_v5 = vpop.permute.xlu1 %19  }
  0x78   :  { %v14_v6 = vpop.permute.xlu0 %13  }
  0x79   :  { %16 = vst.msk [vmem:[#allocation0] ss:$8 sm:$0xf] %vm15_vm2, %v14_v6  }
  0x7a   :  { %22 = vst.msk [vmem:[#allocation0] ss:$8 sm:$0xf] %vm21_vm3, %v20_v5  }
  0x81   :  { %v26_v7 = vld [vmem:[#allocation0] sm:$0x1]  ;;  %v30_v8 = vld [vmem:[#allocation0 + $0x8] sm:$0x1]  ;;  %v35_v9 = vld [vmem:[#allocation0 + $0x10] sm:$0x1] }
  0x82   :  { %28 = vst [vmem:[%s95_s1] sm:$0x1] %v26_v7  ;;  %51 = vst [vmem:[%s95_s1 + $0x1] sm:$0x1] %v30_v8  ;;  %v41_v10 = vld [vmem:[#allocation0 + $0x18] sm:$0x1] }
  0x83   :  { %52 = vst [vmem:[%s95_s1 + $0x2] sm:$0x1] %v35_v9  ;;  %53 = vst [vmem:[%s95_s1 + $0x3] sm:$0x1] %v41_v10 }

// kernel: _lambda_.9
= control target key start
LH: loop header
LB: loop body
LE: loop exit
PB: predicated region body
PF: predicated region fallthrough
CT: control target
= control target key end

     0   :  { %v32_v21 = vlaneseq  ;;  %vm739_vm4 = vmmov 0   ;;  %vm451_vm6 = vcmask 64512   ;;  %s902_s1 = inlined_call_operand.vmem [shape: bf16[512,128], index: 1, kind: input, shape index: {}]   ;;  %s903_s0 = inlined_call_operand.vmem [shape: bf16[8,512], index: 0, kind: input, shape index: {}]   ;;  %s904_s3 = inlined_call_operand.vmem [shape: f32[1,512], index: 3, kind: input, shape index: {}]   ;;  %s905_s4 = inlined_call_operand.vmem [shape: f32[1,512], index: 4, kind: input, shape index: {}]   ;;  %s906_s2 = inlined_call_operand.vmem [shape: f32[1,128], index: 2, kind: input, shape index: {}]   ;;  %s907_s5 = inlined_call_operand.vmem [shape: bf16[8,128], index: 5, kind: output, shape index: {0}]   ;;  %s908_s6 = inlined_call_operand.vmem [shape: f32[1,1,128], index: 6, kind: output, shape index: {1}]   ;;  %s909_s7 = inlined_call_operand.vmem [shape: f32[1,1,128], index: 7, kind: output, shape index: {2}]  }
   0x1   :  { %v706_v0 = vld [vmem:[%s902_s1 + $0x40] sm:$0xff]   ;;  %v710_v4 = vld [vmem:[%s902_s1 + $0x48] sm:$0xff]   ;;  %v714_v8 = vld [vmem:[%s902_s1 + $0x50] sm:$0xff]  }
   0x2   :  { %v707_v1 = vld [vmem:[%s902_s1 + $0xc0] sm:$0xff]   ;;  %646 = vmatprep.subr.bf16.mxu0 %v706_v0  ;;  %v711_v5 = vld [vmem:[%s902_s1 + $0xc8] sm:$0xff]   ;;  %v715_v9 = vld [vmem:[%s902_s1 + $0xd0] sm:$0xff]   ;;  %v33_v26 = vshrl.u32 %v32_v21, 7 }
   0x3   :  { %v708_v2 = vld [vmem:[%s902_s1] sm:$0xff]   ;;  %668 = vmatprep.subr.bf16.mxu1 %v707_v1  ;;  %v712_v6 = vld [vmem:[%s902_s1 + $0x8] sm:$0xff]   ;;  %v716_v10 = vld [vmem:[%s902_s1 + $0x10] sm:$0xff]  }
   0x4   :  { %v709_v3 = vld [vmem:[%s902_s1 + $0x80] sm:$0xff]   ;;  %647 = vmatpush3.bf16.msra.mxu0 %v708_v2  ;;  %v713_v7 = vld [vmem:[%s902_s1 + $0x88] sm:$0xff]   ;;  %v717_v11 = vld [vmem:[%s902_s1 + $0x90] sm:$0xff]   ;;  %v38_v31 = vsub.s32 1, %v33_v26  ;;  %v46_v33 = vsub.s32 3, %v33_v26  ;;  %v34_v35 = vsub.s32 0, %v33_v26 }
   0x5   :  { %669 = vmatpush3.bf16.msra.mxu1 %v709_v3  ;;  %648 = vmatprep.subr.bf16.mxu0 %v710_v4  ;;  %v718_v12 = vld [vmem:[%s902_s1 + $0x58] sm:$0xff]   ;;  %v722_v16 = vld [vmem:[%s902_s1 + $0x60] sm:$0xff]   ;;  %v726_v20 = vld [vmem:[%s902_s1 + $0x68] sm:$0xff]   ;;  %v42_v37 = vsub.s32 2, %v33_v26 }
   0x6   :  { %670 = vmatprep.subr.bf16.mxu1 %v711_v5  ;;  %v719_v13 = vld [vmem:[%s902_s1 + $0xd8] sm:$0xff]   ;;  %v723_v17 = vld [vmem:[%s902_s1 + $0xe0] sm:$0xff]   ;;  %v727_v22 = vld [vmem:[%s902_s1 + $0xe8] sm:$0xff]  }
   0x7   :  { %v720_v14 = vld [vmem:[%s902_s1 + $0x18] sm:$0xff]   ;;  %v724_v18 = vld [vmem:[%s902_s1 + $0x20] sm:$0xff]   ;;  %v728_v23 = vld [vmem:[%s902_s1 + $0x28] sm:$0xff]  }
   0x8   :  { %649 = vmatpush3.bf16.msra.mxu0 %v712_v6  ;;  %v721_v15 = vld [vmem:[%s902_s1 + $0x98] sm:$0xff]   ;;  %v725_v19 = vld [vmem:[%s902_s1 + $0xa0] sm:$0xff]   ;;  %v729_v24 = vld [vmem:[%s902_s1 + $0xa8] sm:$0xff]  }
   0x9   :  { %671 = vmatpush3.bf16.msra.mxu1 %v713_v7  ;;  %650 = vmatprep.subr.bf16.mxu0 %v714_v8  ;;  %v730_v25 = vld [vmem:[%s902_s1 + $0x70] sm:$0xff]   ;;  %v734_v30 = vld [vmem:[%s902_s1 + $0x78] sm:$0xff]   ;;  %v24_v38 = vld [vmem:[%s903_s0] sm:$0xff] }
   0xa   :  { %672 = vmatprep.subr.bf16.mxu1 %v715_v9  ;;  %v731_v27 = vld [vmem:[%s902_s1 + $0xf0] sm:$0xff]   ;;  %v735_v32 = vld [vmem:[%s902_s1 + $0xf8] sm:$0xff]   ;;  %v30_v39 = vld [vmem:[%s904_s3] sm:$0xf]  ;;  %v26_v41 = vunpack.c.l.bf16 %v24_v38  ;;  %v27_v42 = vunpack.c.h.bf16 %v24_v38 }
   0xb   :  { %v732_v28 = vld [vmem:[%s902_s1 + $0x30] sm:$0xff]   ;;  %v736_v34 = vld [vmem:[%s902_s1 + $0x38] sm:$0xff]   ;;  %v56_v40 = vld [vmem:[%s905_s4] sm:$0xf]  ;;  %v39_v43 = vrot.slane %v30_v39, %v38_v31  ;;  %v47_v48 = vrot.slane %v30_v39, %v46_v33  ;;  %v35_v51 = vrot.slane %v30_v39, %v34_v35  ;;  %v43_v53 = vrot.slane %v30_v39, %v42_v37 }
   0xc   :  { %651 = vmatpush3.bf16.msra.mxu0 %v716_v10  ;;  %v733_v29 = vld [vmem:[%s902_s1 + $0xb0] sm:$0xff]   ;;  %v737_v36 = vld [vmem:[%s902_s1 + $0xb8] sm:$0xff]   ;;  %v65_v44 = vrot.slane %v56_v40, %v38_v31  ;;  %v25_v45 = vld [vmem:[%s903_s0 + $0x8] sm:$0xff]  ;;  %v73_v49 = vrot.slane %v56_v40, %v46_v33  ;;  %v61_v52 = vrot.slane %v56_v40, %v34_v35  ;;  %v69_v55 = vrot.slane %v56_v40, %v42_v37 }
   0xd   :  { %673 = vmatpush3.bf16.msra.mxu1 %v717_v11  ;;  %652 = vmatprep.subr.bf16.mxu0 %v718_v12  ;;  %v28_v46 = vunpack.c.l.bf16 %v25_v45  ;;  %v29_v47 = vunpack.c.h.bf16 %v25_v45  ;;  %v53_v50 = vmul.f32 %v39_v43, %v27_v42  ;;  %v52_v57 = vmul.f32 %v35_v51, %v26_v41 }
   0xe   :  { %674 = vmatprep.subr.bf16.mxu1 %v719_v13  ;;  %v738_v10 = vmov 0.0   ;;  %v446_v11 = vand.u32 127, %v32_v21 }
   0xf   :  { %v55_v54 = vmul.f32 %v47_v48, %v29_v47  ;;  %v79_v56 = vadd.f32 %v65_v44, %v53_v50  ;;  %v54_v58 = vmul.f32 %v43_v53, %v28_v46  ;;  %v78_v61 = vadd.f32 %v61_v52, %v52_v57 }
  0x10   :  { %653 = vmatpush3.bf16.msra.mxu0 %v720_v14  ;;  %v610_v14 = vld [vmem:[%s906_s2] ss:$0 sm:$0xff]  ;;  %vm448_vm5 = vcmp.lt.s32.totalorder %v446_v11, 8 }
  0x11   :  { %675 = vmatpush3.bf16.msra.mxu1 %v721_v15  ;;  %654 = vmatprep.subr.bf16.mxu0 %v722_v16  ;;  %v81_v59 = vadd.f32 %v73_v49, %v55_v54  ;;  %vm83_vm0 = vcmp.ge.f32.partialorder %v79_v56, 0.0  ;;  %v87_v60 = vmul.f32 0.2, %v79_v56  ;;  %v80_v62 = vadd.f32 %v69_v55, %v54_v58 }
  0x12   :  { %676 = vmatprep.subr.bf16.mxu1 %v723_v17  ;;  %vm82_vm2 = vcmp.ge.f32.partialorder %v78_v61, 0.0  ;;  %v86_v1 = vmul.f32 0.2, %v78_v61  ;;  %v643_v26 = vsel %vm448_vm5, 1.0, %v738_v10 }
  0x13   :  { %vm85_vm1 = vcmp.ge.f32.partialorder %v81_v59, 0.0  ;;  %v89_v63 = vmul.f32 0.2, %v81_v59  ;;  %v91_v0 = vsel %vm83_vm0, %v79_v56, %v87_v60  ;;  %vm84_vm3 = vcmp.ge.f32.partialorder %v80_v62, 0.0 }
  0x14   :  { %655 = vmatpush3.bf16.msra.mxu0 %v724_v18  ;;  %v95_v2 = vpack.c.bf16 %v91_v0, %v91_v0  ;;  %v88_v4 = vmul.f32 0.2, %v80_v62  ;;  %v90_v6 = vsel %vm82_vm2, %v78_v61, %v86_v1 }
  0x15   :  { %677 = vmatpush3.bf16.msra.mxu1 %v725_v19  ;;  %656 = vmatprep.subr.bf16.mxu0 %v726_v20  ;;  %v93_v3 = vsel %vm85_vm1, %v81_v59, %v89_v63  ;;  %v94_v7 = vpack.c.bf16 %v90_v6, %v90_v6 }
  0x16   :  { %678 = vmatprep.subr.bf16.mxu1 %v727_v22  ;;  %v97_v5 = vpack.c.bf16 %v93_v3, %v93_v3  ;;  %393 = vmatprep.mubr.bf16.mxu0 %v95_v2  ;;  %v92_v8 = vsel %vm84_vm3, %v80_v62, %v88_v4 }
  0x17   :  { %v96_v9 = vpack.c.bf16 %v92_v8, %v92_v8 }
  0x18   :  { %657 = vmatpush3.bf16.msra.mxu0 %v728_v23  ;;  %433 = vmatprep.mubr.bf16.mxu1 %v97_v5 }
  0x19   :  { %679 = vmatpush3.bf16.msra.mxu1 %v729_v24  ;;  %658 = vmatprep.subr.bf16.mxu0 %v730_v25 }
  0x1a   :  { %680 = vmatprep.subr.bf16.mxu1 %v731_v27 }
  0x1c   :  { %659 = vmatpush3.bf16.msra.mxu0 %v732_v28 }
  0x1d   :  { %681 = vmatpush3.bf16.msra.mxu1 %v733_v29  ;;  %660 = vmatprep.subr.bf16.mxu0 %v734_v30 }
  0x1e   :  { %682 = vmatprep.subr.bf16.mxu1 %v735_v32 }
  0x20   :  { %661 = vmatpush3.bf16.msra.mxu0 %v736_v34 }
  0x21   :  { %683 = vmatpush3.bf16.msra.mxu1 %v737_v36  ;;  %694 = vmatprep.subr.mxu0 %v738_v10 }
  0x22   :  { %699 = vmatprep.subr.mxu1 %v738_v10 }
  0x23   :  { %394 = vmatmul.mubr.bf16.vlgmr.msra.gmra.mrb[0].mxu0 %v94_v7 }
  0x24   :  { %434 = vmatmul.mubr.bf16.vlgmr.msra.gmra.mrb[0].mxu1 %v96_v9  ;;  %696 = vmatprep.mubr.msk.f32.mxu0 %vm739_vm4, %v738_v10 }
  0x25   :  { %701 = vmatprep.mubr.msk.f32.mxu1 %vm739_vm4, %v738_v10 }
  0xf6   :  { %v662_v12 = vpop.f32.mrb[0].mxu0 }
  0xf7   :  { %v684_v13 = vpop.f32.mrb[0].mxu1  ;;  %v663_v15 = vpop.f32.mrb[1].mxu0 }
  0xf8   :  { %v664_v16 = vadd.f32 %v663_v15, %v662_v12  ;;  %v685_v17 = vpop.f32.mrb[1].mxu1  ;;  %v665_v18 = vpop.f32.mrb[2].mxu0 }
  0xf9   :  { %v686_v19 = vadd.f32 %v685_v17, %v684_v13  ;;  %v687_v20 = vpop.f32.mrb[2].mxu1  ;;  %v666_v22 = vpop.f32.mrb[3].mxu0 }
  0xfa   :  { %v396_v23 = vadd.f32 %v664_v16, %v610_v14  ;;  %v688_v24 = vpop.f32.mrb[3].mxu1 }
  0xfc   :  { %v436_v25 = vadd.f32 %v686_v19, %v396_v23 }
  0xfe   :  { %v441_v21 = vpack.c.bf16 %v436_v25, %v436_v25  ;;  %v526_v27 = vmul.f32 %v436_v25, %v436_v25  ;;  %695 = vmatpush3.msra.mxu0 %v436_v25 }
  0xff   :  { %697 = vmatmul.mubr.msk.f32.vlgmr.msra.gmra.mrb[4].mxu0 %vm451_vm6, %v643_v26 }
 0x100   :  { %442 = vst [vmem:[%s907_s5] sm:$0xf] %v441_v21  ;;  %700 = vmatpush3.msra.mxu1 %v526_v27 }
 0x101   :  { %702 = vmatmul.mubr.msk.f32.vlgmr.msra.gmra.mrb[4].mxu1 %vm451_vm6, %v643_v26 }
 0x1d2   :  { %v521_v28 = vpop.f32.mrb[4].mxu0 }
 0x1d3   :  { %525 = vst [vmem:[%s908_s6] sm:$0x1] %v521_v28  ;;  %v698_v29 = vpop.f32.mrb[5].mxu0 }
 0x1d4   :  { %v593_v30 = vpop.f32.mrb[4].mxu1 }
 0x1d5   :  { %597 = vst [vmem:[%s909_s7] sm:$0x1] %v593_v30  ;;  %v703_v31 = vpop.f32.mrb[5].mxu1 }

// kernel: tile.63
= control target key start
LH: loop header
LB: loop body
LE: loop exit
PB: predicated region body
PF: predicated region fallthrough
CT: control target
= control target key end

     0   :  { %s28_s0 = inlined_call_operand.vmem [shape: f32[64], index: 0, kind: input, shape index: {}]   ;;  %s29_s1 = inlined_call_operand.vmem [shape: f32[16,64], index: 1, kind: output, shape index: {}]  }
   0x1   :  { %v4_v0 = vld [vmem:[%s28_s0] ss:$0 sm:$0xff] }
   0x2   :  { %5 = vst [vmem:[%s29_s1] sm:$0xff] %v4_v0  ;;  %8 = vst [vmem:[%s29_s1 + $0x8] sm:$0xff] %v4_v0 }

// kernel: tile.68
= control target key start
LH: loop header
LB: loop body
LE: loop exit
PB: predicated region body
PF: predicated region fallthrough
CT: control target
= control target key end

     0   :  { %vm3_vm0 = vcmask 523264   ;;  %vm10_vm1 = vcmask 1048064   ;;  %s116_s0 = inlined_call_operand.vmem [shape: f32[16,64], index: 0, kind: input, shape index: {}]   ;;  %s117_s1 = inlined_call_operand.vmem [shape: f32[1,1024], index: 1, kind: output, shape index: {}]  }
   0x1   :  { %v66_v0 = vld [vmem:[%s116_s0 + $0x1] ss:$2 sm:$0xff]   ;;  %v2_v1 = vld [vmem:[%s116_s0] ss:$2 sm:$0xff]   ;;  %s75_s0 = smov 64  }
   0x2   :  { %8 = vrot.lane.b32.xlu0 %v66_v0, %s75_s0  ;;  %4 = vst.msk [vmem:[#allocation0] ss:$8 sm:$0xf] %vm3_vm0, %v2_v1   ;;  %5 = vst.msk [vmem:[#allocation0] ss:$8 sm:$0xf0] %vm3_vm0, %v2_v1  }
  0x74   :  { %v9_v2 = vpop.permute.xlu0 %8  }
  0x75   :  { %11 = vst.msk [vmem:[#allocation0] ss:$8 sm:$0xf] %vm10_vm1, %v9_v2   ;;  %12 = vst.msk [vmem:[#allocation0] ss:$8 sm:$0xf0] %vm10_vm1, %v9_v2  }
  0x7c   :  { %v16_v3 = vld [vmem:[#allocation0] sm:$0x1]  ;;  %v20_v4 = vld [vmem:[#allocation0 + $0x8] sm:$0x1]  ;;  %v25_v5 = vld [vmem:[#allocation0 + $0x10] sm:$0x1] }
  0x7d   :  { %18 = vst [vmem:[%s117_s1] sm:$0x1] %v16_v3  ;;  %67 = vst [vmem:[%s117_s1 + $0x1] sm:$0x1] %v20_v4  ;;  %v31_v6 = vld [vmem:[#allocation0 + $0x18] sm:$0x1] }
  0x7e   :  { %68 = vst [vmem:[%s117_s1 + $0x2] sm:$0x1] %v25_v5  ;;  %v37_v7 = vld [vmem:[#allocation0 + $0x20] sm:$0x1]  ;;  %v43_v8 = vld [vmem:[#allocation0 + $0x28] sm:$0x1] }
  0x7f   :  { %69 = vst [vmem:[%s117_s1 + $0x3] sm:$0x1] %v31_v6  ;;  %70 = vst [vmem:[%s117_s1 + $0x4] sm:$0x1] %v37_v7  ;;  %v49_v9 = vld [vmem:[#allocation0 + $0x30] sm:$0x1] }
  0x80   :  { %71 = vst [vmem:[%s117_s1 + $0x5] sm:$0x1] %v43_v8  ;;  %v55_v10 = vld [vmem:[#allocation0 + $0x38] sm:$0x1]  ;;  %72 = vst [vmem:[%s117_s1 + $0x6] sm:$0x1] %v49_v9 }
  0x81   :  { %73 = vst [vmem:[%s117_s1 + $0x7] sm:$0x1] %v55_v10 }

// kernel: _lambda_.11
= control target key start
LH: loop header
LB: loop body
LE: loop exit
PB: predicated region body
PF: predicated region fallthrough
CT: control target
= control target key end

     0   :  { %s1782_s18 = smov 0   ;;  %s1784_s19 = smov 0   ;;  %s2107_s0 = inlined_call_operand.vmem [shape: bf16[32,1024], index: 0, kind: input, shape index: {}]   ;;  %s2108_s1 = inlined_call_operand.vmem [shape: bf16[1024,128], index: 1, kind: input, shape index: {}]   ;;  %s2109_s2 = inlined_call_operand.vmem [shape: f32[1,128], index: 2, kind: input, shape index: {}]   ;;  %s2110_s3 = inlined_call_operand.vmem [shape: f32[1,1024], index: 3, kind: input, shape index: {}]   ;;  %s2111_s4 = inlined_call_operand.vmem [shape: f32[1,1024], index: 4, kind: input, shape index: {}]   ;;  %s2112_s5 = inlined_call_operand.vmem [shape: f32[18,128], index: 5, kind: output, shape index: {}]  }
   0x1   :  { %s1786_s20 = smov 0  }
   0x2 LB: > { %s1795_s21 = sadd.s32 4294967295, %s1718_s20   ;;  %s1797_s22 = sadd.s32 1, %s1718_s20   ;;  %s1718_s20 = sphi %s1786_s20, %s2116_s20   ;;  %s1714_s19 = sphi %s1784_s19, %s2115_s19   ;;  %s1710_s18 = sphi %s1782_s18, %s2114_s18  }
   0x3   : > { %s129_s23 = ssub.s32 %s1718_s20, %s1797_s22  ;;  %s132_s24 = sadd.s32 1, %s1714_s19 }
   0x4   : > { %p130_p0 = scmp.eq.s32.totalorder %s129_s23, 0  ;;  %p142_p1 = scmp.ne.s32.totalorder %s1714_s19, %s1710_s18 }
   0x5   : > { %p143_p2 = scmp.eq.s32.totalorder %s1795_s21, 1  ;;  %p1333_p3 = scmp.ge.s32.totalorder %s1718_s20, 1 }
   0x6   : > { %s1805_s25 = scalar_select %p130_p0, %s1714_s19, %s132_s24  }
   0x7   : > { %p1807_p4 = por %p143_p2, %p142_p1  ;;  %p189_p5 = scmp.lt.s32.totalorder %s1718_s20, 3 }
   0x9   : > { %p190_p6 = pnand %p1333_p3, %p189_p5 }
   0xa   : > { %v1600_v0 = vld [vmem:[%s2108_s1 + $0x40] sm:$0xff] (!%p190_p6)   ;;  %v1604_v4 = vld [vmem:[%s2108_s1 + $0x48] sm:$0xff] (!%p190_p6)   ;;  %v1608_v8 = vld [vmem:[%s2108_s1 + $0x50] sm:$0xff] (!%p190_p6)   ;;  %s1860_s15 = sshll.u32 (!%p190_p6), %s1795_s21, 1  ;;  %v256_v22 = vlaneseq (!%p190_p6)  ;;  %s214_s20 = sand.u32 (!%p190_p6), 1, %s1710_s18  }
   0xb   : > { %193 = sbr.rel (%p190_p6) target bundleno = 347 (0x15b), region = 40  ;;  %v1601_v1 = vld [vmem:[%s2108_s1 + $0xc0] sm:$0xff] (!%p190_p6)   ;;  %1424 = vmatprep.subr.bf16.mxu0 (!%p190_p6), %v1600_v0  ;;  %v1605_v5 = vld [vmem:[%s2108_s1 + $0xc8] sm:$0xff] (!%p190_p6)   ;;  %v1609_v9 = vld [vmem:[%s2108_s1 + $0xd0] sm:$0xff] (!%p190_p6)   ;;  %p218_p7 = scmp.lt.s32.totalorder (!%p190_p6), %s1860_s15, 3 }
   0xc   : > { %v1602_v2 = vld [vmem:[%s2108_s1] sm:$0xff] (!%p190_p6)   ;;  %1446 = vmatprep.subr.bf16.mxu1 (!%p190_p6), %v1601_v1  ;;  %v1606_v6 = vld [vmem:[%s2108_s1 + $0x8] sm:$0xff] (!%p190_p6)   ;;  %v1610_v10 = vld [vmem:[%s2108_s1 + $0x10] sm:$0xff] (!%p190_p6)   ;;  %v1894_v27 = vshrl.u32 (!%p190_p6), %v256_v22, 7  ;;  %s1334_s23 = sshll.u32 (!%p190_p6), %s214_s20, 4 }
   0xd   : > { %v1603_v3 = vld [vmem:[%s2108_s1 + $0x80] sm:$0xff] (!%p190_p6)   ;;  %1425 = vmatpush3.bf16.msra.mxu0 (!%p190_p6), %v1602_v2  ;;  %v1607_v7 = vld [vmem:[%s2108_s1 + $0x88] sm:$0xff] (!%p190_p6)   ;;  %v1611_v11 = vld [vmem:[%s2108_s1 + $0x90] sm:$0xff] (!%p190_p6)   ;;  %s2062_s24 = scalar_lea.vmem (!%p190_p6), [#allocation2], %s1334_s23  }
   0xe   : > { %1447 = vmatpush3.bf16.msra.mxu1 (!%p190_p6), %v1603_v3  ;;  %1426 = vmatprep.subr.bf16.mxu0 (!%p190_p6), %v1604_v4  ;;  %v1612_v12 = vld [vmem:[%s2108_s1 + $0x58] sm:$0xff] (!%p190_p6)   ;;  %v1616_v16 = vld [vmem:[%s2108_s1 + $0x60] sm:$0xff] (!%p190_p6)   ;;  %v1620_v20 = vld [vmem:[%s2108_s1 + $0x68] sm:$0xff] (!%p190_p6)   ;;  %v262_v33 = vsub.s32 (!%p190_p6), 1, %v1894_v27  ;;  %v270_v35 = vsub.s32 (!%p190_p6), 3, %v1894_v27  ;;  %v258_v39 = vsub.s32 (!%p190_p6), 0, %v1894_v27 }
   0xf   : > { %1448 = vmatprep.subr.bf16.mxu1 (!%p190_p6), %v1605_v5  ;;  %v1613_v13 = vld [vmem:[%s2108_s1 + $0xd8] sm:$0xff] (!%p190_p6)   ;;  %v1617_v17 = vld [vmem:[%s2108_s1 + $0xe0] sm:$0xff] (!%p190_p6)   ;;  %v1621_v21 = vld [vmem:[%s2108_s1 + $0xe8] sm:$0xff] (!%p190_p6)   ;;  %v266_v40 = vsub.s32 (!%p190_p6), 2, %v1894_v27 }
  0x10   : > { %v1614_v14 = vld [vmem:[%s2108_s1 + $0x18] sm:$0xff] (!%p190_p6)   ;;  %v1618_v18 = vld [vmem:[%s2108_s1 + $0x20] sm:$0xff] (!%p190_p6)   ;;  %v1622_v23 = vld [vmem:[%s2108_s1 + $0x28] sm:$0xff] (!%p190_p6)  }
  0x11   : > { %1427 = vmatpush3.bf16.msra.mxu0 (!%p190_p6), %v1606_v6  ;;  %v1615_v15 = vld [vmem:[%s2108_s1 + $0x98] sm:$0xff] (!%p190_p6)   ;;  %v1619_v19 = vld [vmem:[%s2108_s1 + $0xa0] sm:$0xff] (!%p190_p6)   ;;  %v1623_v24 = vld [vmem:[%s2108_s1 + $0xa8] sm:$0xff] (!%p190_p6)  }
  0x12   : > { %1449 = vmatpush3.bf16.msra.mxu1 %v1607_v7  ;;  %1428 = vmatprep.subr.bf16.mxu0 %v1608_v8  ;;  %s219_s11 = scalar_select %p218_p7, %s1860_s15, 3  ;;  %v1624_v25 = vld [vmem:[%s2108_s1 + $0x70] sm:$0xff]   ;;  %v1628_v30 = vld [vmem:[%s2108_s1 + $0x78] sm:$0xff]   ;;  %v1926_v38 = vld [vmem:[%s2110_s3] sm:$0xff] }
  0x13   : > { %1450 = vmatprep.subr.bf16.mxu1 %v1609_v9  ;;  %v1625_v26 = vld [vmem:[%s2108_s1 + $0xf0] sm:$0xff]   ;;  %v1629_v31 = vld [vmem:[%s2108_s1 + $0xf8] sm:$0xff]   ;;  %v1933_v45 = vld [vmem:[%s2111_s4] sm:$0xff]  ;;  %v263_v48 = vrot.slane %v1926_v38, %v262_v33  ;;  %v271_v55 = vrot.slane %v1926_v38, %v270_v35  ;;  %v259_v60 = vrot.slane %v1926_v38, %v258_v39  ;;  %v267_v0 = vrot.slane %v1926_v38, %v266_v40  ;;  %s1119_s18 = ssub.s32 (%p1807_p4), 3, %s1860_s15 }
  0x14   : > { %v1626_v28 = vld [vmem:[%s2108_s1 + $0x30] sm:$0xff]   ;;  %s1420_s27 = sshll.u32 %s219_s11, 5  ;;  %v1630_v32 = vld [vmem:[%s2108_s1 + $0x38] sm:$0xff]   ;;  %v321_v49 = vrot.slane %v1933_v45, %v262_v33  ;;  %v1632_v52 = vld [vmem:[%s2108_s1 + $0x140] sm:$0xff]   ;;  %v329_v56 = vrot.slane %v1933_v45, %v270_v35  ;;  %v317_v61 = vrot.slane %v1933_v45, %v258_v39  ;;  %v325_v1 = vrot.slane %v1933_v45, %v266_v40  ;;  %p1120_p8 = scmp.lt.s32.totalorder (%p1807_p4), %s1119_s18, 2 }
  0x15   : > { %1429 = vmatpush3.bf16.msra.mxu0 %v1610_v10  ;;  %v1627_v29 = vld [vmem:[%s2108_s1 + $0xb0] sm:$0xff]   ;;  %s1911_s12 = scalar_lea.vmem %s2107_s0, %s1420_s27  ;;  %v1631_v34 = vld [vmem:[%s2108_s1 + $0xb8] sm:$0xff]   ;;  %v1633_v57 = vld [vmem:[%s2108_s1 + $0x1c0] sm:$0xff]   ;;  %s1421_s27 = sshll.u32 (%p1807_p4), %s1795_s21, 4 }
  0x16   : > { %1451 = vmatpush3.bf16.msra.mxu1 %v1611_v11  ;;  %1430 = vmatprep.subr.bf16.mxu0 %v1612_v12  ;;  %v230_v36 = vld [vmem:[%s1911_s12] sm:$0xff]  ;;  %v231_v46 = vld [vmem:[%s1911_s12 + $0x8] sm:$0xff]  ;;  %s2073_s30 = scalar_lea.vmem (%p1807_p4), %s2112_s5, %s1421_s27  }
  0x17   : > { %1452 = vmatprep.subr.bf16.mxu1 %v1613_v13  ;;  %v234_v37 = vld [vmem:[%s1911_s12 + $0x20] sm:$0xff]  ;;  %v238_v41 = vunpack.c.l.bf16 %v230_v36  ;;  %v239_v42 = vunpack.c.h.bf16 %v230_v36  ;;  %v235_v47 = vld [vmem:[%s1911_s12 + $0x28] sm:$0xff]  ;;  %v240_v50 = vunpack.c.l.bf16 %v231_v46  ;;  %v241_v51 = vunpack.c.h.bf16 %v231_v46  ;;  %v1643_v46 = vld [vmem:[%s2108_s1 + $0x190] sm:$0xff]  }
  0x18   : > { %v246_v43 = vunpack.c.l.bf16 %v234_v37  ;;  %v247_v44 = vunpack.c.h.bf16 %v234_v37  ;;  %v248_v53 = vunpack.c.l.bf16 %v235_v47  ;;  %v249_v54 = vunpack.c.h.bf16 %v235_v47  ;;  %v1635_v33 = vld [vmem:[%s2108_s1 + $0x180] sm:$0xff]   ;;  %v1636_v35 = vld [vmem:[%s2108_s1 + $0x148] sm:$0xff]   ;;  %v1644_v47 = vld [vmem:[%s2108_s1 + $0x158] sm:$0xff]  }
  0x19   : > { %1431 = vmatpush3.bf16.msra.mxu0 %v1614_v14  ;;  %v297_v58 = vmul.f32 %v263_v48, %v239_v42  ;;  %v299_v62 = vmul.f32 %v271_v55, %v241_v51  ;;  %v296_v4 = vmul.f32 %v259_v60, %v238_v41  ;;  %v298_v8 = vmul.f32 %v267_v0, %v240_v50  ;;  %v1637_v37 = vld [vmem:[%s2108_s1 + $0x1c8] sm:$0xff]   ;;  %v1640_v42 = vld [vmem:[%s2108_s1 + $0x150] sm:$0xff]   ;;  %v1647_v50 = vld [vmem:[%s2108_s1 + $0x198] sm:$0xff]  }
  0x1a   : > { %1453 = vmatpush3.bf16.msra.mxu1 %v1615_v15  ;;  %1432 = vmatprep.subr.bf16.mxu0 %v1616_v16  ;;  %v305_v59 = vmul.f32 %v263_v48, %v247_v44  ;;  %v307_v63 = vmul.f32 %v271_v55, %v249_v54  ;;  %v304_v5 = vmul.f32 %v259_v60, %v246_v43  ;;  %v1638_v40 = vld [vmem:[%s2108_s1 + $0x108] sm:$0xff]   ;;  %v1641_v43 = vld [vmem:[%s2108_s1 + $0x1d0] sm:$0xff]   ;;  %v1645_v48 = vld [vmem:[%s2108_s1 + $0x1d8] sm:$0xff]   ;;  %v278_v54 = vsub.s32 5, %v1894_v27 }
  0x1b   : > { %1454 = vmatprep.subr.bf16.mxu1 %v1617_v17  ;;  %v355_v2 = vadd.f32 %v321_v49, %v297_v58  ;;  %v357_v6 = vadd.f32 %v329_v56, %v299_v62  ;;  %v306_v9 = vmul.f32 %v267_v0, %v248_v53  ;;  %v354_v16 = vadd.f32 %v317_v61, %v296_v4  ;;  %v1639_v41 = vld [vmem:[%s2108_s1 + $0x188] sm:$0xff]   ;;  %v1642_v44 = vld [vmem:[%s2108_s1 + $0x110] sm:$0xff]   ;;  %v1648_v51 = vld [vmem:[%s2108_s1 + $0x160] sm:$0xff]  }
  0x1c   : > { %v363_v3 = vadd.f32 %v321_v49, %v305_v59  ;;  %v365_v7 = vadd.f32 %v329_v56, %v307_v63  ;;  %v362_v17 = vadd.f32 %v317_v61, %v304_v5  ;;  %v1646_v49 = vld [vmem:[%s2108_s1 + $0x118] sm:$0xff]   ;;  %v1650_v53 = vld [vmem:[%s2108_s1 + $0x120] sm:$0xff]   ;;  %v286_v56 = vsub.s32 7, %v1894_v27  ;;  %v1653_v59 = vld [vmem:[%s2108_s1 + $0x1e8] sm:$0xff]  }
  0x1d   : > { %1433 = vmatpush3.bf16.msra.mxu0 %v1618_v18  ;;  %vm371_vm0 = vcmp.ge.f32.partialorder %v355_v2, 0.0  ;;  %v387_v10 = vmul.f32 0.2, %v355_v2  ;;  %vm373_vm2 = vcmp.ge.f32.partialorder %v357_v6, 0.0  ;;  %v389_v12 = vmul.f32 0.2, %v357_v6 }
  0x1e   : > { %1455 = vmatpush3.bf16.msra.mxu1 %v1619_v19  ;;  %1434 = vmatprep.subr.bf16.mxu0 %v1620_v20  ;;  %vm379_vm1 = vcmp.ge.f32.partialorder %v363_v3, 0.0  ;;  %v395_v11 = vmul.f32 0.2, %v363_v3  ;;  %vm381_vm3 = vcmp.ge.f32.partialorder %v365_v7, 0.0  ;;  %v397_v13 = vmul.f32 0.2, %v365_v7 }
  0x1f   : > { %1456 = vmatprep.subr.bf16.mxu1 %v1621_v21  ;;  %v403_v14 = vsel %vm371_vm0, %v355_v2, %v387_v10  ;;  %v405_v19 = vsel %vm373_vm2, %v357_v6, %v389_v12  ;;  %v356_v21 = vadd.f32 %v325_v1, %v298_v8  ;;  %vm370_vm4 = vcmp.ge.f32.partialorder %v354_v16, 0.0  ;;  %v1651_v55 = vld [vmem:[%s2108_s1 + $0x1a0] sm:$0xff]   ;;  %v1654_v61 = vld [vmem:[%s2108_s1 + $0x128] sm:$0xff]   ;;  %v1656_v63 = vld [vmem:[%s2108_s1 + $0x170] sm:$0xff]  }
  0x20   : > { %v411_v15 = vsel %vm379_vm1, %v363_v3, %v395_v11  ;;  %v413_v20 = vsel %vm381_vm3, %v365_v7, %v397_v13  ;;  %vm378_vm5 = vcmp.ge.f32.partialorder %v362_v17, 0.0  ;;  %v274_v58 = vsub.s32 4, %v1894_v27  ;;  %v1655_v62 = vld [vmem:[%s2108_s1 + $0x1a8] sm:$0xff]   ;;  %v232_v2 = vld [vmem:[%s1911_s12 + $0x10] sm:$0xff]  ;;  %v233_v10 = vld [vmem:[%s1911_s12 + $0x18] sm:$0xff] }
  0x21   : > { %1435 = vmatpush3.bf16.msra.mxu0 %v1622_v23  ;;  %v419_v18 = vpack.c.bf16 %v411_v15, %v403_v14  ;;  %v421_v22 = vpack.c.bf16 %v413_v20, %v405_v19  ;;  %v386_v23 = vmul.f32 0.2, %v354_v16  ;;  %vm372_vm6 = vcmp.ge.f32.partialorder %v356_v21, 0.0  ;;  %v236_v7 = vld [vmem:[%s1911_s12 + $0x30] sm:$0xff]  ;;  %v237_v11 = vld [vmem:[%s1911_s12 + $0x38] sm:$0xff] }
  0x22   : > { %1457 = vmatpush3.bf16.msra.mxu1 %v1623_v24  ;;  %1436 = vmatprep.subr.bf16.mxu0 %v1624_v25  ;;  %v394_v24 = vmul.f32 0.2, %v362_v17  ;;  %v364_v25 = vadd.f32 %v325_v1, %v306_v9  ;;  %v282_v60 = vsub.s32 6, %v1894_v27  ;;  %v279_v27 = vrot.slane %v1926_v38, %v278_v54  ;;  %v1657_v1 = vld [vmem:[%s2108_s1 + $0x1f0] sm:$0xff]  }
  0x23   : > { %1458 = vmatprep.subr.bf16.mxu1 %v1625_v26  ;;  %977 = vmatprep.mubr.bf16.mxu0 %v419_v18  ;;  %v388_v26 = vmul.f32 0.2, %v356_v21  ;;  %v275_v0 = vrot.slane %v1926_v38, %v274_v58  ;;  %v337_v3 = vrot.slane %v1933_v45, %v278_v54  ;;  %v287_v4 = vrot.slane %v1926_v38, %v286_v56  ;;  %v1658_v14 = vld [vmem:[%s2108_s1 + $0x130] sm:$0xff]  }
  0x24   : > { %1018 = vmatprep.mubr.bf16.mxu1 %v421_v22  ;;  %vm380_vm7 = vcmp.ge.f32.partialorder %v364_v25, 0.0  ;;  %v345_v5 = vrot.slane %v1933_v45, %v286_v56  ;;  %v283_v6 = vrot.slane %v1926_v38, %v282_v60  ;;  %v242_v8 = vunpack.c.l.bf16 %v232_v2  ;;  %v1660_v38 = vld [vmem:[%s2108_s1 + $0x178] sm:$0xff]  }
  0x25   : > { %1437 = vmatpush3.bf16.msra.mxu0 %v1626_v28  ;;  %v1634_v28 = vld [vmem:[%s2108_s1 + $0x100] sm:$0xff]   ;;  %v243_v9 = vunpack.c.h.bf16 %v232_v2  ;;  %v333_v12 = vrot.slane %v1933_v45, %v274_v58  ;;  %v341_v13 = vrot.slane %v1933_v45, %v282_v60  ;;  %v250_v15 = vunpack.c.l.bf16 %v236_v7  ;;  %v1659_v45 = vld [vmem:[%s2108_s1 + $0x1b0] sm:$0xff]  }
  0x26   : > { %1459 = vmatpush3.bf16.msra.mxu1 %v1627_v29  ;;  %1438 = vmatprep.subr.bf16.mxu0 %v1628_v30  ;;  %v402_v29 = vsel %vm370_vm4, %v354_v16, %v386_v23  ;;  %v410_v30 = vsel %vm378_vm5, %v362_v17, %v394_v24  ;;  %v251_v16 = vunpack.c.h.bf16 %v236_v7  ;;  %v244_v17 = vunpack.c.l.bf16 %v233_v10 }
  0x27   : > { %1460 = vmatprep.subr.bf16.mxu1 %v1629_v31  ;;  %v396_v31 = vmul.f32 0.2, %v364_v25  ;;  %v245_v18 = vunpack.c.h.bf16 %v233_v10  ;;  %v301_v19 = vmul.f32 %v279_v27, %v243_v9  ;;  %v252_v20 = vunpack.c.l.bf16 %v237_v11 }
  0x28   : > { %v300_v22 = vmul.f32 %v275_v0, %v242_v8  ;;  %v309_v23 = vmul.f32 %v279_v27, %v251_v16  ;;  %v1338_v27 = vld [vmem:[%s2109_s2] ss:$0 sm:$0xff] }
  0x29   : > { %1439 = vmatpush3.bf16.msra.mxu0 %v1630_v32  ;;  %v404_v32 = vsel %vm372_vm6, %v356_v21, %v388_v26  ;;  %v412_v36 = vsel %vm380_vm7, %v364_v25, %v396_v31  ;;  %v253_v21 = vunpack.c.h.bf16 %v237_v11  ;;  %v303_v24 = vmul.f32 %v287_v4, %v245_v18 }
  0x2a   : > { %1461 = vmatpush3.bf16.msra.mxu1 %v1631_v34  ;;  %1468 = vmatprep.subr.bf16.mxu0 %v1632_v52  ;;  %v418_v34 = vpack.c.bf16 %v410_v30, %v402_v29  ;;  %v420_v39 = vpack.c.bf16 %v412_v36, %v404_v32  ;;  %v1649_v52 = vld [vmem:[%s2108_s1 + $0x1e0] sm:$0xff]   ;;  %v308_v25 = vmul.f32 %v275_v0, %v250_v15 }
  0x2b   : > { %1490 = vmatprep.subr.bf16.mxu1 %v1633_v57  ;;  %v1652_v57 = vld [vmem:[%s2108_s1 + $0x168] sm:$0xff]   ;;  %v302_v26 = vmul.f32 %v283_v6, %v244_v17  ;;  %v359_v29 = vadd.f32 %v337_v3, %v301_v19  ;;  %v311_v30 = vmul.f32 %v287_v4, %v253_v21  ;;  %v358_v31 = vadd.f32 %v333_v12, %v300_v22 }
  0x2c   : > { %978 = vmatmul.mubr.bf16.vlgmr.msra.gmra.mrb[0].mxu0 %v418_v34  ;;  %v310_v32 = vmul.f32 %v283_v6, %v252_v20  ;;  %v367_v34 = vadd.f32 %v337_v3, %v309_v23  ;;  %v366_v36 = vadd.f32 %v333_v12, %v308_v25 }
  0x2d   : > { %1469 = vmatpush3.bf16.msra.mxu0 %v1634_v28  ;;  %1019 = vmatmul.mubr.bf16.vlgmr.msra.gmra.mrb[0].mxu1 %v420_v39  ;;  %v1661_v28 = vld [vmem:[%s2108_s1 + $0x1f8] sm:$0xff]   ;;  %vm375_vm8 = vcmp.ge.f32.partialorder %v359_v29, 0.0  ;;  %vm374_vm9 = vcmp.ge.f32.partialorder %v358_v31, 0.0 }
  0x2e   : > { %1470 = vmatprep.subr.bf16.mxu0 %v1636_v35  ;;  %1491 = vmatpush3.bf16.msra.mxu1 %v1635_v33  ;;  %v1662_v33 = vld [vmem:[%s2108_s1 + $0x138] sm:$0xff]   ;;  %v361_v35 = vadd.f32 %v345_v5, %v303_v24  ;;  %vm383_vm10 = vcmp.ge.f32.partialorder %v367_v34, 0.0  ;;  %vm382_vm13 = vcmp.ge.f32.partialorder %v366_v36, 0.0 }
  0x2f   : > { %1492 = vmatprep.subr.bf16.mxu1 %v1637_v37  ;;  %v360_v37 = vadd.f32 %v341_v13, %v302_v26  ;;  %v1663_v39 = vld [vmem:[%s2108_s1 + $0x1b8] sm:$0xff]  }
  0x30   : > { %vm377_vm11 = vcmp.ge.f32.partialorder %v361_v35, 0.0 }
  0x31   : > { %1471 = vmatpush3.bf16.msra.mxu0 %v1638_v40  ;;  %v391_v40 = vmul.f32 0.2, %v359_v29  ;;  %vm376_vm14 = vcmp.ge.f32.partialorder %v360_v37, 0.0 }
  0x32   : > { %1472 = vmatprep.subr.bf16.mxu0 %v1640_v42  ;;  %1493 = vmatpush3.bf16.msra.mxu1 %v1639_v41  ;;  %v369_v41 = vadd.f32 %v345_v5, %v311_v30  ;;  %v399_v42 = vmul.f32 0.2, %v367_v34 }
  0x33   : > { %1494 = vmatprep.subr.bf16.mxu1 %v1641_v43  ;;  %v393_v43 = vmul.f32 0.2, %v361_v35 }
  0x34   : > { %vm385_vm12 = vcmp.ge.f32.partialorder %v369_v41, 0.0 }
  0x35   : > { %1473 = vmatpush3.bf16.msra.mxu0 %v1642_v44  ;;  %v407_v44 = vsel %vm375_vm8, %v359_v29, %v391_v40 }
  0x36   : > { %1474 = vmatprep.subr.bf16.mxu0 %v1644_v47  ;;  %1495 = vmatpush3.bf16.msra.mxu1 %v1643_v46  ;;  %v401_v46 = vmul.f32 0.2, %v369_v41  ;;  %v415_v47 = vsel %vm383_vm10, %v367_v34, %v399_v42 }
  0x37   : > { %1496 = vmatprep.subr.bf16.mxu1 %v1645_v48  ;;  %v409_v48 = vsel %vm377_vm11, %v361_v35, %v393_v43 }
  0x39   : > { %1475 = vmatpush3.bf16.msra.mxu0 %v1646_v49  ;;  %v390_v49 = vmul.f32 0.2, %v358_v31 }
  0x3a   : > { %1476 = vmatprep.subr.bf16.mxu0 %v1648_v51  ;;  %1497 = vmatpush3.bf16.msra.mxu1 %v1647_v50  ;;  %v398_v50 = vmul.f32 0.2, %v366_v36  ;;  %v423_v51 = vpack.c.bf16 %v415_v47, %v407_v44 }
  0x3b   : > { %1498 = vmatprep.subr.bf16.mxu1 %v1649_v52  ;;  %v417_v52 = vsel %vm385_vm12, %v369_v41, %v401_v46 }
  0x3c   : > { %v425_v54 = vpack.c.bf16 %v417_v52, %v409_v48  ;;  %v414_v56 = vsel %vm382_vm13, %v366_v36, %v398_v50  ;;  %1059 = vmatprep.mubr.bf16.mxu0 %v423_v51 }
  0x3d   : > { %1477 = vmatpush3.bf16.msra.mxu0 %v1650_v53  ;;  %v368_v53 = vadd.f32 %v341_v13, %v310_v32 }
  0x3e   : > { %1478 = vmatprep.subr.bf16.mxu0 %v1652_v57  ;;  %1499 = vmatpush3.bf16.msra.mxu1 %v1651_v55  ;;  %v406_v55 = vsel %vm374_vm9, %v358_v31, %v390_v49  ;;  %v392_v57 = vmul.f32 0.2, %v360_v37 }
  0x3f   : > { %1500 = vmatprep.subr.bf16.mxu1 %v1653_v59  ;;  %v422_v58 = vpack.c.bf16 %v414_v56, %v406_v55  ;;  %vm384_vm15 = vcmp.ge.f32.partialorder %v368_v53, 0.0  ;;  %v400_v59 = vmul.f32 0.2, %v368_v53  ;;  %1100 = vmatprep.mubr.bf16.mxu1 %v425_v54 }
  0x40   : > { %v408_v60 = vsel %vm376_vm14, %v360_v37, %v392_v57 }
  0x41   : > { %1479 = vmatpush3.bf16.msra.mxu0 %v1654_v61  ;;  %v416_v61 = vsel %vm384_vm15, %v368_v53, %v400_v59 }
  0x42   : > { %1480 = vmatprep.subr.bf16.mxu0 %v1656_v63  ;;  %1501 = vmatpush3.bf16.msra.mxu1 %v1655_v62  ;;  %v424_v62 = vpack.c.bf16 %v416_v61, %v408_v60 }
  0x43   : > { %1502 = vmatprep.subr.bf16.mxu1 %v1657_v1 }
  0x45   : > { %1481 = vmatpush3.bf16.msra.mxu0 %v1658_v14 }
  0x46   : > { %1482 = vmatprep.subr.bf16.mxu0 %v1660_v38  ;;  %1503 = vmatpush3.bf16.msra.mxu1 %v1659_v45 }
  0x47   : > { %1504 = vmatprep.subr.bf16.mxu1 %v1661_v28 }
  0x49   : > { %1483 = vmatpush3.bf16.msra.mxu0 %v1662_v33 }
  0x4a   : > { %1505 = vmatpush3.bf16.msra.mxu1 %v1663_v39 }
  0x4c   : > { %1060 = vmatmul.mubr.bf16.vlgmr.msra.gmra.mrb[4].mxu0 %v422_v58 }
  0x4d   : > { %1101 = vmatmul.mubr.bf16.vlgmr.msra.gmra.mrb[4].mxu1 %v424_v62 }
  0xff   : > { %v1440_v63 = vpop.f32.mrb[0].mxu0 }
 0x100   : > { %v1441_v0 = vpop.f32.mrb[1].mxu0  ;;  %v1462_v1 = vpop.f32.mrb[0].mxu1 }
 0x101   : > { %v1442_v2 = vadd.f32 %v1441_v0, %v1440_v63  ;;  %v1443_v3 = vpop.f32.mrb[2].mxu0  ;;  %v1463_v4 = vpop.f32.mrb[1].mxu1 }
 0x102   : > { %v1444_v5 = vpop.f32.mrb[3].mxu0  ;;  %v1464_v7 = vadd.f32 %v1463_v4, %v1462_v1  ;;  %v1465_v8 = vpop.f32.mrb[2].mxu1 }
 0x103   : > { %v980_v6 = vadd.f32 %v1442_v2, %v1338_v27  ;;  %v1445_v9 = vadd.f32 %v1444_v5, %v1443_v3  ;;  %v1466_v10 = vpop.f32.mrb[3].mxu1 }
 0x104   : > { %v1467_v13 = vadd.f32 %v1466_v10, %v1465_v8 }
 0x105   : > { %v1021_v11 = vadd.f32 %v1464_v7, %v980_v6  ;;  %v983_v12 = vadd.f32 %v1445_v9, %v1338_v27 }
 0x107   : > { %v1024_v14 = vadd.f32 %v1467_v13, %v983_v12 }
 0x11f   : > { %v1484_v15 = vpop.f32.mrb[4].mxu0 }
 0x120   : > { %v1485_v16 = vpop.f32.mrb[5].mxu0  ;;  %v1506_v38 = vpop.f32.mrb[4].mxu1 }
 0x121   : > { %v1486_v17 = vadd.f32 %v1485_v16, %v1484_v15  ;;  %v1487_v18 = vpop.f32.mrb[6].mxu0  ;;  %v1507_v21 = vpop.f32.mrb[5].mxu1 }
 0x122   : > { %v1488_v19 = vpop.f32.mrb[7].mxu0  ;;  %v1508_v45 = vadd.f32 %v1507_v21, %v1506_v38  ;;  %v1509_v23 = vpop.f32.mrb[6].mxu1 }
 0x123   : > { %v1062_v20 = vadd.f32 %v1486_v17, %v1021_v11  ;;  %v1489_v22 = vadd.f32 %v1488_v19, %v1487_v18  ;;  %v1510_v25 = vpop.f32.mrb[7].mxu1  ;;  %1117 = sbr.rel (!%p1807_p4) target bundleno = 347 (0x15b), region = 44 }
 0x124   : > { %v1511_v28 = vadd.f32 %v1510_v25, %v1509_v23 }
 0x125   : > { %v1065_v24 = vadd.f32 %v1489_v22, %v1024_v14  ;;  %v1103_v26 = vadd.f32 %v1508_v45, %v1062_v20 }
 0x127   : > { %1109 = vst [vmem:[%s2062_s24] sm:$0xff] %v1103_v26  ;;  %v1106_v29 = vadd.f32 %v1511_v28, %v1065_v24 }
 0x129   : > { %1110 = vst [vmem:[%s2062_s24 + $0x8] sm:$0xff] %v1106_v29 }
 0x12a   : > { %s2118_s18 = smov (!%p1120_p8, %s1119_s18), 2 }
 0x12b   : > { %s1405_s6 = sshll.u32 %s2118_s18, 7 }
 0x12c   : > { %p1408_p9 = scmp.eq.s32.totalorder %s1405_s6, 0 }
 0x12d   : > { %s2079_s12 = sshrl.u32 (!%p1408_p9), %s2118_s18, 1 }
 0x12e   : > { %1128 = sbr.rel (%p1408_p9) target bundleno = 347 (0x15b), region = 48  ;;  %p1409_p10 = scmp.le.s32.totalorder (!%p1408_p9), %s2079_s12, 0 }
 0x135   : > { %1286 = sbr.rel (%p1409_p10) target bundleno = 326 (0x146), region = 124  ;;  %s1720_s21 = smov (!%p1409_p10), %s2073_s30  }
 0x136   : > { %s1724_s26 = smov (!%p1409_p10), %s2062_s24   ;;  %s1728_s15 = smov (!%p1409_p10), 0  }
 0x137   : > { %s1732_s7 = smov (!%p1409_p10), 0  }
 0x13c LB: >> { %v1192_v30 = vld [vmem:[%s1726_s26] sm:$0xff]  ;;  %v1194_v31 = vld [vmem:[%s1726_s26 + $0x8] sm:$0xff]  ;;  %s1196_s8 = sadd.s32 1, %s1730_s15  ;;  %s1186_s7 = sadd.s32 1, %s1734_s7   ;;  %s1734_s7 = sphi %s1732_s7, %s1186_s7   ;;  %s1730_s15 = sphi %s1728_s15, %s1729_s15   ;;  %s1726_s26 = sphi %s1724_s26, %s1201_s26   ;;  %s1722_s21 = sphi %s1720_s21, %s1202_s21  }
 0x13d   : >> { %1193 = vst [vmem:[%s1722_s21] sm:$0xff] %v1192_v30  ;;  %1195 = vst [vmem:[%s1722_s21 + $0x8] sm:$0xff] %v1194_v31  ;;  %p1197_p11 = scmp.ge.s32.totalorder %s1196_s8, %s2079_s12  ;;  %p1185_p12 = scmp.ge.s32.totalorder %s1186_s7, %s2079_s12 }
 0x13f   : >> { %s2120_s8 = smov (%p1197_p11, %s1196_s8), 0  ;;  %1188 = sbr.rel (!%p1185_p12) target bundleno = 316 (0x13c), region = 130 }
 0x140   : >> { %s1410_s9 = sshll.u32 %s2120_s8, 4  ;;  %s1729_s15 = smov %s2120_s8  }
 0x141   : >> { %s1201_s26 = scalar_lea.vmem %s2062_s24, %s1410_s9 [#allocation2]   ;;  %s1202_s21 = scalar_lea.vmem %s2073_s30, %s1410_s9  }
 0x146 PF: > { %s2089_s10 = sand.u32 1, %s2118_s18   ;;  %s1422_s11 = sshll.u32 %s2079_s12, 4 }
 0x147   : > { %s1207_s13 = scalar_lea.vmem %s2062_s24, %s1422_s11 [#allocation2]   ;;  %s1209_s14 = scalar_lea.vmem %s2073_s30, %s1422_s11  }
 0x148   : > { %p1415_p13 = scmp.le.s32.totalorder %s2089_s10, 0 }
 0x149   : > { %s1736_s16 = smov (!%p1415_p13), %s1209_s14   ;;  %s1740_s17 = smov (!%p1415_p13), %s1207_s13  }
 0x14a   : > { %1300 = sbr.rel (%p1415_p13) target bundleno = 347 (0x15b), region = 135  ;;  %s1744_s20 = smov (!%p1415_p13), 0  }
 0x14b   : > { %s1748_s23 = smov (!%p1415_p13), 0  }
 0x151 LB: >> { %v1219_v32 = vld [vmem:[%s1742_s17] sm:$0xff]  ;;  %s1221_s18 = sadd.s32 1, %s1746_s20  ;;  %s1213_s23 = sadd.s32 1, %s1750_s23   ;;  %s1750_s23 = sphi %s1748_s23, %s1213_s23   ;;  %s1746_s20 = sphi %s1744_s20, %s1745_s20   ;;  %s1742_s17 = sphi %s1740_s17, %s1226_s17   ;;  %s1738_s16 = sphi %s1736_s16, %s1227_s16  }
 0x152   : >> { %1220 = vst [vmem:[%s1738_s16] sm:$0xff] %v1219_v32  ;;  %p1222_p0 = scmp.ge.s32.totalorder %s1221_s18, %s2089_s10  ;;  %p1212_p1 = scmp.ge.s32.totalorder %s1213_s23, %s2089_s10 }
 0x154   : >> { %s2122_s18 = smov (%p1222_p0, %s1221_s18), 0  ;;  %1215 = sbr.rel (!%p1212_p1) target bundleno = 337 (0x151), region = 141 }
 0x155   : >> { %s1416_s24 = sshll.u32 %s2122_s18, 3  ;;  %s1745_s20 = smov %s2122_s18  }
 0x156   : >> { %s1226_s17 = scalar_lea.vmem %s1207_s13, %s1416_s24 [#allocation2]   ;;  %s1227_s16 = scalar_lea.vmem %s1209_s14, %s1416_s24  }
 0x15b PF: > { %p12_p2 = scmp.ge.s32.totalorder %s1797_s22, 4   ;;  %s2114_s18 = smov %s1714_s19 }
 0x15c   : > { %s2115_s19 = smov %s1805_s25  ;;  %s2116_s20 = smov %s1797_s22 }
 0x15d   :  { %14 = sbr.rel (!%p12_p2) target bundleno = 2 (0x2), region = 152 }

// kernel: _lambda_.10
= control target key start
LH: loop header
LB: loop body
LE: loop exit
PB: predicated region body
PF: predicated region fallthrough
CT: control target
= control target key end

     0   :  { %v38_v21 = vlaneseq  ;;  %vm1253_vm8 = vmmov 0   ;;  %vm857_vm10 = vcmask 64512   ;;  %s1548_s1 = inlined_call_operand.vmem [shape: bf16[1024,128], index: 1, kind: input, shape index: {}]   ;;  %s1549_s0 = inlined_call_operand.vmem [shape: bf16[8,1024], index: 0, kind: input, shape index: {}]   ;;  %s1550_s3 = inlined_call_operand.vmem [shape: f32[1,1024], index: 3, kind: input, shape index: {}]   ;;  %s1551_s4 = inlined_call_operand.vmem [shape: f32[1,1024], index: 4, kind: input, shape index: {}]   ;;  %s1552_s2 = inlined_call_operand.vmem [shape: f32[1,128], index: 2, kind: input, shape index: {}]   ;;  %s1553_s5 = inlined_call_operand.vmem [shape: bf16[8,128], index: 5, kind: output, shape index: {0}]   ;;  %s1554_s6 = inlined_call_operand.vmem [shape: f32[1,1,128], index: 6, kind: output, shape index: {1}]   ;;  %s1555_s7 = inlined_call_operand.vmem [shape: f32[1,1,128], index: 7, kind: output, shape index: {2}]  }
   0x1   :  { %v1188_v0 = vld [vmem:[%s1548_s1 + $0x40] sm:$0xff]   ;;  %v1192_v4 = vld [vmem:[%s1548_s1 + $0x48] sm:$0xff]   ;;  %v1196_v8 = vld [vmem:[%s1548_s1 + $0x50] sm:$0xff]  }
   0x2   :  { %v1189_v1 = vld [vmem:[%s1548_s1 + $0xc0] sm:$0xff]   ;;  %1084 = vmatprep.subr.bf16.mxu0 %v1188_v0  ;;  %v1193_v5 = vld [vmem:[%s1548_s1 + $0xc8] sm:$0xff]   ;;  %v1197_v9 = vld [vmem:[%s1548_s1 + $0xd0] sm:$0xff]   ;;  %v1370_v26 = vshrl.u32 %v38_v21, 7 }
   0x3   :  { %v1190_v2 = vld [vmem:[%s1548_s1] sm:$0xff]   ;;  %1106 = vmatprep.subr.bf16.mxu1 %v1189_v1  ;;  %v1194_v6 = vld [vmem:[%s1548_s1 + $0x8] sm:$0xff]   ;;  %v1198_v10 = vld [vmem:[%s1548_s1 + $0x10] sm:$0xff]  }
   0x4   :  { %v1191_v3 = vld [vmem:[%s1548_s1 + $0x80] sm:$0xff]   ;;  %1085 = vmatpush3.bf16.msra.mxu0 %v1190_v2  ;;  %v1195_v7 = vld [vmem:[%s1548_s1 + $0x88] sm:$0xff]   ;;  %v1199_v11 = vld [vmem:[%s1548_s1 + $0x90] sm:$0xff]   ;;  %v44_v31 = vsub.s32 1, %v1370_v26  ;;  %v52_v33 = vsub.s32 3, %v1370_v26  ;;  %v40_v35 = vsub.s32 0, %v1370_v26 }
   0x5   :  { %1107 = vmatpush3.bf16.msra.mxu1 %v1191_v3  ;;  %1086 = vmatprep.subr.bf16.mxu0 %v1192_v4  ;;  %v1200_v12 = vld [vmem:[%s1548_s1 + $0x58] sm:$0xff]   ;;  %v1204_v16 = vld [vmem:[%s1548_s1 + $0x60] sm:$0xff]   ;;  %v1208_v20 = vld [vmem:[%s1548_s1 + $0x68] sm:$0xff]   ;;  %v48_v37 = vsub.s32 2, %v1370_v26 }
   0x6   :  { %1108 = vmatprep.subr.bf16.mxu1 %v1193_v5  ;;  %v1201_v13 = vld [vmem:[%s1548_s1 + $0xd8] sm:$0xff]   ;;  %v1205_v17 = vld [vmem:[%s1548_s1 + $0xe0] sm:$0xff]   ;;  %v1209_v22 = vld [vmem:[%s1548_s1 + $0xe8] sm:$0xff]  }
   0x7   :  { %v1202_v14 = vld [vmem:[%s1548_s1 + $0x18] sm:$0xff]   ;;  %v1206_v18 = vld [vmem:[%s1548_s1 + $0x20] sm:$0xff]   ;;  %v1210_v23 = vld [vmem:[%s1548_s1 + $0x28] sm:$0xff]  }
   0x8   :  { %1087 = vmatpush3.bf16.msra.mxu0 %v1194_v6  ;;  %v1203_v15 = vld [vmem:[%s1548_s1 + $0x98] sm:$0xff]   ;;  %v1207_v19 = vld [vmem:[%s1548_s1 + $0xa0] sm:$0xff]   ;;  %v1211_v24 = vld [vmem:[%s1548_s1 + $0xa8] sm:$0xff]  }
   0x9   :  { %1109 = vmatpush3.bf16.msra.mxu1 %v1195_v7  ;;  %1088 = vmatprep.subr.bf16.mxu0 %v1196_v8  ;;  %v1212_v25 = vld [vmem:[%s1548_s1 + $0x70] sm:$0xff]   ;;  %v1216_v30 = vld [vmem:[%s1548_s1 + $0x78] sm:$0xff]   ;;  %v24_v38 = vld [vmem:[%s1549_s0] sm:$0xff] }
   0xa   :  { %1110 = vmatprep.subr.bf16.mxu1 %v1197_v9  ;;  %v1213_v27 = vld [vmem:[%s1548_s1 + $0xf0] sm:$0xff]   ;;  %v1217_v32 = vld [vmem:[%s1548_s1 + $0xf8] sm:$0xff]   ;;  %v1403_v39 = vld [vmem:[%s1550_s3] sm:$0xff]  ;;  %v28_v41 = vunpack.c.l.bf16 %v24_v38  ;;  %v29_v42 = vunpack.c.h.bf16 %v24_v38  ;;  %v64_v38 = vsub.s32 6, %v1370_v26 }
   0xb   :  { %v1214_v28 = vld [vmem:[%s1548_s1 + $0x30] sm:$0xff]   ;;  %v1218_v34 = vld [vmem:[%s1548_s1 + $0x38] sm:$0xff]   ;;  %v1408_v40 = vld [vmem:[%s1551_s4] sm:$0xff]  ;;  %v45_v43 = vrot.slane %v1403_v39, %v44_v31  ;;  %v53_v48 = vrot.slane %v1403_v39, %v52_v33  ;;  %v41_v52 = vrot.slane %v1403_v39, %v40_v35  ;;  %v49_v54 = vrot.slane %v1403_v39, %v48_v37 }
   0xc   :  { %1089 = vmatpush3.bf16.msra.mxu0 %v1198_v10  ;;  %v1215_v29 = vld [vmem:[%s1548_s1 + $0xb0] sm:$0xff]   ;;  %v1219_v36 = vld [vmem:[%s1548_s1 + $0xb8] sm:$0xff]   ;;  %v95_v44 = vrot.slane %v1408_v40, %v44_v31  ;;  %v25_v45 = vld [vmem:[%s1549_s0 + $0x8] sm:$0xff]  ;;  %v103_v49 = vrot.slane %v1408_v40, %v52_v33  ;;  %v91_v53 = vrot.slane %v1408_v40, %v40_v35  ;;  %v99_v57 = vrot.slane %v1408_v40, %v48_v37 }
   0xd   :  { %1111 = vmatpush3.bf16.msra.mxu1 %v1199_v11  ;;  %1090 = vmatprep.subr.bf16.mxu0 %v1200_v12  ;;  %v30_v46 = vunpack.c.l.bf16 %v25_v45  ;;  %v31_v47 = vunpack.c.h.bf16 %v25_v45  ;;  %v1220_v50 = vld [vmem:[%s1548_s1 + $0x140] sm:$0xff]   ;;  %v79_v51 = vmul.f32 %v45_v43, %v29_v42  ;;  %v78_v59 = vmul.f32 %v41_v52, %v28_v41  ;;  %v1240_v33 = vld [vmem:[%s1548_s1 + $0x168] sm:$0xff]   ;;  %v1244_v42 = vld [vmem:[%s1548_s1 + $0x170] sm:$0xff]  }
   0xe   :  { %1112 = vmatprep.subr.bf16.mxu1 %v1201_v13  ;;  %v1221_v55 = vld [vmem:[%s1548_s1 + $0x1c0] sm:$0xff]   ;;  %v1224_v13 = vld [vmem:[%s1548_s1 + $0x148] sm:$0xff]   ;;  %v1245_v43 = vld [vmem:[%s1548_s1 + $0x1f0] sm:$0xff]  }
   0xf   :  { %v81_v56 = vmul.f32 %v53_v48, %v31_v47  ;;  %v129_v58 = vadd.f32 %v95_v44, %v79_v51  ;;  %v80_v60 = vmul.f32 %v49_v54, %v30_v46  ;;  %v128_v63 = vadd.f32 %v91_v53, %v78_v59  ;;  %v1222_v7 = vld [vmem:[%s1548_s1 + $0x100] sm:$0xff]   ;;  %v1241_v35 = vld [vmem:[%s1548_s1 + $0x1e8] sm:$0xff]   ;;  %v26_v45 = vld [vmem:[%s1549_s0 + $0x10] sm:$0xff] }
  0x10   :  { %1091 = vmatpush3.bf16.msra.mxu0 %v1202_v14  ;;  %v1223_v8 = vld [vmem:[%s1548_s1 + $0x180] sm:$0xff]   ;;  %v1242_v37 = vld [vmem:[%s1548_s1 + $0x128] sm:$0xff]   ;;  %v65_v47 = vrot.slane %v1403_v39, %v64_v38  ;;  %v1246_v48 = vld [vmem:[%s1548_s1 + $0x130] sm:$0xff]  }
  0x11   :  { %1113 = vmatpush3.bf16.msra.mxu1 %v1203_v15  ;;  %1092 = vmatprep.subr.bf16.mxu0 %v1204_v16  ;;  %v131_v61 = vadd.f32 %v103_v49, %v81_v56  ;;  %vm137_vm0 = vcmp.ge.f32.partialorder %v129_v58, 0.0  ;;  %v145_v62 = vmul.f32 0.2, %v129_v58  ;;  %v130_v0 = vadd.f32 %v99_v57, %v80_v60  ;;  %v1225_v15 = vld [vmem:[%s1548_s1 + $0x1c8] sm:$0xff]   ;;  %v1239_v31 = vld [vmem:[%s1548_s1 + $0x1a0] sm:$0xff]   ;;  %v27_v52 = vld [vmem:[%s1549_s0 + $0x18] sm:$0xff] }
  0x12   :  { %1114 = vmatprep.subr.bf16.mxu1 %v1205_v17  ;;  %vm136_vm2 = vcmp.ge.f32.partialorder %v128_v63, 0.0  ;;  %v144_v3 = vmul.f32 0.2, %v128_v63  ;;  %v1226_v16 = vld [vmem:[%s1548_s1 + $0x108] sm:$0xff]   ;;  %v32_v49 = vunpack.c.l.bf16 %v26_v45  ;;  %v1248_v54 = vld [vmem:[%s1548_s1 + $0x178] sm:$0xff]   ;;  %v35_v56 = vunpack.c.h.bf16 %v27_v52 }
  0x13   :  { %vm139_vm1 = vcmp.ge.f32.partialorder %v131_v61, 0.0  ;;  %v147_v1 = vmul.f32 0.2, %v131_v61  ;;  %v153_v2 = vsel %vm137_vm0, %v129_v58, %v145_v62  ;;  %vm138_vm3 = vcmp.ge.f32.partialorder %v130_v0, 0.0  ;;  %v1227_v17 = vld [vmem:[%s1548_s1 + $0x188] sm:$0xff]   ;;  %v1249_v59 = vld [vmem:[%s1548_s1 + $0x1f8] sm:$0xff]  }
  0x14   :  { %1093 = vmatpush3.bf16.msra.mxu0 %v1206_v18  ;;  %v161_v4 = vpack.c.bf16 %v153_v2, %v153_v2  ;;  %v146_v6 = vmul.f32 0.2, %v130_v0  ;;  %v152_v10 = vsel %vm136_vm2, %v128_v63, %v144_v3  ;;  %v1228_v18 = vld [vmem:[%s1548_s1 + $0x150] sm:$0xff]   ;;  %v1243_v41 = vld [vmem:[%s1548_s1 + $0x1a8] sm:$0xff]   ;;  %v115_v58 = vrot.slane %v1408_v40, %v64_v38 }
  0x15   :  { %1115 = vmatpush3.bf16.msra.mxu1 %v1207_v19  ;;  %1094 = vmatprep.subr.bf16.mxu0 %v1208_v20  ;;  %v155_v5 = vsel %vm139_vm1, %v131_v61, %v147_v1  ;;  %v160_v11 = vpack.c.bf16 %v152_v10, %v152_v10  ;;  %v1229_v19 = vld [vmem:[%s1548_s1 + $0x1d0] sm:$0xff]  }
  0x16   :  { %1116 = vmatprep.subr.bf16.mxu1 %v1209_v22  ;;  %v163_v9 = vpack.c.bf16 %v155_v5, %v155_v5  ;;  %719 = vmatprep.mubr.bf16.mxu0 %v161_v4  ;;  %v154_v12 = vsel %vm138_vm3, %v130_v0, %v146_v6  ;;  %v1230_v20 = vld [vmem:[%s1548_s1 + $0x110] sm:$0xff]   ;;  %v1250_v0 = vld [vmem:[%s1548_s1 + $0x138] sm:$0xff]  }
  0x17   :  { %v162_v14 = vpack.c.bf16 %v154_v12, %v154_v12  ;;  %v1231_v22 = vld [vmem:[%s1548_s1 + $0x190] sm:$0xff]  }
  0x18   :  { %1095 = vmatpush3.bf16.msra.mxu0 %v1210_v23  ;;  %759 = vmatprep.mubr.bf16.mxu1 %v163_v9  ;;  %v1232_v23 = vld [vmem:[%s1548_s1 + $0x158] sm:$0xff]  }
  0x19   :  { %1117 = vmatpush3.bf16.msra.mxu1 %v1211_v24  ;;  %1096 = vmatprep.subr.bf16.mxu0 %v1212_v25  ;;  %v1233_v24 = vld [vmem:[%s1548_s1 + $0x1d8] sm:$0xff]  }
  0x1a   :  { %1118 = vmatprep.subr.bf16.mxu1 %v1213_v27  ;;  %v1234_v25 = vld [vmem:[%s1548_s1 + $0x118] sm:$0xff]  }
  0x1b   :  { %v1235_v27 = vld [vmem:[%s1548_s1 + $0x198] sm:$0xff]  }
  0x1c   :  { %1097 = vmatpush3.bf16.msra.mxu0 %v1214_v28  ;;  %v1236_v28 = vld [vmem:[%s1548_s1 + $0x160] sm:$0xff]  }
  0x1d   :  { %1119 = vmatpush3.bf16.msra.mxu1 %v1215_v29  ;;  %1098 = vmatprep.subr.bf16.mxu0 %v1216_v30  ;;  %v1237_v29 = vld [vmem:[%s1548_s1 + $0x1e0] sm:$0xff]  }
  0x1e   :  { %1120 = vmatprep.subr.bf16.mxu1 %v1217_v32  ;;  %v1238_v30 = vld [vmem:[%s1548_s1 + $0x120] sm:$0xff]   ;;  %v60_v32 = vsub.s32 5, %v1370_v26 }
  0x20   :  { %1099 = vmatpush3.bf16.msra.mxu0 %v1218_v34  ;;  %v68_v34 = vsub.s32 7, %v1370_v26  ;;  %v61_v44 = vrot.slane %v1403_v39, %v60_v32  ;;  %v111_v51 = vrot.slane %v1408_v40, %v60_v32 }
  0x21   :  { %1121 = vmatpush3.bf16.msra.mxu1 %v1219_v36  ;;  %1128 = vmatprep.subr.bf16.mxu0 %v1220_v50  ;;  %v56_v36 = vsub.s32 4, %v1370_v26  ;;  %v33_v50 = vunpack.c.h.bf16 %v26_v45 }
  0x22   :  { %1150 = vmatprep.subr.bf16.mxu1 %v1221_v55  ;;  %v69_v46 = vrot.slane %v1403_v39, %v68_v34  ;;  %v34_v55 = vunpack.c.l.bf16 %v27_v52  ;;  %v119_v57 = vrot.slane %v1408_v40, %v68_v34 }
  0x23   :  { %720 = vmatmul.mubr.bf16.vlgmr.msra.gmra.mrb[0].mxu0 %v160_v11  ;;  %v57_v26 = vrot.slane %v1403_v39, %v56_v36  ;;  %v107_v53 = vrot.slane %v1408_v40, %v56_v36  ;;  %v1247_v39 = vld [vmem:[%s1548_s1 + $0x1b0] sm:$0xff]   ;;  %v83_v60 = vmul.f32 %v61_v44, %v33_v50  ;;  %v1251_v40 = vld [vmem:[%s1548_s1 + $0x1b8] sm:$0xff]  }
  0x24   :  { %760 = vmatmul.mubr.bf16.vlgmr.msra.gmra.mrb[0].mxu1 %v162_v14  ;;  %1129 = vmatpush3.bf16.msra.mxu0 %v1222_v7  ;;  %v85_v62 = vmul.f32 %v69_v46, %v35_v56  ;;  %v84_v63 = vmul.f32 %v65_v47, %v34_v55 }
  0x25   :  { %1151 = vmatpush3.bf16.msra.mxu1 %v1223_v8  ;;  %1130 = vmatprep.subr.bf16.mxu0 %v1224_v13  ;;  %v82_v61 = vmul.f32 %v57_v26, %v32_v49  ;;  %v133_v1 = vadd.f32 %v111_v51, %v83_v60 }
  0x26   :  { %1152 = vmatprep.subr.bf16.mxu1 %v1225_v15  ;;  %v135_v3 = vadd.f32 %v119_v57, %v85_v62  ;;  %v134_v4 = vadd.f32 %v115_v58, %v84_v63 }
  0x27   :  { %v132_v2 = vadd.f32 %v107_v53, %v82_v61  ;;  %vm141_vm4 = vcmp.ge.f32.partialorder %v133_v1, 0.0  ;;  %v149_v5 = vmul.f32 0.2, %v133_v1 }
  0x28   :  { %1131 = vmatpush3.bf16.msra.mxu0 %v1226_v16  ;;  %vm143_vm6 = vcmp.ge.f32.partialorder %v135_v3, 0.0  ;;  %v151_v7 = vmul.f32 0.2, %v135_v3  ;;  %vm142_vm7 = vcmp.ge.f32.partialorder %v134_v4, 0.0  ;;  %v150_v8 = vmul.f32 0.2, %v134_v4 }
  0x29   :  { %1153 = vmatpush3.bf16.msra.mxu1 %v1227_v17  ;;  %1132 = vmatprep.subr.bf16.mxu0 %v1228_v18  ;;  %vm140_vm5 = vcmp.ge.f32.partialorder %v132_v2, 0.0  ;;  %v148_v6 = vmul.f32 0.2, %v132_v2  ;;  %v157_v9 = vsel %vm141_vm4, %v133_v1, %v149_v5  ;;  %v1252_v17 = vmov 0.0  }
  0x2a   :  { %1154 = vmatprep.subr.bf16.mxu1 %v1229_v19  ;;  %v165_v11 = vpack.c.bf16 %v157_v9, %v157_v9  ;;  %v159_v12 = vsel %vm143_vm6, %v135_v3, %v151_v7  ;;  %v158_v14 = vsel %vm142_vm7, %v134_v4, %v150_v8 }
  0x2b   :  { %v156_v10 = vsel %vm140_vm5, %v132_v2, %v148_v6  ;;  %v167_v15 = vpack.c.bf16 %v159_v12, %v159_v12  ;;  %v166_v16 = vpack.c.bf16 %v158_v14, %v158_v14 }
  0x2c   :  { %1133 = vmatpush3.bf16.msra.mxu0 %v1230_v20  ;;  %v164_v13 = vpack.c.bf16 %v156_v10, %v156_v10  ;;  %799 = vmatprep.mubr.bf16.mxu0 %v165_v11  ;;  %v1016_v20 = vld [vmem:[%s1552_s2] ss:$0 sm:$0xff] }
  0x2d   :  { %1155 = vmatpush3.bf16.msra.mxu1 %v1231_v22  ;;  %1134 = vmatprep.subr.bf16.mxu0 %v1232_v23 }
  0x2e   :  { %1156 = vmatprep.subr.bf16.mxu1 %v1233_v24  ;;  %839 = vmatprep.mubr.bf16.mxu1 %v167_v15 }
  0x30   :  { %1135 = vmatpush3.bf16.msra.mxu0 %v1234_v25 }
  0x31   :  { %1157 = vmatpush3.bf16.msra.mxu1 %v1235_v27  ;;  %1136 = vmatprep.subr.bf16.mxu0 %v1236_v28 }
  0x32   :  { %1158 = vmatprep.subr.bf16.mxu1 %v1237_v29 }
  0x34   :  { %1137 = vmatpush3.bf16.msra.mxu0 %v1238_v30 }
  0x35   :  { %1159 = vmatpush3.bf16.msra.mxu1 %v1239_v31  ;;  %1138 = vmatprep.subr.bf16.mxu0 %v1240_v33  ;;  %v852_v33 = vand.u32 127, %v38_v21 }
  0x36   :  { %1160 = vmatprep.subr.bf16.mxu1 %v1241_v35 }
  0x37   :  { %vm854_vm9 = vcmp.lt.s32.totalorder %v852_v33, 8 }
  0x38   :  { %1139 = vmatpush3.bf16.msra.mxu0 %v1242_v37  ;;  %v1081_v47 = vsel %vm854_vm9, 1.0, %v1252_v17 }
  0x39   :  { %1161 = vmatpush3.bf16.msra.mxu1 %v1243_v41  ;;  %1140 = vmatprep.subr.bf16.mxu0 %v1244_v42 }
  0x3a   :  { %1162 = vmatprep.subr.bf16.mxu1 %v1245_v43 }
  0x3c   :  { %1141 = vmatpush3.bf16.msra.mxu0 %v1246_v48 }
  0x3d   :  { %1163 = vmatpush3.bf16.msra.mxu1 %v1247_v39  ;;  %1142 = vmatprep.subr.bf16.mxu0 %v1248_v54 }
  0x3e   :  { %1164 = vmatprep.subr.bf16.mxu1 %v1249_v59 }
  0x40   :  { %1143 = vmatpush3.bf16.msra.mxu0 %v1250_v0 }
  0x41   :  { %1165 = vmatpush3.bf16.msra.mxu1 %v1251_v40  ;;  %1176 = vmatprep.subr.mxu0 %v1252_v17 }
  0x42   :  { %1181 = vmatprep.subr.mxu1 %v1252_v17 }
  0x43   :  { %800 = vmatmul.mubr.bf16.vlgmr.msra.gmra.mrb[4].mxu0 %v164_v13 }
  0x44   :  { %840 = vmatmul.mubr.bf16.vlgmr.msra.gmra.mrb[4].mxu1 %v166_v16  ;;  %1178 = vmatprep.mubr.msk.f32.mxu0 %vm1253_vm8, %v1252_v17 }
  0x45   :  { %1183 = vmatprep.mubr.msk.f32.mxu1 %vm1253_vm8, %v1252_v17 }
  0xf6   :  { %v1100_v18 = vpop.f32.mrb[0].mxu0 }
  0xf7   :  { %v1122_v19 = vpop.f32.mrb[0].mxu1  ;;  %v1101_v22 = vpop.f32.mrb[1].mxu0 }
  0xf8   :  { %v1102_v23 = vadd.f32 %v1101_v22, %v1100_v18  ;;  %v1123_v24 = vpop.f32.mrb[1].mxu1  ;;  %v1103_v25 = vpop.f32.mrb[2].mxu0 }
  0xf9   :  { %v1124_v27 = vadd.f32 %v1123_v24, %v1122_v19  ;;  %v1125_v28 = vpop.f32.mrb[2].mxu1  ;;  %v1104_v29 = vpop.f32.mrb[3].mxu0 }
  0xfa   :  { %v722_v30 = vadd.f32 %v1102_v23, %v1016_v20  ;;  %v1126_v31 = vpop.f32.mrb[3].mxu1 }
  0xfc   :  { %v762_v32 = vadd.f32 %v1124_v27, %v722_v30 }
 0x116   :  { %v1144_v34 = vpop.f32.mrb[4].mxu0 }
 0x117   :  { %v1166_v35 = vpop.f32.mrb[4].mxu1  ;;  %v1145_v36 = vpop.f32.mrb[5].mxu0 }
 0x118   :  { %v1146_v37 = vadd.f32 %v1145_v36, %v1144_v34  ;;  %v1167_v38 = vpop.f32.mrb[5].mxu1  ;;  %v1147_v41 = vpop.f32.mrb[6].mxu0 }
 0x119   :  { %v1168_v42 = vadd.f32 %v1167_v38, %v1166_v35  ;;  %v1169_v43 = vpop.f32.mrb[6].mxu1  ;;  %v1148_v44 = vpop.f32.mrb[7].mxu0 }
 0x11a   :  { %v802_v26 = vadd.f32 %v1146_v37, %v762_v32  ;;  %v1170_v45 = vpop.f32.mrb[7].mxu1 }
 0x11c   :  { %v842_v46 = vadd.f32 %v1168_v42, %v802_v26 }
 0x11e   :  { %v847_v48 = vpack.c.bf16 %v842_v46, %v842_v46  ;;  %v932_v49 = vmul.f32 %v842_v46, %v842_v46  ;;  %1177 = vmatpush3.msra.mxu0 %v842_v46 }
 0x11f   :  { %1179 = vmatmul.mubr.msk.f32.vlgmr.msra.gmra.mrb[8].mxu0 %vm857_vm10, %v1081_v47 }
 0x120   :  { %848 = vst [vmem:[%s1553_s5] sm:$0xf] %v847_v48  ;;  %1182 = vmatpush3.msra.mxu1 %v932_v49 }
 0x121   :  { %1184 = vmatmul.mubr.msk.f32.vlgmr.msra.gmra.mrb[8].mxu1 %vm857_vm10, %v1081_v47 }
 0x1f2   :  { %v927_v21 = vpop.f32.mrb[8].mxu0 }
 0x1f3   :  { %931 = vst [vmem:[%s1554_s6] sm:$0x1] %v927_v21  ;;  %v1180_v50 = vpop.f32.mrb[9].mxu0 }
 0x1f4   :  { %v999_v51 = vpop.f32.mrb[8].mxu1 }
 0x1f5   :  { %1003 = vst [vmem:[%s1555_s7] sm:$0x1] %v999_v51  ;;  %v1185_v52 = vpop.f32.mrb[9].mxu1 }

</bundles_post_ra>
